<compile_context>
chip_gen: v6e
topology: v6e:2x2x1
jax: 0.10.0
libtpu: 0.0.40
codegen_flags: <defaults>
</compile_context>

<pallas_src>
import jax
import jax.numpy as jnp
from jax import lax
from jax.experimental import pallas as pl
from jax.experimental.pallas import tpu as pltpu


def _round_up(x, m):
    return (x + m - 1) // m * m


def _tpu_vmem_capacity_bytes():
    cap = 128 << 20
    try:
        info = pltpu.get_tpu_info()
        cap = int(getattr(info, "vmem_capacity_bytes", cap) or cap)
    except Exception:
        pass
    return cap


def _vmem_limit_bytes(cap):
    """Generation-aware scoped-VMEM request."""
    if cap >= (96 << 20):                   # v5e / v6e: 128 MiB physical VMEM
        return min(100 << 20, cap * 3 // 4)
    return min(32 << 20, cap * 3 // 4)      # v7x: 64 MiB physical VMEM / TC


def _frozen_clip_kernel(x_ref, wenc_ref,
                        w1_ref, b1_ref,
                        w2_ref, b2_ref,
                        w3_ref, b3_ref,
                        out_ref, acc_ref):
    """Grid = (batch_tiles, K_tiles); axis 1 (K) is the reduction axis.

    acc_ref: (tb, 512) f32 accumulator for the frozen encoder projection.
    x arrives as f32 and is cast to bf16 on the VPU right before the MXU dot
    (free filler under a DMA/MXU-bound loop); accumulation and the bias/ReLU
    epilogue are f32.
    """
    k = pl.program_id(1)

    @pl.when(k == 0)
    def _():
        acc_ref[...] = jnp.zeros_like(acc_ref)

    # Frozen "encode_image" stand-in projection, K-tiled:
    #   (tb, tk) bf16 @ (tk, 512) bf16 -> f32 accumulate.
    acc_ref[...] += jnp.dot(x_ref[...].astype(jnp.bfloat16), wenc_ref[...],
                            preferred_element_type=jnp.float32)

    # MLP head + bias/ReLU only in the finalize step: inner K loop stays pure MXU.
    @pl.when(k == pl.num_programs(1) - 1)
    def _():
        feat = acc_ref[...].astype(jnp.bfloat16)

        # fc1 + ReLU (bias add / ReLU in f32)
        h1 = jnp.dot(feat, w1_ref[...], preferred_element_type=jnp.float32)
        h1 = jnp.maximum(h1 + b1_ref[...], 0.0)

        # fc2 + ReLU
        h2 = jnp.dot(h1.astype(jnp.bfloat16), w2_ref[...],
                     preferred_element_type=jnp.float32)
        h2 = jnp.maximum(h2 + b2_ref[...], 0.0)

        # fc3 (logits, no activation)
        logits = jnp.dot(h2.astype(jnp.bfloat16), w3_ref[...],
                         preferred_element_type=jnp.float32)
        out_ref[...] = logits + b3_ref[...]


def prepare_params(params):
    """One-time pad + bf16 cast of all weights (frozen wenc is ~300 MB at real
    CLIP sizes; doing this per forward roughly doubled wenc HBM traffic)."""
    bf16, f32 = jnp.bfloat16, jnp.float32
    wenc = params["wenc"]
    K = wenc.shape[0]
    K_pad = _round_up(K, 256)
    num_classes = params["w3"].shape[1]
    N_pad = _round_up(num_classes, 128)     # lane-dense logits (128 avoids v5e waste)
    return {
        "wenc": jnp.pad(wenc, ((0, K_pad - K), (0, 0))).astype(bf16),
        "w1": params["w1"].astype(bf16),
        "b1": params["b1"].astype(f32),
        "w2": params["w2"].astype(bf16),
        "b2": params["b2"].astype(f32),
        "w3": jnp.pad(params["w3"], ((0, 0), (0, N_pad - num_classes))).astype(bf16),
        "b3": jnp.pad(params["b3"], ((0, 0), (0, N_pad - num_classes))).astype(f32),
    }


def frozen_clip_forward(x_nchw, prepared, num_classes, *, tk_max=2048, tb_max=256):
    """x_nchw: (B, C, H, W) float32.  Returns (B, num_classes) float32."""
    B, C, H, W = x_nchw.shape
    K = C * H * W
    x_flat = x_nchw.reshape(B, K)           # NCHW flatten order, like torch

    wenc_p = prepared["wenc"]               # (K_pad, 512) bf16, frozen, pre-padded
    w1_b, b1_f = prepared["w1"], prepared["b1"]
    w2_b, b2_f = prepared["w2"], prepared["b2"]
    w3_p, b3_p = prepared["w3"], prepared["b3"]

    K_pad, D = wenc_p.shape                 # D = 512
    assert K <= K_pad
    F1 = w1_b.shape[1]                      # 1024
    F2 = w2_b.shape[1]                      # 1024
    N_pad = w3_p.shape[1]
    assert num_classes <= N_pad

    cap = _tpu_vmem_capacity_bytes()

    # ---- batch padding / tiling (multiple of 16: bf16 packs (16,128)) ------
    B_pad = _round_up(B, 16)
    tb = min(B_pad, tb_max)
    # On 2-TensorCore chips (v7x: 64 MiB VMEM/TC) make sure the "parallel"
    # batch axis has >= 2 tiles so the second core isn't idle.
    if cap <= (64 << 20) and B_pad >= 32 and B_pad % 32 == 0:
        tb = min(tb, B_pad // 2)
    B_pad = _round_up(B_pad, tb)

    # ---- K tile: largest 256-multiple <= tk_max that divides K_pad ---------
    tk = 256
    t = (min(tk_max, K_pad) // 256) * 256
    while t >= 256:
        if K_pad % t == 0:
            tk = t
            break
        t -= 256
    nk = K_pad // tk

    # x stays f32 (cast happens in-kernel); pad only if actually needed.
    if (B_pad, K_pad) != (B, K):
        x_p = jnp.pad(x_flat, ((0, B_pad - B), (0, K_pad - K)))
    else:
        x_p = x_flat

    n_btiles = B_pad // tb
    grid = (n_btiles, nk)

    # Deeper buffering on the streamed operands only when the K loop is long
    # enough for it to matter; head weights are fetched once -> single buffer.
    stream_mode = pl.Buffered(3) if nk >= 3 else None
    once_mode = pl.Buffered(1)

    # Advisory cost estimate: wenc is re-streamed once per batch tile.
    enc_flops = 2 * B_pad * K_pad * D
    head_flops = 2 * B_pad * (D * F1 + F1 * F2 + F2 * N_pad)
    head_bytes = sum(int(a.size) * a.dtype.itemsize
                     for a in (w1_b, b1_f, w2_b, b2_f, w3_p, b3_p))
    bytes_accessed = (int(x_p.size) * x_p.dtype.itemsize
                      + n_btiles * int(wenc_p.size) * wenc_p.dtype.itemsize
                      + head_bytes
                      + B_pad * N_pad * 4)

    f32 = jnp.float32
    out = pl.pallas_call(
        _frozen_clip_kernel,
        out_shape=jax.ShapeDtypeStruct((B_pad, N_pad), f32),
        grid_spec=pltpu.PrefetchScalarGridSpec(
            num_scalar_prefetch=0,
            grid=grid,
            in_specs=[
                pl.BlockSpec((tb, tk), lambda i, k: (i, k),
                             pipeline_mode=stream_mode),          # x tile (f32)
                pl.BlockSpec((tk, D), lambda i, k: (k, 0),
                             pipeline_mode=stream_mode),          # wenc tile
                pl.BlockSpec((D, F1), lambda i, k: (0, 0),
                             pipeline_mode=once_mode),            # w1
                pl.BlockSpec((1, F1), lambda i, k: (0, 0),
                             pipeline_mode=once_mode),            # b1
                pl.BlockSpec((F1, F2), lambda i, k: (0, 0),
                             pipeline_mode=once_mode),            # w2
                pl.BlockSpec((1, F2), lambda i, k: (0, 0),
                             pipeline_mode=once_mode),            # b2
                pl.BlockSpec((F2, N_pad), lambda i, k: (0, 0),
                             pipeline_mode=once_mode),            # w3
                pl.BlockSpec((1, N_pad), lambda i, k: (0, 0),
                             pipeline_mode=once_mode),            # b3
            ],
            out_specs=pl.BlockSpec((tb, N_pad), lambda i, k: (i, 0)),
            scratch_shapes=[pltpu.VMEM((tb, D), f32)],
        ),
        compiler_params=pltpu.CompilerParams(
            dimension_semantics=("parallel", "arbitrary"),
            vmem_limit_bytes=_vmem_limit_bytes(cap),
        ),
        cost_estimate=pl.CostEstimate(
            flops=int(enc_flops + head_flops), transcendentals=0,
            bytes_accessed=int(bytes_accessed)),
    )(x_p, wenc_p, w1_b, b1_f, w2_b, b2_f, w3_p, b3_p)

    # Padded rows / padded logit lanes are garbage by construction; slice off.
    return out[:B, :num_classes]


def init_params(key, in_dim, num_classes):
    """Deterministic synthetic parameters (no checkpoint loading)."""
    ks = jax.random.split(key, 8)
    scale = lambda fan_in: 1.0 / jnp.sqrt(jnp.float32(fan_in))
    return {
        # frozen CLIP stand-in projection (no bias, like CLIP's visual proj)
        "wenc": jax.random.normal(ks[0], (in_dim, 512), jnp.float32) * scale(in_dim),
        # fc1: 512 -> 1024
        "w1": jax.random.normal(ks[1], (512, 1024), jnp.float32) * scale(512),
        "b1": jax.random.normal(ks[2], (1, 1024), jnp.float32) * 0.01,
        # fc2: 1024 -> 1024
        "w2": jax.random.normal(ks[3], (1024, 1024), jnp.float32) * scale(1024),
        "b2": jax.random.normal(ks[4], (1, 1024), jnp.float32) * 0.01,
        # fc3: 1024 -> num_classes
        "w3": jax.random.normal(ks[5], (1024, num_classes), jnp.float32) * scale(1024),
        "b3": jax.random.normal(ks[6], (1, num_classes), jnp.float32) * 0.01,
    }


if __name__ == "__main__":
    key = jax.random.PRNGKey(0)
    k_x, k_p = jax.random.split(key)

    B, C, H, W = 2, 3, 16, 16          # small synthetic image batch (NCHW)
    num_classes = 10

    x = jax.random.normal(k_x, (B, C, H, W), jnp.float32)
    params = init_params(k_p, C * H * W, num_classes)
    prepared = prepare_params(params)      # one-time pad/cast (frozen hot path)

    logits = frozen_clip_forward(x, prepared, num_classes)
    jax.block_until_ready(logits)

    assert logits.shape == (B, num_classes)
    assert logits.dtype == jnp.float32

    # Pure-JAX reference of the same forward, applying the same bf16 rounding
    # on matmul inputs (f32 math on the bf16-rounded values).
    hp = lax.Precision.HIGHEST
    bf16 = jnp.bfloat16
    x_flat = x.reshape(B, C * H * W)
    xb = x_flat.astype(bf16).astype(jnp.float32)
    wencf = params["wenc"].astype(bf16).astype(jnp.float32)
    w1f = params["w1"].astype(bf16).astype(jnp.float32)
    w2f = params["w2"].astype(bf16).astype(jnp.float32)
    w3f = params["w3"].astype(bf16).astype(jnp.float32)

    feat = jnp.dot(xb, wencf, precision=hp).astype(bf16).astype(jnp.float32)
    h1 = jnp.maximum(jnp.dot(feat, w1f, precision=hp) + params["b1"], 0.0)
    h1 = h1.astype(bf16).astype(jnp.float32)
    h2 = jnp.maximum(jnp.dot(h1, w2f, precision=hp) + params["b2"], 0.0)
    h2 = h2.astype(bf16).astype(jnp.float32)
    ref = jnp.dot(h2, w3f, precision=hp) + params["b3"]

    assert jnp.allclose(logits, ref, atol=2e-2, rtol=2e-2), (
        float(jnp.max(jnp.abs(logits - ref))))

    print("KERNEL_OK")
</pallas_src>

<mosaic_0001>
module attributes {stable_mosaic.version = 11 : i64} {
  func.func @_frozen_clip_kernel(%arg0: i32, %arg1: i32, %arg2: memref<16x768xf32, #tpu.memory_space<vmem>>, %arg3: memref<768x512xbf16, #tpu.memory_space<vmem>>, %arg4: memref<512x1024xbf16, #tpu.memory_space<vmem>>, %arg5: memref<1x1024xf32, #tpu.memory_space<vmem>>, %arg6: memref<1024x1024xbf16, #tpu.memory_space<vmem>>, %arg7: memref<1x1024xf32, #tpu.memory_space<vmem>>, %arg8: memref<1024x128xbf16, #tpu.memory_space<vmem>>, %arg9: memref<1x128xf32, #tpu.memory_space<vmem>>, %arg10: memref<16x128xf32, #tpu.memory_space<vmem>>, %arg11: memref<16x512xf32, #tpu.memory_space<vmem>>) attributes {dimension_semantics = [#tpu.dimension_semantics<parallel>, #tpu.dimension_semantics<arbitrary>], iteration_bounds = array<i64: 1, 1>, scalar_prefetch = 0 : i64, scratch_operands = 1 : i64, tpu.core_type = #tpu.core_type<tc>, window_params = [{transform_indices = @transform_0, window_bounds = array<i64: 16, 768>}, {transform_indices = @transform_1, window_bounds = array<i64: 768, 512>}, {pipeline_mode = #tpu.pipeline_mode<synchronous>, transform_indices = @transform_2, window_bounds = array<i64: 512, 1024>}, {pipeline_mode = #tpu.pipeline_mode<synchronous>, transform_indices = @transform_3, window_bounds = array<i64: 1, 1024>}, {pipeline_mode = #tpu.pipeline_mode<synchronous>, transform_indices = @transform_4, window_bounds = array<i64: 1024, 1024>}, {pipeline_mode = #tpu.pipeline_mode<synchronous>, transform_indices = @transform_5, window_bounds = array<i64: 1, 1024>}, {pipeline_mode = #tpu.pipeline_mode<synchronous>, transform_indices = @transform_6, window_bounds = array<i64: 1024, 128>}, {pipeline_mode = #tpu.pipeline_mode<synchronous>, transform_indices = @transform_7, window_bounds = array<i64: 1, 128>}, {transform_indices = @transform_8, window_bounds = array<i64: 16, 128>}]} {
    %c0_i32 = arith.constant 0 : i32
    %0 = arith.cmpi eq, %arg1, %c0_i32 : i32
    %1 = arith.extui %0 : i1 to i32
    %c0_i32_0 = arith.constant 0 : i32
    %2 = arith.cmpi ne, %1, %c0_i32_0 : i32
    scf.if %2 {
      %cst_10 = arith.constant 0.000000e+00 : f32
      %13 = vector.broadcast %cst_10 : f32 to vector<16x512xf32>
      %c0_11 = arith.constant 0 : index
      %c0_12 = arith.constant 0 : index
      %14 = vector.load %arg11[%c0_11, %c0_12] : memref<16x512xf32, #tpu.memory_space<vmem>>, vector<16x512xf32>
      tpu.vector_store %arg11[%c0_11, %c0_12], %13 {strides = array<i32>} : memref<16x512xf32, #tpu.memory_space<vmem>>, vector<16x512xf32>,
    } else {
    }
    %c0 = arith.constant 0 : index
    %c0_1 = arith.constant 0 : index
    %3 = vector.load %arg11[%c0, %c0_1] : memref<16x512xf32, #tpu.memory_space<vmem>>, vector<16x512xf32>
    %c0_2 = arith.constant 0 : index
    %c0_3 = arith.constant 0 : index
    %4 = vector.load %arg2[%c0_2, %c0_3] : memref<16x768xf32, #tpu.memory_space<vmem>>, vector<16x768xf32>
    %5 = arith.truncf %4 : vector<16x768xf32> to vector<16x768xbf16>
    %c0_4 = arith.constant 0 : index
    %c0_5 = arith.constant 0 : index
    %6 = vector.load %arg3[%c0_4, %c0_5] : memref<768x512xbf16, #tpu.memory_space<vmem>>, vector<768x512xbf16>
    %cst = arith.constant dense<0.000000e+00> : vector<16x512xf32>
    %7 = tpu.matmul %5, %6, %cst {dimension_numbers = #tpu.dot_dimension_numbers<[1], [0], [0], [1], [0, 0, 1, 1], [], []>} : vector<16x768xbf16>, vector<768x512xbf16>, vector<16x512xf32> -> vector<16x512xf32>
    %8 = arith.addf %3, %7 : vector<16x512xf32>
    %c0_6 = arith.constant 0 : index
    %c0_7 = arith.constant 0 : index
    %9 = vector.load %arg11[%c0_6, %c0_7] : memref<16x512xf32, #tpu.memory_space<vmem>>, vector<16x512xf32>
    tpu.vector_store %arg11[%c0_6, %c0_7], %8 {strides = array<i32>} : memref<16x512xf32, #tpu.memory_space<vmem>>, vector<16x512xf32>,
    %c0_i32_8 = arith.constant 0 : i32
    %10 = arith.cmpi eq, %arg1, %c0_i32_8 : i32
    %11 = arith.extui %10 : i1 to i32
    %c0_i32_9 = arith.constant 0 : i32
    %12 = arith.cmpi ne, %11, %c0_i32_9 : i32
    scf.if %12 {
      %c0_10 = arith.constant 0 : index
      %c0_11 = arith.constant 0 : index
      %13 = vector.load %arg11[%c0_10, %c0_11] : memref<16x512xf32, #tpu.memory_space<vmem>>, vector<16x512xf32>
      %14 = arith.truncf %13 : vector<16x512xf32> to vector<16x512xbf16>
      %c0_12 = arith.constant 0 : index
      %c0_13 = arith.constant 0 : index
      %15 = vector.load %arg4[%c0_12, %c0_13] : memref<512x1024xbf16, #tpu.memory_space<vmem>>, vector<512x1024xbf16>
      %cst_14 = arith.constant dense<0.000000e+00> : vector<16x1024xf32>
      %16 = tpu.matmul %14, %15, %cst_14 {dimension_numbers = #tpu.dot_dimension_numbers<[1], [0], [0], [1], [0, 0, 1, 1], [], []>} : vector<16x512xbf16>, vector<512x1024xbf16>, vector<16x1024xf32> -> vector<16x1024xf32>
      %c0_15 = arith.constant 0 : index
      %c0_16 = arith.constant 0 : index
      %17 = vector.load %arg5[%c0_15, %c0_16] : memref<1x1024xf32, #tpu.memory_space<vmem>>, vector<1x1024xf32>
      %18 = vector.broadcast %17 : vector<1x1024xf32> to vector<16x1024xf32>
      %19 = arith.addf %16, %18 : vector<16x1024xf32>
      %cst_17 = arith.constant 0.000000e+00 : f32
      %20 = vector.broadcast %cst_17 : f32 to vector<16x1024xf32>
      %21 = arith.maximumf %19, %20 : vector<16x1024xf32>
      %22 = arith.truncf %21 : vector<16x1024xf32> to vector<16x1024xbf16>
      %c0_18 = arith.constant 0 : index
      %c0_19 = arith.constant 0 : index
      %23 = vector.load %arg6[%c0_18, %c0_19] : memref<1024x1024xbf16, #tpu.memory_space<vmem>>, vector<1024x1024xbf16>
      %cst_20 = arith.constant dense<0.000000e+00> : vector<16x1024xf32>
      %24 = tpu.matmul %22, %23, %cst_20 {dimension_numbers = #tpu.dot_dimension_numbers<[1], [0], [0], [1], [0, 0, 1, 1], [], []>} : vector<16x1024xbf16>, vector<1024x1024xbf16>, vector<16x1024xf32> -> vector<16x1024xf32>
      %c0_21 = arith.constant 0 : index
      %c0_22 = arith.constant 0 : index
      %25 = vector.load %arg7[%c0_21, %c0_22] : memref<1x1024xf32, #tpu.memory_space<vmem>>, vector<1x1024xf32>
      %26 = vector.broadcast %25 : vector<1x1024xf32> to vector<16x1024xf32>
      %27 = arith.addf %24, %26 : vector<16x1024xf32>
      %cst_23 = arith.constant 0.000000e+00 : f32
      %28 = vector.broadcast %cst_23 : f32 to vector<16x1024xf32>
      %29 = arith.maximumf %27, %28 : vector<16x1024xf32>
      %30 = arith.truncf %29 : vector<16x1024xf32> to vector<16x1024xbf16>
      %c0_24 = arith.constant 0 : index
      %c0_25 = arith.constant 0 : index
      %31 = vector.load %arg8[%c0_24, %c0_25] : memref<1024x128xbf16, #tpu.memory_space<vmem>>, vector<1024x128xbf16>
      %cst_26 = arith.constant dense<0.000000e+00> : vector<16x128xf32>
      %32 = tpu.matmul %30, %31, %cst_26 {dimension_numbers = #tpu.dot_dimension_numbers<[1], [0], [0], [1], [0, 0, 1, 1], [], []>} : vector<16x1024xbf16>, vector<1024x128xbf16>, vector<16x128xf32> -> vector<16x128xf32>
      %c0_27 = arith.constant 0 : index
      %c0_28 = arith.constant 0 : index
      %33 = vector.load %arg9[%c0_27, %c0_28] : memref<1x128xf32, #tpu.memory_space<vmem>>, vector<1x128xf32>
      %34 = vector.broadcast %33 : vector<1x128xf32> to vector<16x128xf32>
      %35 = arith.addf %32, %34 : vector<16x128xf32>
      %c0_29 = arith.constant 0 : index
      %c0_30 = arith.constant 0 : index
      %36 = vector.load %arg10[%c0_29, %c0_30] : memref<16x128xf32, #tpu.memory_space<vmem>>, vector<16x128xf32>
      tpu.vector_store %arg10[%c0_29, %c0_30], %35 {strides = array<i32>} : memref<16x128xf32, #tpu.memory_space<vmem>>, vector<16x128xf32>,
    } else {
    }
    return
  }
  func.func @transform_0(%arg0: i32, %arg1: i32) -> (i32, i32) {
    %c0_i32 = arith.constant 0 : i32
    return %arg0, %arg1 : i32, i32
  }
  func.func @transform_1(%arg0: i32, %arg1: i32) -> (i32, i32) {
    %c0_i32 = arith.constant 0 : i32
    %c0_i32_0 = arith.constant 0 : i32
    return %arg1, %c0_i32 : i32, i32
  }
  func.func @transform_2(%arg0: i32, %arg1: i32) -> (i32, i32) {
    %c0_i32 = arith.constant 0 : i32
    %c0_i32_0 = arith.constant 0 : i32
    %c0_i32_1 = arith.constant 0 : i32
    return %c0_i32, %c0_i32_0 : i32, i32
  }
  func.func @transform_3(%arg0: i32, %arg1: i32) -> (i32, i32) {
    %c0_i32 = arith.constant 0 : i32
    %c0_i32_0 = arith.constant 0 : i32
    %c0_i32_1 = arith.constant 0 : i32
    return %c0_i32, %c0_i32_0 : i32, i32
  }
  func.func @transform_4(%arg0: i32, %arg1: i32) -> (i32, i32) {
    %c0_i32 = arith.constant 0 : i32
    %c0_i32_0 = arith.constant 0 : i32
    %c0_i32_1 = arith.constant 0 : i32
    return %c0_i32, %c0_i32_0 : i32, i32
  }
  func.func @transform_5(%arg0: i32, %arg1: i32) -> (i32, i32) {
    %c0_i32 = arith.constant 0 : i32
    %c0_i32_0 = arith.constant 0 : i32
    %c0_i32_1 = arith.constant 0 : i32
    return %c0_i32, %c0_i32_0 : i32, i32
  }
  func.func @transform_6(%arg0: i32, %arg1: i32) -> (i32, i32) {
    %c0_i32 = arith.constant 0 : i32
    %c0_i32_0 = arith.constant 0 : i32
    %c0_i32_1 = arith.constant 0 : i32
    return %c0_i32, %c0_i32_0 : i32, i32
  }
  func.func @transform_7(%arg0: i32, %arg1: i32) -> (i32, i32) {
    %c0_i32 = arith.constant 0 : i32
    %c0_i32_0 = arith.constant 0 : i32
    %c0_i32_1 = arith.constant 0 : i32
    return %c0_i32, %c0_i32_0 : i32, i32
  }
  func.func @transform_8(%arg0: i32, %arg1: i32) -> (i32, i32) {
    %c0_i32 = arith.constant 0 : i32
    %c0_i32_0 = arith.constant 0 : i32
    return %arg0, %c0_i32 : i32, i32
  }
}

</mosaic_0001>

<bundles_post_ra>
// kernel: tpu_custom_call.1
= control target key start
LH: loop header
LB: loop body
LE: loop exit
PB: predicated region body
PF: predicated region fallthrough
CT: control target
= control target key end

     0   :  { %13 = vsyncpa [#allocation4], 0  ;;  %s10132_s0 = inlined_call_operand.hbm [shape: f32[16,768], index: 0, kind: input, shape index: {}]   ;;  %s10133_s1 = inlined_call_operand.hbm [shape: bf16[768,512], index: 1, kind: input, shape index: {}]   ;;  %s10134_s2 = inlined_call_operand.hbm [shape: bf16[512,1024], index: 2, kind: input, shape index: {}]   ;;  %s10135_s3 = inlined_call_operand.hbm [shape: f32[1,1024], index: 3, kind: input, shape index: {}]   ;;  %s10136_s4 = inlined_call_operand.hbm [shape: bf16[1024,1024], index: 4, kind: input, shape index: {}]   ;;  %s10137_s5 = inlined_call_operand.hbm [shape: f32[1,1024], index: 5, kind: input, shape index: {}]   ;;  %s10138_s6 = inlined_call_operand.hbm [shape: bf16[1024,128], index: 6, kind: input, shape index: {}]   ;;  %s10139_s7 = inlined_call_operand.hbm [shape: f32[1,128], index: 7, kind: input, shape index: {}]   ;;  %s10140_s8 = inlined_call_operand.hbm [shape: f32[16,128], index: 8, kind: output, shape index: {}]  }
   0x1   :  { %14 = vsyncpa [#allocation7], 0 }
   0x2   :  { %15 = vsyncpa [#allocation10], 0 }
   0x3   :  { %16 = vsyncpa [#allocation13], 0 }
   0x4   :  { %17 = vsyncpa [#allocation16], 0 }
   0x5   :  { %18 = vsyncpa [#allocation5], 0  ;;  %s9767_s27 = smov [#allocation6]  }
   0x6   :  { %s36_s28 = sshll.u32 %s9767_s27, 4  ;;  %s37_s28 = int_to_ptr.vmem [resolvable:$true] %s36_s28 }
   0x7   :  { %s9583_s29 = scalar_lea.vmem %s37_s28, 24576  ;;  %p9588_p1 = scmp.lt.s32.totalorder %s37_s28, %s37_s28 }
   0x8   :  { %p9584_p0 = scmp.ne.s32.totalorder %s37_s28, %s9583_s29  ;;  %p9589_p2 = scmp.lt.s32.totalorder %s9583_s29, %s9583_s29 }
   0xa   :  { %p9590_p3 = por %p9589_p2, %p9588_p1 }
   0xc   :  { %p9591_p4 = pnand %p9590_p3, %p9584_p0 }
   0xe   :  { %9594 = shalt.err (!%p9591_p4)
}
   0xf   :  { %s9768_s30 = smov 256   ;;  %s9769_s9 = smov 16  }
  0x10   :  { %42 = dma.hbm_to_vmem [thread:$0]  %s10133_s1, 24576, %s37_s28, [#allocation7], %s9768_s30, %s9768_s30, %s9769_s9  }
  0x11   :  { %s9770_s12 = smov [#allocation9]   ;;  %s9771_s14 = smov [#allocation12]  }
  0x12   :  { %s61_s13 = sshll.u32 %s9770_s12, 4  ;;  %s83_s15 = sshll.u32 %s9771_s14, 4  ;;  %s62_s13 = int_to_ptr.vmem [resolvable:$true] %s61_s13  ;;  %s84_s15 = int_to_ptr.vmem [resolvable:$true] %s83_s15 }
  0x13   :  { %s9603_s16 = scalar_lea.vmem %s62_s13, 128  ;;  %p9608_p6 = scmp.lt.s32.totalorder %s62_s13, %s62_s13 }
  0x14   :  { %p9604_p5 = scmp.ne.s32.totalorder %s62_s13, %s9603_s16  ;;  %p9609_p7 = scmp.lt.s32.totalorder %s9603_s16, %s9603_s16 }
  0x16   :  { %p9610_p8 = por %p9609_p7, %p9608_p6 }
  0x18   :  { %p9611_p9 = pnand %p9610_p8, %p9604_p5 }
  0x1a   :  { %9614 = shalt.err (!%p9611_p9)
}
  0x1b   :  { %64 = dma.hbm_to_vmem [thread:$0]  %s10135_s3, 128, %s62_s13, [#allocation10]  }
  0x1c   :  { %s9623_s19 = scalar_lea.vmem %s84_s15, 128  ;;  %p9628_p11 = scmp.lt.s32.totalorder %s84_s15, %s84_s15 }
  0x1d   :  { %p9624_p10 = scmp.ne.s32.totalorder %s84_s15, %s9623_s19  ;;  %p9629_p12 = scmp.lt.s32.totalorder %s9623_s19, %s9623_s19 }
  0x1f   :  { %p9630_p13 = por %p9629_p12, %p9628_p11 }
  0x21   :  { %p9631_p0 = pnand %p9630_p13, %p9624_p10 }
  0x23   :  { %9634 = shalt.err (!%p9631_p0)
}
  0x24   :  { %86 = dma.hbm_to_vmem [thread:$0]  %s10137_s5, 128, %s84_s15, [#allocation13]  }
  0x25   :  { %s9772_s21 = smov [#allocation3]  }
  0x26   :  { %s24_s22 = sshll.u32 %s9772_s21, 4  ;;  %s25_s22 = int_to_ptr.vmem [resolvable:$true] %s24_s22 }
  0x27   :  { %s9643_s23 = scalar_lea.vmem %s25_s22, 1536  ;;  %p9648_p2 = scmp.lt.s32.totalorder %s25_s22, %s25_s22 }
  0x28   :  { %p9644_p1 = scmp.ne.s32.totalorder %s25_s22, %s9643_s23  ;;  %p9649_p3 = scmp.lt.s32.totalorder %s9643_s23, %s9643_s23 }
  0x2a   :  { %p9650_p4 = por %p9649_p3, %p9648_p2 }
  0x2c   :  { %p9651_p5 = pnand %p9650_p4, %p9644_p1 }
  0x2e   :  { %9654 = shalt.err (!%p9651_p5)
}
  0x2f   :  { %s9773_s3 = smov 768   ;;  %s9774_s24 = smov 48  }
  0x30   :  { %30 = dma.hbm_to_vmem [thread:$0]  %s10132_s0, 1536, %s25_s22, [#allocation4], %s9773_s3, %s9773_s3, %s9774_s24  }
  0x31   :  { %s9775_s27 = smov [#allocation8]  }
  0x32   :  { %s48_s28 = sshll.u32 %s9775_s27, 4  ;;  %s49_s28 = int_to_ptr.vmem [resolvable:$true] %s48_s28 }
  0x33   :  { %s9663_s5 = scalar_lea.vmem %s49_s28, 32768  ;;  %p9668_p7 = scmp.lt.s32.totalorder %s49_s28, %s49_s28 }
  0x34   :  { %p9664_p6 = scmp.ne.s32.totalorder %s49_s28, %s9663_s5  ;;  %p9669_p8 = scmp.lt.s32.totalorder %s9663_s5, %s9663_s5 }
  0x36   :  { %p9670_p9 = por %p9669_p8, %p9668_p7 }
  0x38   :  { %p9671_p10 = pnand %p9670_p9, %p9664_p6 }
  0x3a   :  { %9674 = shalt.err (!%p9671_p10)
}
  0x3b   :  { %s9776_s29 = smov 512   ;;  %s9777_s30 = smov 32  }
  0x3c   :  { %54 = dma.hbm_to_vmem [thread:$0]  %s10134_s2, 32768, %s49_s28, [#allocation7], %s9776_s29, %s9776_s29, %s9777_s30  }
  0x3d   :  { %s9778_s11 = smov [#allocation11]   ;;  %s9779_s0 = smov [#allocation14]  }
  0x3e   :  { %s70_s12 = sshll.u32 %s9778_s11, 4  ;;  %s92_s13 = sshll.u32 %s9779_s0, 4  ;;  %s71_s12 = int_to_ptr.vmem [resolvable:$true] %s70_s12  ;;  %s93_s13 = int_to_ptr.vmem [resolvable:$true] %s92_s13 }
  0x3f   :  { %s9683_s14 = scalar_lea.vmem %s71_s12, 65536  ;;  %p9688_p12 = scmp.lt.s32.totalorder %s71_s12, %s71_s12 }
  0x40   :  { %p9684_p11 = scmp.ne.s32.totalorder %s71_s12, %s9683_s14  ;;  %p9689_p13 = scmp.lt.s32.totalorder %s9683_s14, %s9683_s14 }
  0x42   :  { %p9690_p0 = por %p9689_p13, %p9688_p12 }
  0x44   :  { %p9691_p1 = pnand %p9690_p0, %p9684_p11 }
  0x46   :  { %9694 = shalt.err (!%p9691_p1)
}
  0x47   :  { %76 = dma.hbm_to_vmem [thread:$0]  %s10136_s4, 65536, %s71_s12, [#allocation10], %s9776_s29, %s9776_s29, %s9777_s30  }
  0x48   :  { %s9703_s17 = scalar_lea.vmem %s93_s13, 8192  ;;  %p9708_p3 = scmp.lt.s32.totalorder %s93_s13, %s93_s13 }
  0x49   :  { %p9704_p2 = scmp.ne.s32.totalorder %s93_s13, %s9703_s17  ;;  %p9709_p4 = scmp.lt.s32.totalorder %s9703_s17, %s9703_s17 }
  0x4b   :  { %p9710_p5 = por %p9709_p4, %p9708_p3 }
  0x4d   :  { %p9711_p6 = pnand %p9710_p5, %p9704_p2 }
  0x4f   :  { %9714 = shalt.err (!%p9711_p6)
}
  0x50   :  { %s9780_s2 = smov 64   ;;  %s9781_s18 = smov 4  }
  0x51   :  { %98 = dma.hbm_to_vmem [thread:$0]  %s10138_s6, 8192, %s93_s13, [#allocation13], %s9780_s2, %s9780_s2, %s9781_s18  }
  0x52   :  { %s9782_s20 = smov [#allocation15]  }
  0x53   :  { %s105_s21 = sshll.u32 %s9782_s20, 4  ;;  %s106_s21 = int_to_ptr.vmem [resolvable:$true] %s105_s21 }
  0x54   :  { %s9723_s22 = scalar_lea.vmem %s106_s21, 16  ;;  %s9727_s4 = scalar_lea.vmem %s106_s21, 32 }
  0x55   :  { %p9724_p7 = scmp.ne.s32.totalorder %s106_s21, %s9723_s22  ;;  %p9728_p8 = scmp.lt.s32.totalorder %s106_s21, %s106_s21 }
  0x56   :  { %p9729_p9 = scmp.lt.s32.totalorder %s9727_s4, %s9723_s22 }
  0x58   :  { %p9730_p10 = por %p9729_p9, %p9728_p8 }
  0x5a   :  { %p9731_p11 = pnand %p9730_p10, %p9724_p7 }
  0x5c   :  { %9734 = shalt.err (!%p9731_p11)
}
  0x5d   :  { %108 = dma.hbm_to_vmem [thread:$0]  %s10139_s7, 16, %s106_s21, [#allocation16]  }
  0x5e   :  { %9755 = dma.done.wait [#allocation4], 1536  }
  0x5f   :  { %9756 = vsyncadd [#allocation4], 4294965760 }
  0x60   :  { %9757 = dma.done.wait [#allocation7], 57344  }
  0x61   :  { %9758 = vsyncadd [#allocation7], 4294909952 }
  0x62   :  { %9759 = dma.done.wait [#allocation10], 65664  }
  0x63   :  { %9760 = vsyncadd [#allocation10], 4294901632 }
  0x64   :  { %9761 = dma.done.wait [#allocation13], 8320  }
  0x65   :  { %9762 = vsyncadd [#allocation13], 4294958976 }
  0x66   :  { %9763 = dma.done.wait [#allocation16], 16  }
  0x67   :  { %9764 = vsyncadd [#allocation16], 4294967280  ;;  %v9223_v0 = vld [vmem:[#allocation6 + $0xe4] ss:$16 sps:$4 sm:$0xff]   ;;  %v9227_v2 = vld [vmem:[#allocation6 + $0xe0] ss:$16 sps:$4 sm:$0xff]  }
  0x68   :  { %v9225_v1 = vld [vmem:[#allocation6 + $0x2e4] ss:$16 sps:$4 sm:$0xff]   ;;  %1324 = vmatprep.subr.bf16.mxu0 %v9223_v0  ;;  %v9228_v3 = vld [vmem:[#allocation6 + $0x2e0] ss:$16 sps:$4 sm:$0xff]   ;;  %v155_v46 = vld [vmem:[#allocation3 + $0x8] sm:$0xff]  ;;  %s9783_s6 = smov [#allocation17]  }
  0x69   :  { %1367 = vmatprep.subr.bf16.mxu1 %v9225_v1  ;;  %v9229_v4 = vld [vmem:[#allocation6 + $0xc4] ss:$16 sps:$4 sm:$0xff]   ;;  %1325 = vmatpush1.bf16.msra.mxu0 %v9227_v2  ;;  %v9233_v6 = vld [vmem:[#allocation6 + $0xc0] ss:$16 sps:$4 sm:$0xff]   ;;  %v161_v47 = vld [vmem:[#allocation3 + $0x38] sm:$0xff]  ;;  %s8075_s7 = sshll.u32 %s9783_s6, 4  ;;  %s8076_s7 = int_to_ptr.vmem [resolvable:$true] %s8075_s7 }
  0x6a   :  { %1368 = vmatpush1.bf16.msra.mxu1 %v9228_v3  ;;  %v9231_v5 = vld [vmem:[#allocation6 + $0x2c4] ss:$16 sps:$4 sm:$0xff]   ;;  %1326 = vmatprep.subr.bf16.mxu0 %v9229_v4  ;;  %v9234_v7 = vld [vmem:[#allocation6 + $0x2c0] ss:$16 sps:$4 sm:$0xff]   ;;  %v157_v48 = vld [vmem:[#allocation3 + $0x18] sm:$0xff]  ;;  %v167_v53 = vpack.c.bf16 %v161_v47, %v155_v46  ;;  %s9735_s24 = scalar_lea.vmem %s8076_s7, 256  ;;  %p9740_p13 = scmp.lt.s32.totalorder %s8076_s7, %s8076_s7 }
  0x6b   :  { %1369 = vmatprep.subr.bf16.mxu1 %v9231_v5  ;;  %v9235_v8 = vld [vmem:[#allocation6 + $0xa4] ss:$16 sps:$4 sm:$0xff]   ;;  %v9239_v10 = vld [vmem:[#allocation6 + $0xa0] ss:$16 sps:$4 sm:$0xff]   ;;  %v163_v49 = vld [vmem:[#allocation3 + $0x48] sm:$0xff]  ;;  %p9736_p12 = scmp.ne.s32.totalorder %s8076_s7, %s9735_s24  ;;  %p9741_p0 = scmp.lt.s32.totalorder %s9735_s24, %s9735_s24 }
  0x6c   :  { %v9237_v9 = vld [vmem:[#allocation6 + $0x2a4] ss:$16 sps:$4 sm:$0xff]   ;;  %v9240_v11 = vld [vmem:[#allocation6 + $0x2a0] ss:$16 sps:$4 sm:$0xff]   ;;  %v9855_v54 = vpack.c.bf16 %v163_v49, %v157_v48  ;;  %1356 = vmatprep.mubr.bf16.mxu0 %v167_v53  ;;  %v9364_v46 = vld [vmem:[#allocation6 + $0x8] ss:$16 sps:$4 sm:$0xff]  }
  0x6d   :  { %1327 = vmatpush1.bf16.msra.mxu0 %v9233_v6  ;;  %v9241_v12 = vld [vmem:[#allocation6 + $0x84] ss:$16 sps:$4 sm:$0xff]   ;;  %v9245_v14 = vld [vmem:[#allocation6 + $0x80] ss:$16 sps:$4 sm:$0xff]   ;;  %v9372_v48 = vld [vmem:[#allocation6 + $0x1ec] ss:$16 sps:$4 sm:$0xff]   ;;  %p9742_p1 = por %p9741_p0, %p9740_p13 }
  0x6e   :  { %1370 = vmatpush1.bf16.msra.mxu1 %v9234_v7  ;;  %1328 = vmatprep.subr.bf16.mxu0 %v9235_v8  ;;  %v9243_v13 = vld [vmem:[#allocation6 + $0x284] ss:$16 sps:$4 sm:$0xff]   ;;  %v9246_v15 = vld [vmem:[#allocation6 + $0x280] ss:$16 sps:$4 sm:$0xff]  }
  0x6f   :  { %1371 = vmatprep.subr.bf16.mxu1 %v9237_v9  ;;  %v9247_v16 = vld [vmem:[#allocation6 + $0x64] ss:$16 sps:$4 sm:$0xff]   ;;  %v9251_v18 = vld [vmem:[#allocation6 + $0x60] ss:$16 sps:$4 sm:$0xff]   ;;  %1399 = vmatprep.mubr.bf16.mxu1 %v9855_v54  ;;  %p9743_p2 = pnand %p9742_p1, %p9736_p12 }
  0x70   :  { %v9249_v17 = vld [vmem:[#allocation6 + $0x264] ss:$16 sps:$4 sm:$0xff]   ;;  %v9252_v19 = vld [vmem:[#allocation6 + $0x260] ss:$16 sps:$4 sm:$0xff]  }
  0x71   :  { %1329 = vmatpush1.bf16.msra.mxu0 %v9239_v10  ;;  %v9253_v20 = vld [vmem:[#allocation6 + $0x44] ss:$16 sps:$4 sm:$0xff]   ;;  %v9257_v22 = vld [vmem:[#allocation6 + $0x40] ss:$16 sps:$4 sm:$0xff]  }
  0x72   :  { %1372 = vmatpush1.bf16.msra.mxu1 %v9240_v11  ;;  %1330 = vmatprep.subr.bf16.mxu0 %v9241_v12  ;;  %v9255_v21 = vld [vmem:[#allocation6 + $0x244] ss:$16 sps:$4 sm:$0xff]   ;;  %v9258_v23 = vld [vmem:[#allocation6 + $0x240] ss:$16 sps:$4 sm:$0xff]   ;;  %v9324_v11 = vld [vmem:[#allocation6 + $0xec] ss:$16 sps:$4 sm:$0xff]  }
  0x73   :  { %1373 = vmatprep.subr.bf16.mxu1 %v9243_v13  ;;  %v9259_v24 = vld [vmem:[#allocation6 + $0x24] ss:$16 sps:$4 sm:$0xff]   ;;  %v9263_v26 = vld [vmem:[#allocation6 + $0x20] ss:$16 sps:$4 sm:$0xff]  }
  0x74   :  { %v9261_v25 = vld [vmem:[#allocation6 + $0x224] ss:$16 sps:$4 sm:$0xff]   ;;  %v9264_v27 = vld [vmem:[#allocation6 + $0x220] ss:$16 sps:$4 sm:$0xff]  }
  0x75   :  { %1331 = vmatpush1.bf16.msra.mxu0 %v9245_v14  ;;  %v9265_v28 = vld [vmem:[#allocation6 + $0x4] ss:$16 sps:$4 sm:$0xff]   ;;  %v9269_v30 = vld [vmem:[#allocation6] ss:$16 sps:$4 sm:$0xff]  }
  0x76   :  { %1374 = vmatpush1.bf16.msra.mxu1 %v9246_v15  ;;  %1332 = vmatprep.subr.bf16.mxu0 %v9247_v16  ;;  %v9267_v29 = vld [vmem:[#allocation6 + $0x204] ss:$16 sps:$4 sm:$0xff]   ;;  %v9270_v31 = vld [vmem:[#allocation6 + $0x200] ss:$16 sps:$4 sm:$0xff]   ;;  %v9322_v15 = vld [vmem:[#allocation6 + $0xe8] ss:$16 sps:$4 sm:$0xff]  }
  0x77   :  { %1375 = vmatprep.subr.bf16.mxu1 %v9249_v17  ;;  %v9271_v32 = vld [vmem:[#allocation6 + $0x1e4] ss:$16 sps:$4 sm:$0xff]   ;;  %v9275_v34 = vld [vmem:[#allocation6 + $0x1e0] ss:$16 sps:$4 sm:$0xff]   ;;  %v9330_v17 = vld [vmem:[#allocation6 + $0xcc] ss:$16 sps:$4 sm:$0xff]  }
  0x78   :  { %v9273_v33 = vld [vmem:[#allocation6 + $0x3e4] ss:$16 sps:$4 sm:$0xff]   ;;  %v9276_v35 = vld [vmem:[#allocation6 + $0x3e0] ss:$16 sps:$4 sm:$0xff]  }
  0x79   :  { %1333 = vmatpush1.bf16.msra.mxu0 %v9251_v18  ;;  %v9277_v36 = vld [vmem:[#allocation6 + $0x1c4] ss:$16 sps:$4 sm:$0xff]   ;;  %v9281_v38 = vld [vmem:[#allocation6 + $0x1c0] ss:$16 sps:$4 sm:$0xff]  }
  0x7a   :  { %1376 = vmatpush1.bf16.msra.mxu1 %v9252_v19  ;;  %1334 = vmatprep.subr.bf16.mxu0 %v9253_v20  ;;  %v9279_v37 = vld [vmem:[#allocation6 + $0x3c4] ss:$16 sps:$4 sm:$0xff]   ;;  %v9282_v39 = vld [vmem:[#allocation6 + $0x3c0] ss:$16 sps:$4 sm:$0xff]   ;;  %v9328_v19 = vld [vmem:[#allocation6 + $0xc8] ss:$16 sps:$4 sm:$0xff]  }
  0x7b   :  { %1377 = vmatprep.subr.bf16.mxu1 %v9255_v21  ;;  %v9283_v40 = vld [vmem:[#allocation6 + $0x1a4] ss:$16 sps:$4 sm:$0xff]   ;;  %v9287_v42 = vld [vmem:[#allocation6 + $0x1a0] ss:$16 sps:$4 sm:$0xff]   ;;  %v9336_v21 = vld [vmem:[#allocation6 + $0xac] ss:$16 sps:$4 sm:$0xff]  }
  0x7c   :  { %v9285_v41 = vld [vmem:[#allocation6 + $0x3a4] ss:$16 sps:$4 sm:$0xff]   ;;  %v9288_v43 = vld [vmem:[#allocation6 + $0x3a0] ss:$16 sps:$4 sm:$0xff]  }
  0x7d   :  { %1335 = vmatpush1.bf16.msra.mxu0 %v9257_v22  ;;  %v9289_v44 = vld [vmem:[#allocation6 + $0x184] ss:$16 sps:$4 sm:$0xff]   ;;  %v9293_v50 = vld [vmem:[#allocation6 + $0x180] ss:$16 sps:$4 sm:$0xff]  }
  0x7e   :  { %1378 = vmatpush1.bf16.msra.mxu1 %v9258_v23  ;;  %1336 = vmatprep.subr.bf16.mxu0 %v9259_v24  ;;  %v9291_v45 = vld [vmem:[#allocation6 + $0x384] ss:$16 sps:$4 sm:$0xff]   ;;  %v9294_v51 = vld [vmem:[#allocation6 + $0x380] ss:$16 sps:$4 sm:$0xff]   ;;  %v9334_v23 = vld [vmem:[#allocation6 + $0xa8] ss:$16 sps:$4 sm:$0xff]  }
  0x7f   :  { %1379 = vmatprep.subr.bf16.mxu1 %v9261_v25  ;;  %v9295_v52 = vld [vmem:[#allocation6 + $0x164] ss:$16 sps:$4 sm:$0xff]   ;;  %v9299_v56 = vld [vmem:[#allocation6 + $0x160] ss:$16 sps:$4 sm:$0xff]   ;;  %v9342_v25 = vld [vmem:[#allocation6 + $0x8c] ss:$16 sps:$4 sm:$0xff]  }
  0x80   :  { %v9297_v55 = vld [vmem:[#allocation6 + $0x364] ss:$16 sps:$4 sm:$0xff]   ;;  %v9300_v57 = vld [vmem:[#allocation6 + $0x360] ss:$16 sps:$4 sm:$0xff]  }
  0x81   :  { %1337 = vmatpush1.bf16.msra.mxu0 %v9263_v26  ;;  %v9301_v58 = vld [vmem:[#allocation6 + $0x144] ss:$16 sps:$4 sm:$0xff]   ;;  %v9305_v60 = vld [vmem:[#allocation6 + $0x140] ss:$16 sps:$4 sm:$0xff]  }
  0x82   :  { %1380 = vmatpush1.bf16.msra.mxu1 %v9264_v27  ;;  %1338 = vmatprep.subr.bf16.mxu0 %v9265_v28  ;;  %v9303_v59 = vld [vmem:[#allocation6 + $0x344] ss:$16 sps:$4 sm:$0xff]   ;;  %v9306_v61 = vld [vmem:[#allocation6 + $0x340] ss:$16 sps:$4 sm:$0xff]   ;;  %v9340_v27 = vld [vmem:[#allocation6 + $0x88] ss:$16 sps:$4 sm:$0xff]  }
  0x83   :  { %1381 = vmatprep.subr.bf16.mxu1 %v9267_v29  ;;  %v9307_v62 = vld [vmem:[#allocation6 + $0x124] ss:$16 sps:$4 sm:$0xff]   ;;  %v9311_v0 = vld [vmem:[#allocation6 + $0x120] ss:$16 sps:$4 sm:$0xff]   ;;  %v9348_v29 = vld [vmem:[#allocation6 + $0x6c] ss:$16 sps:$4 sm:$0xff]  }
  0x84   :  { %v9309_v63 = vld [vmem:[#allocation6 + $0x324] ss:$16 sps:$4 sm:$0xff]   ;;  %v9312_v1 = vld [vmem:[#allocation6 + $0x320] ss:$16 sps:$4 sm:$0xff]  }
  0x85   :  { %1339 = vmatpush1.bf16.msra.mxu0 %v9269_v30  ;;  %v9313_v2 = vld [vmem:[#allocation6 + $0x104] ss:$16 sps:$4 sm:$0xff]   ;;  %v9317_v4 = vld [vmem:[#allocation6 + $0x100] ss:$16 sps:$4 sm:$0xff]  }
  0x86   :  { %1382 = vmatpush1.bf16.msra.mxu1 %v9270_v31  ;;  %1340 = vmatprep.subr.bf16.mxu0 %v9271_v32  ;;  %v9315_v3 = vld [vmem:[#allocation6 + $0x304] ss:$16 sps:$4 sm:$0xff]   ;;  %v9318_v5 = vld [vmem:[#allocation6 + $0x300] ss:$16 sps:$4 sm:$0xff]   ;;  %v9346_v31 = vld [vmem:[#allocation6 + $0x68] ss:$16 sps:$4 sm:$0xff]  }
  0x87   :  { %1383 = vmatprep.subr.bf16.mxu1 %v9273_v33  ;;  %v154_v6 = vld [vmem:[#allocation3] sm:$0xff]  ;;  %v160_v7 = vld [vmem:[#allocation3 + $0x30] sm:$0xff]  ;;  %v9354_v33 = vld [vmem:[#allocation6 + $0x4c] ss:$16 sps:$4 sm:$0xff]  }
  0x88   :  { %v156_v8 = vld [vmem:[#allocation3 + $0x10] sm:$0xff]  ;;  %v162_v9 = vld [vmem:[#allocation3 + $0x40] sm:$0xff]  ;;  %v9858_v12 = vpack.c.bf16 %v160_v7, %v154_v6  ;;  %v9400_v7 = vld [vmem:[#allocation6 + $0x148] ss:$16 sps:$4 sm:$0xff]  }
  0x89   :  { %1341 = vmatpush2.bf16.msra.mxu0 %v9275_v34  ;;  %v9321_v10 = vld [vmem:[#allocation6 + $0x4e4] ss:$16 sps:$4 sm:$0xff]   ;;  %v9860_v13 = vpack.c.bf16 %v162_v9, %v156_v8  ;;  %v9319_v14 = vld [vmem:[#allocation6 + $0x4e0] ss:$16 sps:$4 sm:$0xff]   ;;  %v9408_v9 = vld [vmem:[#allocation6 + $0x12c] ss:$16 sps:$4 sm:$0xff]  }
  0x8a   :  { %1384 = vmatpush2.bf16.msra.mxu1 %v9276_v35  ;;  %1342 = vmatprep.subr.bf16.mxu0 %v9277_v36  ;;  %v9327_v16 = vld [vmem:[#allocation6 + $0x4c4] ss:$16 sps:$4 sm:$0xff]   ;;  %v9325_v18 = vld [vmem:[#allocation6 + $0x4c0] ss:$16 sps:$4 sm:$0xff]   ;;  %v9352_v35 = vld [vmem:[#allocation6 + $0x48] ss:$16 sps:$4 sm:$0xff]  }
  0x8b   :  { %1385 = vmatprep.subr.bf16.mxu1 %v9279_v37  ;;  %v9333_v20 = vld [vmem:[#allocation6 + $0x4a4] ss:$16 sps:$4 sm:$0xff]   ;;  %v9331_v22 = vld [vmem:[#allocation6 + $0x4a0] ss:$16 sps:$4 sm:$0xff]   ;;  %v9360_v37 = vld [vmem:[#allocation6 + $0x2c] ss:$16 sps:$4 sm:$0xff]  }
  0x8c   :  { %v9339_v24 = vld [vmem:[#allocation6 + $0x484] ss:$16 sps:$4 sm:$0xff]   ;;  %v9337_v26 = vld [vmem:[#allocation6 + $0x480] ss:$16 sps:$4 sm:$0xff]  }
  0x8d   :  { %1343 = vmatpush2.bf16.msra.mxu0 %v9281_v38  ;;  %v9345_v28 = vld [vmem:[#allocation6 + $0x464] ss:$16 sps:$4 sm:$0xff]   ;;  %v9343_v30 = vld [vmem:[#allocation6 + $0x460] ss:$16 sps:$4 sm:$0xff]  }
  0x8e   :  { %1386 = vmatpush2.bf16.msra.mxu1 %v9282_v39  ;;  %1344 = vmatprep.subr.bf16.mxu0 %v9283_v40  ;;  %v9351_v32 = vld [vmem:[#allocation6 + $0x444] ss:$16 sps:$4 sm:$0xff]   ;;  %v9349_v34 = vld [vmem:[#allocation6 + $0x440] ss:$16 sps:$4 sm:$0xff]   ;;  %v9358_v39 = vld [vmem:[#allocation6 + $0x28] ss:$16 sps:$4 sm:$0xff]  }
  0x8f   :  { %1387 = vmatprep.subr.bf16.mxu1 %v9285_v41  ;;  %v9357_v36 = vld [vmem:[#allocation6 + $0x424] ss:$16 sps:$4 sm:$0xff]   ;;  %v9355_v38 = vld [vmem:[#allocation6 + $0x420] ss:$16 sps:$4 sm:$0xff]   ;;  %v159_v41 = vld [vmem:[#allocation3 + $0x28] sm:$0xff] }
  0x90   :  { %v9363_v40 = vld [vmem:[#allocation6 + $0x404] ss:$16 sps:$4 sm:$0xff]   ;;  %v9367_v49 = vld [vmem:[#allocation6 + $0x5e0] ss:$16 sps:$4 sm:$0xff]  }
  0x91   :  { %1345 = vmatpush2.bf16.msra.mxu0 %v9287_v42  ;;  %v165_v42 = vld [vmem:[#allocation3 + $0x58] sm:$0xff]  ;;  %v9369_v47 = vld [vmem:[#allocation6 + $0x5e4] ss:$16 sps:$4 sm:$0xff]   ;;  %v9397_v6 = vld [vmem:[#allocation6 + $0x540] ss:$16 sps:$4 sm:$0xff]  }
  0x92   :  { %1388 = vmatpush2.bf16.msra.mxu1 %v9288_v43  ;;  %1346 = vmatprep.subr.bf16.mxu0 %v9289_v44  ;;  %v9366_v43 = vld [vmem:[#allocation6 + $0xc] ss:$16 sps:$4 sm:$0xff]   ;;  %v9864_v44 = vpack.c.bf16 %v165_v42, %v159_v41  ;;  %v9405_v8 = vld [vmem:[#allocation6 + $0x524] ss:$16 sps:$4 sm:$0xff]   ;;  %v9445_v41 = vld [vmem:[#allocation6 + $0x248] ss:$16 sps:$4 sm:$0xff]  }
  0x93   :  { %1389 = vmatprep.subr.bf16.mxu1 %v9291_v45  ;;  %v9361_v45 = vld [vmem:[#allocation6 + $0x400] ss:$16 sps:$4 sm:$0xff]   ;;  %v9448_v42 = vld [vmem:[#allocation6 + $0x448] ss:$16 sps:$4 sm:$0xff]  }
  0x95   :  { %1347 = vmatpush2.bf16.msra.mxu0 %v9293_v50  ;;  %v9370_v50 = vld [vmem:[#allocation6 + $0x1e8] ss:$16 sps:$4 sm:$0xff]  }
  0x96   :  { %1390 = vmatpush2.bf16.msra.mxu1 %v9294_v51  ;;  %1348 = vmatprep.subr.bf16.mxu0 %v9295_v52  ;;  %v9375_v51 = vld [vmem:[#allocation6 + $0x5c4] ss:$16 sps:$4 sm:$0xff]   ;;  %v9378_v52 = vld [vmem:[#allocation6 + $0x1cc] ss:$16 sps:$4 sm:$0xff]  }
  0x97   :  { %1391 = vmatprep.subr.bf16.mxu1 %v9297_v55  ;;  %v9376_v55 = vld [vmem:[#allocation6 + $0x1c8] ss:$16 sps:$4 sm:$0xff]  }
  0x99   :  { %1349 = vmatpush2.bf16.msra.mxu0 %v9299_v56  ;;  %v9381_v56 = vld [vmem:[#allocation6 + $0x5a4] ss:$16 sps:$4 sm:$0xff]  }
  0x9a   :  { %1392 = vmatpush2.bf16.msra.mxu1 %v9300_v57  ;;  %1350 = vmatprep.subr.bf16.mxu0 %v9301_v58  ;;  %v9384_v57 = vld [vmem:[#allocation6 + $0x1ac] ss:$16 sps:$4 sm:$0xff]   ;;  %v9379_v58 = vld [vmem:[#allocation6 + $0x5a0] ss:$16 sps:$4 sm:$0xff]  }
  0x9b   :  { %1393 = vmatprep.subr.bf16.mxu1 %v9303_v59  ;;  %v9382_v59 = vld [vmem:[#allocation6 + $0x1a8] ss:$16 sps:$4 sm:$0xff]  }
  0x9d   :  { %1351 = vmatpush2.bf16.msra.mxu0 %v9305_v60  ;;  %v9387_v60 = vld [vmem:[#allocation6 + $0x584] ss:$16 sps:$4 sm:$0xff]  }
  0x9e   :  { %1394 = vmatpush2.bf16.msra.mxu1 %v9306_v61  ;;  %1352 = vmatprep.subr.bf16.mxu0 %v9307_v62  ;;  %v9390_v61 = vld [vmem:[#allocation6 + $0x18c] ss:$16 sps:$4 sm:$0xff]   ;;  %v9385_v62 = vld [vmem:[#allocation6 + $0x580] ss:$16 sps:$4 sm:$0xff]  }
  0x9f   :  { %1395 = vmatprep.subr.bf16.mxu1 %v9309_v63  ;;  %v9388_v63 = vld [vmem:[#allocation6 + $0x188] ss:$16 sps:$4 sm:$0xff]  }
  0xa1   :  { %1353 = vmatpush2.bf16.msra.mxu0 %v9311_v0  ;;  %v9393_v0 = vld [vmem:[#allocation6 + $0x564] ss:$16 sps:$4 sm:$0xff]  }
  0xa2   :  { %1396 = vmatpush2.bf16.msra.mxu1 %v9312_v1  ;;  %1354 = vmatprep.subr.bf16.mxu0 %v9313_v2  ;;  %v9396_v1 = vld [vmem:[#allocation6 + $0x16c] ss:$16 sps:$4 sm:$0xff]   ;;  %v9391_v2 = vld [vmem:[#allocation6 + $0x560] ss:$16 sps:$4 sm:$0xff]  }
  0xa3   :  { %1397 = vmatprep.subr.bf16.mxu1 %v9315_v3  ;;  %v9394_v3 = vld [vmem:[#allocation6 + $0x168] ss:$16 sps:$4 sm:$0xff]  }
  0xa5   :  { %1355 = vmatpush2.bf16.msra.mxu0 %v9317_v4  ;;  %v9399_v4 = vld [vmem:[#allocation6 + $0x544] ss:$16 sps:$4 sm:$0xff]  }
  0xa6   :  { %1398 = vmatpush2.bf16.msra.mxu1 %v9318_v5  ;;  %1410 = vmatprep.subr.bf16.mxu0 %v9321_v10  ;;  %v9402_v5 = vld [vmem:[#allocation6 + $0x14c] ss:$16 sps:$4 sm:$0xff]   ;;  %v9403_v10 = vld [vmem:[#allocation6 + $0x520] ss:$16 sps:$4 sm:$0xff]  }
  0xa7   :  { %1453 = vmatprep.subr.bf16.mxu1 %v9324_v11  ;;  %v9406_v11 = vld [vmem:[#allocation6 + $0x128] ss:$16 sps:$4 sm:$0xff]  }
  0xa8   :  { %1357 = vmatmul.mubr.bf16.vlgmr.msra.gmra.mxu0 %v9858_v12 }
  0xa9   :  { %1400 = vmatmul.mubr.bf16.vlgmr.msra.gmra.mxu1 %v9860_v13  ;;  %1411 = vmatpush1.bf16.msra.mxu0 %v9319_v14  ;;  %v9411_v14 = vld [vmem:[#allocation6 + $0x504] ss:$16 sps:$4 sm:$0xff]  }
  0xaa   :  { %1454 = vmatpush1.bf16.msra.mxu1 %v9322_v15  ;;  %1412 = vmatprep.subr.bf16.mxu0 %v9327_v16  ;;  %v9414_v15 = vld [vmem:[#allocation6 + $0x10c] ss:$16 sps:$4 sm:$0xff]   ;;  %v9409_v16 = vld [vmem:[#allocation6 + $0x500] ss:$16 sps:$4 sm:$0xff]  }
  0xab   :  { %1455 = vmatprep.subr.bf16.mxu1 %v9330_v17  ;;  %1485 = vmatprep.mubr.bf16.mxu1 %v167_v53  ;;  %v9373_v53 = vld [vmem:[#allocation6 + $0x5c0] ss:$16 sps:$4 sm:$0xff]   ;;  %v9412_v17 = vld [vmem:[#allocation6 + $0x108] ss:$16 sps:$4 sm:$0xff]  }
  0xac   :  { %1442 = vmatprep.mubr.bf16.mxu0 %v9864_v44 }
  0xad   :  { %1413 = vmatpush1.bf16.msra.mxu0 %v9325_v18  ;;  %v158_v18 = vld [vmem:[#allocation3 + $0x20] sm:$0xff] }
  0xae   :  { %1456 = vmatpush1.bf16.msra.mxu1 %v9328_v19  ;;  %1414 = vmatprep.subr.bf16.mxu0 %v9333_v20  ;;  %v164_v19 = vld [vmem:[#allocation3 + $0x50] sm:$0xff]  ;;  %v9417_v20 = vld [vmem:[#allocation6 + $0x2ec] ss:$16 sps:$4 sm:$0xff]  }
  0xaf   :  { %1457 = vmatprep.subr.bf16.mxu1 %v9336_v21  ;;  %v9420_v21 = vld [vmem:[#allocation6 + $0x4ec] ss:$16 sps:$4 sm:$0xff]  }
  0xb1   :  { %1415 = vmatpush1.bf16.msra.mxu0 %v9331_v22  ;;  %v9867_v22 = vpack.c.bf16 %v164_v19, %v158_v18  ;;  %v9507_v18 = vld [vmem:[#allocation6 + $0x30c] ss:$16 sps:$4 sm:$0xff]  }
  0xb2   :  { %1458 = vmatpush1.bf16.msra.mxu1 %v9334_v23  ;;  %1416 = vmatprep.subr.bf16.mxu0 %v9339_v24  ;;  %v9415_v23 = vld [vmem:[#allocation6 + $0x2e8] ss:$16 sps:$4 sm:$0xff]   ;;  %v9510_v19 = vld [vmem:[#allocation6 + $0x50c] ss:$16 sps:$4 sm:$0xff]  }
  0xb3   :  { %1459 = vmatprep.subr.bf16.mxu1 %v9342_v25  ;;  %v9418_v24 = vld [vmem:[#allocation6 + $0x4e8] ss:$16 sps:$4 sm:$0xff]   ;;  %v9423_v25 = vld [vmem:[#allocation6 + $0x2cc] ss:$16 sps:$4 sm:$0xff]  }
  0xb5   :  { %1417 = vmatpush1.bf16.msra.mxu0 %v9337_v26  ;;  %v9426_v26 = vld [vmem:[#allocation6 + $0x4cc] ss:$16 sps:$4 sm:$0xff]  }
  0xb6   :  { %1460 = vmatpush1.bf16.msra.mxu1 %v9340_v27  ;;  %1418 = vmatprep.subr.bf16.mxu0 %v9345_v28  ;;  %v9421_v27 = vld [vmem:[#allocation6 + $0x2c8] ss:$16 sps:$4 sm:$0xff]  }
  0xb7   :  { %1461 = vmatprep.subr.bf16.mxu1 %v9348_v29  ;;  %v9424_v28 = vld [vmem:[#allocation6 + $0x4c8] ss:$16 sps:$4 sm:$0xff]   ;;  %v9429_v29 = vld [vmem:[#allocation6 + $0x2ac] ss:$16 sps:$4 sm:$0xff]  }
  0xb9   :  { %1419 = vmatpush1.bf16.msra.mxu0 %v9343_v30  ;;  %v9432_v30 = vld [vmem:[#allocation6 + $0x4ac] ss:$16 sps:$4 sm:$0xff]  }
  0xba   :  { %1462 = vmatpush1.bf16.msra.mxu1 %v9346_v31  ;;  %1420 = vmatprep.subr.bf16.mxu0 %v9351_v32  ;;  %v9427_v31 = vld [vmem:[#allocation6 + $0x2a8] ss:$16 sps:$4 sm:$0xff]  }
  0xbb   :  { %1463 = vmatprep.subr.bf16.mxu1 %v9354_v33  ;;  %v9430_v32 = vld [vmem:[#allocation6 + $0x4a8] ss:$16 sps:$4 sm:$0xff]   ;;  %v9435_v33 = vld [vmem:[#allocation6 + $0x28c] ss:$16 sps:$4 sm:$0xff]  }
  0xbd   :  { %1421 = vmatpush1.bf16.msra.mxu0 %v9349_v34  ;;  %v9438_v34 = vld [vmem:[#allocation6 + $0x48c] ss:$16 sps:$4 sm:$0xff]  }
  0xbe   :  { %1464 = vmatpush1.bf16.msra.mxu1 %v9352_v35  ;;  %1422 = vmatprep.subr.bf16.mxu0 %v9357_v36  ;;  %v9436_v35 = vld [vmem:[#allocation6 + $0x488] ss:$16 sps:$4 sm:$0xff]   ;;  %v9441_v36 = vld [vmem:[#allocation6 + $0x26c] ss:$16 sps:$4 sm:$0xff]  }
  0xbf   :  { %1465 = vmatprep.subr.bf16.mxu1 %v9360_v37  ;;  %v9444_v37 = vld [vmem:[#allocation6 + $0x46c] ss:$16 sps:$4 sm:$0xff]  }
  0xc1   :  { %1423 = vmatpush1.bf16.msra.mxu0 %v9355_v38  ;;  %v9439_v38 = vld [vmem:[#allocation6 + $0x268] ss:$16 sps:$4 sm:$0xff]  }
  0xc2   :  { %1466 = vmatpush1.bf16.msra.mxu1 %v9358_v39  ;;  %1424 = vmatprep.subr.bf16.mxu0 %v9363_v40  ;;  %v9447_v39 = vld [vmem:[#allocation6 + $0x24c] ss:$16 sps:$4 sm:$0xff]  }
  0xc3   :  { %1467 = vmatprep.subr.bf16.mxu1 %v9366_v43  ;;  %v9450_v40 = vld [vmem:[#allocation6 + $0x44c] ss:$16 sps:$4 sm:$0xff]  }
  0xc4   :  { %v9453_v43 = vld [vmem:[#allocation6 + $0x22c] ss:$16 sps:$4 sm:$0xff]  }
  0xc5   :  { %1425 = vmatpush1.bf16.msra.mxu0 %v9361_v45  ;;  %v9451_v45 = vld [vmem:[#allocation6 + $0x228] ss:$16 sps:$4 sm:$0xff]  }
  0xc6   :  { %1468 = vmatpush1.bf16.msra.mxu1 %v9364_v46  ;;  %1426 = vmatprep.subr.bf16.mxu0 %v9369_v47  ;;  %v9454_v46 = vld [vmem:[#allocation6 + $0x428] ss:$16 sps:$4 sm:$0xff]   ;;  %v9459_v47 = vld [vmem:[#allocation6 + $0x20c] ss:$16 sps:$4 sm:$0xff]  }
  0xc7   :  { %1469 = vmatprep.subr.bf16.mxu1 %v9372_v48  ;;  %v9462_v48 = vld [vmem:[#allocation6 + $0x40c] ss:$16 sps:$4 sm:$0xff]  }
  0xc9   :  { %1427 = vmatpush2.bf16.msra.mxu0 %v9367_v49  ;;  %v9457_v49 = vld [vmem:[#allocation6 + $0x208] ss:$16 sps:$4 sm:$0xff]  }
  0xca   :  { %1470 = vmatpush2.bf16.msra.mxu1 %v9370_v50  ;;  %1428 = vmatprep.subr.bf16.mxu0 %v9375_v51  ;;  %v9460_v50 = vld [vmem:[#allocation6 + $0x408] ss:$16 sps:$4 sm:$0xff]   ;;  %v9465_v51 = vld [vmem:[#allocation6 + $0x3ec] ss:$16 sps:$4 sm:$0xff]  }
  0xcb   :  { %1471 = vmatprep.subr.bf16.mxu1 %v9378_v52  ;;  %v9468_v52 = vld [vmem:[#allocation6 + $0x5ec] ss:$16 sps:$4 sm:$0xff]  }
  0xcd   :  { %1429 = vmatpush2.bf16.msra.mxu0 %v9373_v53  ;;  %v9463_v53 = vld [vmem:[#allocation6 + $0x3e8] ss:$16 sps:$4 sm:$0xff]  }
  0xce   :  { %1472 = vmatpush2.bf16.msra.mxu1 %v9376_v55  ;;  %1430 = vmatprep.subr.bf16.mxu0 %v9381_v56  ;;  %v9466_v55 = vld [vmem:[#allocation6 + $0x5e8] ss:$16 sps:$4 sm:$0xff]   ;;  %v9471_v56 = vld [vmem:[#allocation6 + $0x3cc] ss:$16 sps:$4 sm:$0xff]  }
  0xcf   :  { %1473 = vmatprep.subr.bf16.mxu1 %v9384_v57  ;;  %v9474_v57 = vld [vmem:[#allocation6 + $0x5cc] ss:$16 sps:$4 sm:$0xff]  }
  0xd1   :  { %1431 = vmatpush2.bf16.msra.mxu0 %v9379_v58  ;;  %v9469_v58 = vld [vmem:[#allocation6 + $0x3c8] ss:$16 sps:$4 sm:$0xff]  }
  0xd2   :  { %1474 = vmatpush2.bf16.msra.mxu1 %v9382_v59  ;;  %1432 = vmatprep.subr.bf16.mxu0 %v9387_v60  ;;  %v9472_v59 = vld [vmem:[#allocation6 + $0x5c8] ss:$16 sps:$4 sm:$0xff]   ;;  %v9477_v60 = vld [vmem:[#allocation6 + $0x3ac] ss:$16 sps:$4 sm:$0xff]  }
  0xd3   :  { %1475 = vmatprep.subr.bf16.mxu1 %v9390_v61  ;;  %v9480_v61 = vld [vmem:[#allocation6 + $0x5ac] ss:$16 sps:$4 sm:$0xff]  }
  0xd5   :  { %1433 = vmatpush2.bf16.msra.mxu0 %v9385_v62  ;;  %v9475_v62 = vld [vmem:[#allocation6 + $0x3a8] ss:$16 sps:$4 sm:$0xff]  }
  0xd6   :  { %1476 = vmatpush2.bf16.msra.mxu1 %v9388_v63  ;;  %1434 = vmatprep.subr.bf16.mxu0 %v9393_v0  ;;  %v9478_v63 = vld [vmem:[#allocation6 + $0x5a8] ss:$16 sps:$4 sm:$0xff]   ;;  %v9483_v0 = vld [vmem:[#allocation6 + $0x38c] ss:$16 sps:$4 sm:$0xff]  }
  0xd7   :  { %1477 = vmatprep.subr.bf16.mxu1 %v9396_v1  ;;  %v9486_v1 = vld [vmem:[#allocation6 + $0x58c] ss:$16 sps:$4 sm:$0xff]  }
  0xd9   :  { %1435 = vmatpush2.bf16.msra.mxu0 %v9391_v2  ;;  %v9481_v2 = vld [vmem:[#allocation6 + $0x388] ss:$16 sps:$4 sm:$0xff]  }
  0xda   :  { %1478 = vmatpush2.bf16.msra.mxu1 %v9394_v3  ;;  %1436 = vmatprep.subr.bf16.mxu0 %v9399_v4  ;;  %v9484_v3 = vld [vmem:[#allocation6 + $0x588] ss:$16 sps:$4 sm:$0xff]   ;;  %v9489_v4 = vld [vmem:[#allocation6 + $0x36c] ss:$16 sps:$4 sm:$0xff]  }
  0xdb   :  { %1479 = vmatprep.subr.bf16.mxu1 %v9402_v5  ;;  %v9492_v5 = vld [vmem:[#allocation6 + $0x56c] ss:$16 sps:$4 sm:$0xff]  }
  0xdd   :  { %1437 = vmatpush2.bf16.msra.mxu0 %v9397_v6  ;;  %v9487_v6 = vld [vmem:[#allocation6 + $0x368] ss:$16 sps:$4 sm:$0xff]  }
  0xde   :  { %1480 = vmatpush2.bf16.msra.mxu1 %v9400_v7  ;;  %1438 = vmatprep.subr.bf16.mxu0 %v9405_v8  ;;  %v9490_v7 = vld [vmem:[#allocation6 + $0x568] ss:$16 sps:$4 sm:$0xff]   ;;  %v9495_v8 = vld [vmem:[#allocation6 + $0x34c] ss:$16 sps:$4 sm:$0xff]  }
  0xdf   :  { %1481 = vmatprep.subr.bf16.mxu1 %v9408_v9  ;;  %v9498_v9 = vld [vmem:[#allocation6 + $0x54c] ss:$16 sps:$4 sm:$0xff]  }
  0xe1   :  { %1439 = vmatpush2.bf16.msra.mxu0 %v9403_v10  ;;  %v9493_v10 = vld [vmem:[#allocation6 + $0x348] ss:$16 sps:$4 sm:$0xff]  }
  0xe2   :  { %1482 = vmatpush2.bf16.msra.mxu1 %v9406_v11  ;;  %1440 = vmatprep.subr.bf16.mxu0 %v9411_v14  ;;  %v9496_v11 = vld [vmem:[#allocation6 + $0x548] ss:$16 sps:$4 sm:$0xff]   ;;  %v9501_v14 = vld [vmem:[#allocation6 + $0x32c] ss:$16 sps:$4 sm:$0xff]  }
  0xe3   :  { %1483 = vmatprep.subr.bf16.mxu1 %v9414_v15  ;;  %v9504_v15 = vld [vmem:[#allocation6 + $0x52c] ss:$16 sps:$4 sm:$0xff]  }
  0xe5   :  { %1441 = vmatpush2.bf16.msra.mxu0 %v9409_v16  ;;  %v9499_v16 = vld [vmem:[#allocation6 + $0x328] ss:$16 sps:$4 sm:$0xff]  }
  0xe6   :  { %1484 = vmatpush2.bf16.msra.mxu1 %v9412_v17  ;;  %1496 = vmatprep.subr.bf16.mxu0 %v9417_v20  ;;  %v9502_v17 = vld [vmem:[#allocation6 + $0x528] ss:$16 sps:$4 sm:$0xff]   ;;  %v1669_v20 = vld [vmem:[#allocation8 + $0x1c0] sm:$0xff] }
  0xe7   :  { %1539 = vmatprep.subr.bf16.mxu1 %v9420_v21  ;;  %v1673_v21 = vld [vmem:[#allocation8 + $0x1e0] sm:$0xff] }
  0xe8   :  { %1443 = vmatmul.mubr.bf16.vlgmr.msra.gmra.mxu0 %v9867_v22 }
  0xe9   :  { %1486 = vmatmul.mubr.bf16.vlgmr.msra.gmra.mxu1 %v9858_v12  ;;  %1497 = vmatpush1.bf16.msra.mxu0 %v9415_v23  ;;  %v9433_v12 = vld [vmem:[#allocation6 + $0x288] ss:$16 sps:$4 sm:$0xff]  }
  0xea   :  { %1540 = vmatpush1.bf16.msra.mxu1 %v9418_v24  ;;  %1498 = vmatprep.subr.bf16.mxu0 %v9423_v25  ;;  %v9505_v23 = vld [vmem:[#allocation6 + $0x308] ss:$16 sps:$4 sm:$0xff]   ;;  %v8340_v25 = vcombine.high %v1669_v20, %v1673_v21 }
  0xeb   :  { %1541 = vmatprep.subr.bf16.mxu1 %v9426_v26  ;;  %1528 = vmatprep.mubr.bf16.mxu0 %v9855_v54  ;;  %v9442_v54 = vld [vmem:[#allocation6 + $0x468] ss:$16 sps:$4 sm:$0xff]   ;;  %v1661_v26 = vld [vmem:[#allocation8 + $0x180] sm:$0xff] }
  0xec   :  { %1571 = vmatprep.mubr.bf16.mxu1 %v9864_v44  ;;  %v9456_v44 = vld [vmem:[#allocation6 + $0x42c] ss:$16 sps:$4 sm:$0xff]   ;;  %v9508_v24 = vld [vmem:[#allocation6 + $0x508] ss:$16 sps:$4 sm:$0xff]  }
  0xed   :  { %1499 = vmatpush1.bf16.msra.mxu0 %v9421_v27  ;;  %v1665_v27 = vld [vmem:[#allocation8 + $0x1a0] sm:$0xff] }
  0xee   :  { %1542 = vmatpush1.bf16.msra.mxu1 %v9424_v28  ;;  %1500 = vmatprep.subr.bf16.mxu0 %v9429_v29  ;;  %v8339_v28 = vcombine.low %v1669_v20, %v1673_v21  ;;  %v8332_v29 = vcombine.high %v1661_v26, %v1665_v27  ;;  %v1717_v20 = vld [vmem:[#allocation8 + $0x340] sm:$0xff] }
  0xef   :  { %1543 = vmatprep.subr.bf16.mxu1 %v9432_v30  ;;  %v1653_v30 = vld [vmem:[#allocation8 + $0x140] sm:$0xff] }
  0xf0   :  { %v1721_v21 = vld [vmem:[#allocation8 + $0x360] sm:$0xff] }
  0xf1   :  { %1501 = vmatpush1.bf16.msra.mxu0 %v9427_v31  ;;  %v1657_v31 = vld [vmem:[#allocation8 + $0x160] sm:$0xff] }
  0xf2   :  { %1544 = vmatpush1.bf16.msra.mxu1 %v9430_v32  ;;  %1502 = vmatprep.subr.bf16.mxu0 %v9435_v33  ;;  %v8331_v32 = vcombine.low %v1661_v26, %v1665_v27  ;;  %v8324_v33 = vcombine.high %v1653_v30, %v1657_v31 }
  0xf3   :  { %1545 = vmatprep.subr.bf16.mxu1 %v9438_v34  ;;  %v1645_v34 = vld [vmem:[#allocation8 + $0x100] sm:$0xff] }
  0xf5   :  { %1503 = vmatpush1.bf16.msra.mxu0 %v9433_v12  ;;  %v1649_v12 = vld [vmem:[#allocation8 + $0x120] sm:$0xff] }
  0xf6   :  { %1546 = vmatpush1.bf16.msra.mxu1 %v9436_v35  ;;  %1504 = vmatprep.subr.bf16.mxu0 %v9441_v36  ;;  %v8323_v35 = vcombine.low %v1653_v30, %v1657_v31  ;;  %v8316_v36 = vcombine.high %v1645_v34, %v1649_v12  ;;  %v1713_v30 = vld [vmem:[#allocation8 + $0x320] sm:$0xff] }
  0xf7   :  { %1547 = vmatprep.subr.bf16.mxu1 %v9444_v37  ;;  %v1637_v37 = vld [vmem:[#allocation8 + $0xc0] sm:$0xff] }
  0xf8   :  { %v1749_v31 = vld [vmem:[#allocation8 + $0x440] sm:$0xff] }
  0xf9   :  { %1505 = vmatpush1.bf16.msra.mxu0 %v9439_v38  ;;  %v1641_v38 = vld [vmem:[#allocation8 + $0xe0] sm:$0xff] }
  0xfa   :  { %1548 = vmatpush1.bf16.msra.mxu1 %v9442_v54  ;;  %1506 = vmatprep.subr.bf16.mxu0 %v9447_v39  ;;  %v9875_v54 = vld [vmem:[#allocation8 + $0x1c8] sm:$0xff] }
  0xfb   :  { %1549 = vmatprep.subr.bf16.mxu1 %v9450_v40  ;;  %v9877_v39 = vld [vmem:[#allocation8 + $0x1e8] sm:$0xff]  ;;  %v1629_v40 = vld [vmem:[#allocation8 + $0x80] sm:$0xff] }
  0xfd   :  { %1507 = vmatpush1.bf16.msra.mxu0 %v9445_v41  ;;  %v8341_v41 = vcombine.low %v9875_v54, %v9877_v39 }
  0xfe   :  { %1550 = vmatpush1.bf16.msra.mxu1 %v9448_v42  ;;  %1508 = vmatprep.subr.bf16.mxu0 %v9453_v43  ;;  %v1633_v42 = vld [vmem:[#allocation8 + $0xa0] sm:$0xff] }
  0xff   :  { %1551 = vmatprep.subr.bf16.mxu1 %v9456_v44  ;;  %v1797_v43 = vld [vmem:[#allocation8 + $0x5c0] sm:$0xff] }
 0x100   :  { %v1801_v44 = vld [vmem:[#allocation8 + $0x5e0] sm:$0xff] }
 0x101   :  { %1509 = vmatpush1.bf16.msra.mxu0 %v9451_v45  ;;  %v8468_v45 = vcombine.high %v1797_v43, %v1801_v44 }
 0x102   :  { %1552 = vmatpush1.bf16.msra.mxu1 %v9454_v46  ;;  %1510 = vmatprep.subr.bf16.mxu0 %v9459_v47  ;;  %v8307_v46 = vcombine.low %v1637_v37, %v1641_v38  ;;  %v8467_v47 = vcombine.low %v1797_v43, %v1801_v44  ;;  %v1693_v44 = vld [vmem:[#allocation8 + $0x280] sm:$0xff] }
 0x103   :  { %1553 = vmatprep.subr.bf16.mxu1 %v9462_v48  ;;  %v8300_v48 = vcombine.high %v1629_v40, %v1633_v42 }
 0x105   :  { %1511 = vmatpush1.bf16.msra.mxu0 %v9457_v49  ;;  %v1621_v49 = vld [vmem:[#allocation8 + $0x40] sm:$0xff] }
 0x106   :  { %1554 = vmatpush1.bf16.msra.mxu1 %v9460_v50  ;;  %1512 = vmatprep.subr.bf16.mxu0 %v9465_v51  ;;  %v1625_v50 = vld [vmem:[#allocation8 + $0x60] sm:$0xff] }
 0x107   :  { %1555 = vmatprep.subr.bf16.mxu1 %v9468_v52  ;;  %v1789_v51 = vld [vmem:[#allocation8 + $0x580] sm:$0xff] }
 0x108   :  { %v1793_v52 = vld [vmem:[#allocation8 + $0x5a0] sm:$0xff] }
 0x109   :  { %1513 = vmatpush2.bf16.msra.mxu0 %v9463_v53  ;;  %v8460_v53 = vcombine.high %v1789_v51, %v1793_v52 }
 0x10a   :  { %1556 = vmatpush2.bf16.msra.mxu1 %v9466_v55  ;;  %1514 = vmatprep.subr.bf16.mxu0 %v9471_v56  ;;  %v8299_v55 = vcombine.low %v1629_v40, %v1633_v42  ;;  %v8459_v56 = vcombine.low %v1789_v51, %v1793_v52  ;;  %v1685_v52 = vld [vmem:[#allocation8 + $0x240] sm:$0xff] }
 0x10b   :  { %1557 = vmatprep.subr.bf16.mxu1 %v9474_v57  ;;  %v8292_v57 = vcombine.high %v1621_v49, %v1625_v50 }
 0x10d   :  { %1515 = vmatpush2.bf16.msra.mxu0 %v9469_v58  ;;  %v1613_v58 = vld [vmem:[#allocation8] sm:$0xff] }
 0x10e   :  { %1558 = vmatpush2.bf16.msra.mxu1 %v9472_v59  ;;  %1516 = vmatprep.subr.bf16.mxu0 %v9477_v60  ;;  %v1617_v59 = vld [vmem:[#allocation8 + $0x20] sm:$0xff] }
 0x10f   :  { %1559 = vmatprep.subr.bf16.mxu1 %v9480_v61  ;;  %v1781_v60 = vld [vmem:[#allocation8 + $0x540] sm:$0xff] }
 0x110   :  { %v1785_v61 = vld [vmem:[#allocation8 + $0x560] sm:$0xff] }
 0x111   :  { %1517 = vmatpush2.bf16.msra.mxu0 %v9475_v62  ;;  %v8452_v62 = vcombine.high %v1781_v60, %v1785_v61 }
 0x112   :  { %1560 = vmatpush2.bf16.msra.mxu1 %v9478_v63  ;;  %1518 = vmatprep.subr.bf16.mxu0 %v9483_v0  ;;  %v8291_v63 = vcombine.low %v1621_v49, %v1625_v50  ;;  %v8451_v0 = vcombine.low %v1781_v60, %v1785_v61  ;;  %v1677_v61 = vld [vmem:[#allocation8 + $0x200] sm:$0xff] }
 0x113   :  { %1561 = vmatprep.subr.bf16.mxu1 %v9486_v1  ;;  %v8284_v1 = vcombine.high %v1613_v58, %v1617_v59 }
 0x115   :  { %1519 = vmatpush2.bf16.msra.mxu0 %v9481_v2  ;;  %v1733_v2 = vld [vmem:[#allocation8 + $0x3c0] sm:$0xff] }
 0x116   :  { %1562 = vmatpush2.bf16.msra.mxu1 %v9484_v3  ;;  %1520 = vmatprep.subr.bf16.mxu0 %v9489_v4  ;;  %v1737_v3 = vld [vmem:[#allocation8 + $0x3e0] sm:$0xff] }
 0x117   :  { %1563 = vmatprep.subr.bf16.mxu1 %v9492_v5  ;;  %v1773_v4 = vld [vmem:[#allocation8 + $0x500] sm:$0xff] }
 0x118   :  { %v1777_v5 = vld [vmem:[#allocation8 + $0x520] sm:$0xff] }
 0x119   :  { %1521 = vmatpush2.bf16.msra.mxu0 %v9487_v6  ;;  %v8444_v6 = vcombine.high %v1773_v4, %v1777_v5 }
 0x11a   :  { %1564 = vmatpush2.bf16.msra.mxu1 %v9490_v7  ;;  %1522 = vmatprep.subr.bf16.mxu0 %v9495_v8  ;;  %v8283_v7 = vcombine.low %v1613_v58, %v1617_v59  ;;  %v8443_v8 = vcombine.low %v1773_v4, %v1777_v5  ;;  %v1837_v5 = vld [vmem:[#allocation8 + $0x700] sm:$0xff] }
 0x11b   :  { %1565 = vmatprep.subr.bf16.mxu1 %v9498_v9  ;;  %v8404_v9 = vcombine.high %v1733_v2, %v1737_v3 }
 0x11d   :  { %1523 = vmatpush2.bf16.msra.mxu0 %v9493_v10  ;;  %v1725_v10 = vld [vmem:[#allocation8 + $0x380] sm:$0xff] }
 0x11e   :  { %1566 = vmatpush2.bf16.msra.mxu1 %v9496_v11  ;;  %1524 = vmatprep.subr.bf16.mxu0 %v9501_v14  ;;  %v1729_v11 = vld [vmem:[#allocation8 + $0x3a0] sm:$0xff] }
 0x11f   :  { %1567 = vmatprep.subr.bf16.mxu1 %v9504_v15  ;;  %v1765_v14 = vld [vmem:[#allocation8 + $0x4c0] sm:$0xff]  ;;  %v8395_v26 = vcombine.low %v1725_v10, %v1729_v11 }
 0x120   :  { %v1769_v15 = vld [vmem:[#allocation8 + $0x4e0] sm:$0xff] }
 0x121   :  { %1525 = vmatpush2.bf16.msra.mxu0 %v9499_v16  ;;  %v8436_v16 = vcombine.high %v1765_v14, %v1769_v15 }
 0x122   :  { %1568 = vmatpush2.bf16.msra.mxu1 %v9502_v17  ;;  %1526 = vmatprep.subr.bf16.mxu0 %v9507_v18  ;;  %v8403_v17 = vcombine.low %v1733_v2, %v1737_v3  ;;  %v8435_v18 = vcombine.low %v1765_v14, %v1769_v15  ;;  %v1833_v14 = vld [vmem:[#allocation8 + $0x6e0] sm:$0xff] }
 0x123   :  { %1569 = vmatprep.subr.bf16.mxu1 %v9510_v19  ;;  %v8396_v19 = vcombine.high %v1725_v10, %v1729_v11  ;;  %v8342_v10 = vcombine.high %v9875_v54, %v9877_v39  ;;  %v1829_v11 = vld [vmem:[#allocation8 + $0x6c0] sm:$0xff]  ;;  %v1634_v54 = vld [vmem:[#allocation8 + $0xa8] sm:$0xff] }
 0x124   :  { %v8500_v15 = vcombine.high %v1829_v11, %v1833_v14 }
 0x125   :  { %1527 = vmatpush2.bf16.msra.mxu0 %v9505_v23  ;;  %v1757_v23 = vld [vmem:[#allocation8 + $0x480] sm:$0xff] }
 0x126   :  { %1570 = vmatpush2.bf16.msra.mxu1 %v9508_v24  ;;  %3191 = vmatprep.subr.bf16.mxu0 %v8340_v25  ;;  %v1761_v24 = vld [vmem:[#allocation8 + $0x4a0] sm:$0xff] }
 0x127   :  { %3234 = vmatprep.subr.bf16.mxu1 %v8468_v45  ;;  %v8428_v25 = vcombine.high %v1757_v23, %v1761_v24  ;;  %v8427_v27 = vcombine.low %v1757_v23, %v1761_v24  ;;  %v1697_v45 = vld [vmem:[#allocation8 + $0x2a0] sm:$0xff] }
 0x128   :  { %1529 = vmatmul.mubr.bf16.vlgmr.msra.gmra.mxu0 %v9860_v13  ;;  %v8315_v13 = vcombine.low %v1645_v34, %v1649_v12  ;;  %v8387_v34 = vcombine.low %v1717_v20, %v1721_v21  ;;  %v8364_v51 = vcombine.high %v1693_v44, %v1697_v45  ;;  %v8363_v58 = vcombine.low %v1693_v44, %v1697_v45  ;;  %v1817_v23 = vld [vmem:[#allocation8 + $0x660] sm:$0xff] }
 0x129   :  { %1572 = vmatmul.mubr.bf16.vlgmr.msra.gmra.mxu1 %v9867_v22  ;;  %3192 = vmatpush1.bf16.msra.mxu0 %v8339_v28  ;;  %v8308_v22 = vcombine.high %v1637_v37, %v1641_v38  ;;  %v8388_v28 = vcombine.high %v1717_v20, %v1721_v21  ;;  %v1705_v37 = vld [vmem:[#allocation8 + $0x2e0] sm:$0xff] }
 0x12a   :  { %3193 = vmatprep.subr.bf16.mxu0 %v8332_v29  ;;  %3235 = vmatpush1.bf16.msra.mxu1 %v8467_v47  ;;  %v1709_v29 = vld [vmem:[#allocation8 + $0x300] sm:$0xff] }
 0x12b   :  { %3236 = vmatprep.subr.bf16.mxu1 %v8460_v53  ;;  %v1741_v38 = vld [vmem:[#allocation8 + $0x400] sm:$0xff]  ;;  %v8379_v40 = vcombine.low %v1709_v29, %v1713_v30 }
 0x12c   :  { %v1865_v47 = vld [vmem:[#allocation8 + $0x7e0] sm:$0xff] }
 0x12d   :  { %3194 = vmatpush1.bf16.msra.mxu0 %v8331_v32  ;;  %v1753_v32 = vld [vmem:[#allocation8 + $0x460] sm:$0xff] }
 0x12e   :  { %3195 = vmatprep.subr.bf16.mxu0 %v8324_v33  ;;  %3237 = vmatpush1.bf16.msra.mxu1 %v8459_v56  ;;  %v8420_v33 = vcombine.high %v1749_v31, %v1753_v32  ;;  %v8419_v12 = vcombine.low %v1749_v31, %v1753_v32  ;;  %v1689_v53 = vld [vmem:[#allocation8 + $0x260] sm:$0xff]  ;;  %v9885_v31 = vld [vmem:[#allocation8 + $0x5e8] sm:$0xff] }
 0x12f   :  { %3238 = vmatprep.subr.bf16.mxu1 %v8452_v62  ;;  %v1857_v56 = vld [vmem:[#allocation8 + $0x7a0] sm:$0xff]  ;;  %v8356_v60 = vcombine.high %v1685_v52, %v1689_v53  ;;  %v8355_v2 = vcombine.low %v1685_v52, %v1689_v53  ;;  %v1662_v52 = vld [vmem:[#allocation8 + $0x188] sm:$0xff] }
 0x130   :  { %v1681_v62 = vld [vmem:[#allocation8 + $0x220] sm:$0xff]  ;;  %v1666_v53 = vld [vmem:[#allocation8 + $0x1a8] sm:$0xff] }
 0x131   :  { %3196 = vmatpush1.bf16.msra.mxu0 %v8323_v35  ;;  %v8380_v35 = vcombine.high %v1709_v29, %v1713_v30  ;;  %v8348_v4 = vcombine.high %v1677_v61, %v1681_v62  ;;  %v1813_v21 = vld [vmem:[#allocation8 + $0x640] sm:$0xff]  ;;  %v9883_v30 = vld [vmem:[#allocation8 + $0x5c8] sm:$0xff] }
 0x132   :  { %3197 = vmatprep.subr.bf16.mxu0 %v8316_v36  ;;  %3239 = vmatpush1.bf16.msra.mxu1 %v8451_v0  ;;  %v1701_v36 = vld [vmem:[#allocation8 + $0x2c0] sm:$0xff]  ;;  %v8484_v24 = vcombine.high %v1813_v21, %v1817_v23  ;;  %v8470_v32 = vcombine.high %v9883_v30, %v9885_v31 }
 0x133   :  { %3240 = vmatprep.subr.bf16.mxu1 %v8444_v6  ;;  %v8372_v43 = vcombine.high %v1701_v36, %v1705_v37  ;;  %v8371_v49 = vcombine.low %v1701_v36, %v1705_v37  ;;  %v1849_v0 = vld [vmem:[#allocation8 + $0x760] sm:$0xff] }
 0x134   :  { %v1841_v6 = vld [vmem:[#allocation8 + $0x720] sm:$0xff] }
 0x135   :  { %3198 = vmatpush1.bf16.msra.mxu0 %v8315_v13  ;;  %v1745_v13 = vld [vmem:[#allocation8 + $0x420] sm:$0xff] }
 0x136   :  { %3199 = vmatprep.subr.bf16.mxu0 %v8308_v22  ;;  %3241 = vmatpush1.bf16.msra.mxu1 %v8443_v8  ;;  %v8412_v22 = vcombine.high %v1741_v38, %v1745_v13  ;;  %v8411_v42 = vcombine.low %v1741_v38, %v1745_v13  ;;  %v8347_v8 = vcombine.low %v1677_v61, %v1681_v62 }
 0x137   :  { %3242 = vmatprep.subr.bf16.mxu1 %v8436_v16  ;;  %v8499_v16 = vcombine.low %v1829_v11, %v1833_v14  ;;  %v8333_v61 = vcombine.low %v1662_v52, %v1666_v53  ;;  %v1614_v14 = vld [vmem:[#allocation8 + $0x8] sm:$0xff] }
 0x139   :  { %3200 = vmatpush1.bf16.msra.mxu0 %v8307_v46  ;;  %v1861_v46 = vld [vmem:[#allocation8 + $0x7c0] sm:$0xff] }
 0x13a   :  { %3201 = vmatprep.subr.bf16.mxu0 %v8300_v48  ;;  %3243 = vmatpush1.bf16.msra.mxu1 %v8435_v18  ;;  %v8532_v48 = vcombine.high %v1861_v46, %v1865_v47  ;;  %v8531_v50 = vcombine.low %v1861_v46, %v1865_v47  ;;  %v1825_v18 = vld [vmem:[#allocation8 + $0x6a0] sm:$0xff] }
 0x13b   :  { %3244 = vmatprep.subr.bf16.mxu1 %v8428_v25  ;;  %v8483_v25 = vcombine.low %v1813_v21, %v1817_v23  ;;  %v1726_v23 = vld [vmem:[#allocation8 + $0x388] sm:$0xff] }
 0x13d   :  { %3202 = vmatpush1.bf16.msra.mxu0 %v8299_v55  ;;  %v1853_v55 = vld [vmem:[#allocation8 + $0x780] sm:$0xff] }
 0x13e   :  { %3203 = vmatprep.subr.bf16.mxu0 %v8292_v57  ;;  %3245 = vmatpush1.bf16.msra.mxu1 %v8427_v27  ;;  %v8524_v57 = vcombine.high %v1853_v55, %v1857_v56  ;;  %v8523_v59 = vcombine.low %v1853_v55, %v1857_v56  ;;  %v1809_v27 = vld [vmem:[#allocation8 + $0x620] sm:$0xff] }
 0x13f   :  { %3246 = vmatprep.subr.bf16.mxu1 %v8420_v33  ;;  %v8469_v33 = vcombine.low %v9883_v30, %v9885_v31 }
 0x141   :  { %3204 = vmatpush1.bf16.msra.mxu0 %v8291_v63  ;;  %v1845_v63 = vld [vmem:[#allocation8 + $0x740] sm:$0xff] }
 0x142   :  { %3205 = vmatprep.subr.bf16.mxu0 %v8284_v1  ;;  %3247 = vmatpush1.bf16.msra.mxu1 %v8419_v12  ;;  %v8516_v1 = vcombine.high %v1845_v63, %v1849_v0  ;;  %v8515_v3 = vcombine.low %v1845_v63, %v1849_v0  ;;  %v1646_v63 = vld [vmem:[#allocation8 + $0x108] sm:$0xff] }
 0x143   :  { %3248 = vmatprep.subr.bf16.mxu1 %v8412_v22  ;;  %v1650_v0 = vld [vmem:[#allocation8 + $0x128] sm:$0xff] }
 0x145   :  { %3206 = vmatpush1.bf16.msra.mxu0 %v8283_v7  ;;  %v8508_v7 = vcombine.high %v1837_v5, %v1841_v6 }
 0x146   :  { %3207 = vmatprep.subr.bf16.mxu0 %v8404_v9  ;;  %3249 = vmatpush1.bf16.msra.mxu1 %v8411_v42  ;;  %v8507_v9 = vcombine.low %v1837_v5, %v1841_v6  ;;  %v8317_v5 = vcombine.low %v1646_v63, %v1650_v0 }
 0x147   :  { %3250 = vmatprep.subr.bf16.mxu1 %v8532_v48 }
 0x149   :  { %3208 = vmatpush2.bf16.msra.mxu0 %v8403_v17  ;;  %v1821_v17 = vld [vmem:[#allocation8 + $0x680] sm:$0xff] }
 0x14a   :  { %3209 = vmatprep.subr.bf16.mxu0 %v8396_v19  ;;  %3251 = vmatpush2.bf16.msra.mxu1 %v8531_v50  ;;  %v8492_v19 = vcombine.high %v1821_v17, %v1825_v18  ;;  %v8491_v20 = vcombine.low %v1821_v17, %v1825_v18  ;;  %v1734_v18 = vld [vmem:[#allocation8 + $0x3c8] sm:$0xff] }
 0x14b   :  { %3252 = vmatprep.subr.bf16.mxu1 %v8524_v57 }
 0x14d   :  { %3210 = vmatpush2.bf16.msra.mxu0 %v8395_v26  ;;  %v1805_v26 = vld [vmem:[#allocation8 + $0x600] sm:$0xff] }
 0x14e   :  { %3211 = vmatprep.subr.bf16.mxu0 %v8388_v28  ;;  %3253 = vmatpush2.bf16.msra.mxu1 %v8523_v59  ;;  %v8476_v28 = vcombine.high %v1805_v26, %v1809_v27  ;;  %v8475_v29 = vcombine.low %v1805_v26, %v1809_v27  ;;  %v1654_v59 = vld [vmem:[#allocation8 + $0x148] sm:$0xff] }
 0x14f   :  { %3254 = vmatprep.subr.bf16.mxu1 %v8516_v1  ;;  %v1718_v27 = vld [vmem:[#allocation8 + $0x348] sm:$0xff] }
 0x151   :  { %3212 = vmatpush2.bf16.msra.mxu0 %v8387_v34 }
 0x152   :  { %3213 = vmatprep.subr.bf16.mxu0 %v8380_v35  ;;  %3255 = vmatpush2.bf16.msra.mxu1 %v8515_v3  ;;  %v1638_v3 = vld [vmem:[#allocation8 + $0xc8] sm:$0xff] }
 0x153   :  { %3256 = vmatprep.subr.bf16.mxu1 %v8508_v7  ;;  %v1630_v7 = vld [vmem:[#allocation8 + $0x88] sm:$0xff] }
 0x155   :  { %3214 = vmatpush2.bf16.msra.mxu0 %v8379_v40 }
 0x156   :  { %3215 = vmatprep.subr.bf16.mxu0 %v8372_v43  ;;  %3257 = vmatpush2.bf16.msra.mxu1 %v8507_v9  ;;  %v1626_v9 = vld [vmem:[#allocation8 + $0x68] sm:$0xff] }
 0x157   :  { %3258 = vmatprep.subr.bf16.mxu1 %v8500_v15  ;;  %v1618_v15 = vld [vmem:[#allocation8 + $0x28] sm:$0xff] }
 0x158   :  { %v8286_v17 = vcombine.high %v1614_v14, %v1618_v15 }
 0x159   :  { %3216 = vmatpush2.bf16.msra.mxu0 %v8371_v49 }
 0x15a   :  { %3217 = vmatprep.subr.bf16.mxu0 %v8364_v51  ;;  %3259 = vmatpush2.bf16.msra.mxu1 %v8499_v16 }
 0x15b   :  { %3260 = vmatprep.subr.bf16.mxu1 %v8492_v19  ;;  %v1738_v19 = vld [vmem:[#allocation8 + $0x3e8] sm:$0xff] }
 0x15c   :  { %v8406_v21 = vcombine.high %v1734_v18, %v1738_v19 }
 0x15d   :  { %3218 = vmatpush2.bf16.msra.mxu0 %v8363_v58  ;;  %v8334_v58 = vcombine.high %v1662_v52, %v1666_v53  ;;  %v1678_v53 = vld [vmem:[#allocation8 + $0x208] sm:$0xff] }
 0x15e   :  { %3219 = vmatprep.subr.bf16.mxu0 %v8356_v60  ;;  %3261 = vmatpush2.bf16.msra.mxu1 %v8491_v20  ;;  %v1658_v60 = vld [vmem:[#allocation8 + $0x168] sm:$0xff]  ;;  %v8285_v20 = vcombine.low %v1614_v14, %v1618_v15 }
 0x15f   :  { %3262 = vmatprep.subr.bf16.mxu1 %v8484_v24  ;;  %v8326_v62 = vcombine.high %v1654_v59, %v1658_v60  ;;  %v8325_v1 = vcombine.low %v1654_v59, %v1658_v60  ;;  %v1730_v24 = vld [vmem:[#allocation8 + $0x3a8] sm:$0xff] }
 0x160   :  { %v8398_v26 = vcombine.high %v1726_v23, %v1730_v24 }
 0x161   :  { %3220 = vmatpush2.bf16.msra.mxu0 %v8355_v2  ;;  %v8318_v2 = vcombine.high %v1646_v63, %v1650_v0  ;;  %v1671_v0 = vld [vmem:[#allocation8 + $0x1d0] sm:$0xff] }
 0x162   :  { %3221 = vmatprep.subr.bf16.mxu0 %v8348_v4  ;;  %3263 = vmatpush2.bf16.msra.mxu1 %v8483_v25  ;;  %v1642_v4 = vld [vmem:[#allocation8 + $0xe8] sm:$0xff]  ;;  %v8405_v25 = vcombine.low %v1734_v18, %v1738_v19 }
 0x163   :  { %3264 = vmatprep.subr.bf16.mxu1 %v8476_v28  ;;  %v8310_v6 = vcombine.high %v1638_v3, %v1642_v4  ;;  %v8309_v39 = vcombine.low %v1638_v3, %v1642_v4  ;;  %v1722_v28 = vld [vmem:[#allocation8 + $0x368] sm:$0xff] }
 0x164   :  { %v1790_v18 = vld [vmem:[#allocation8 + $0x588] sm:$0xff] }
 0x165   :  { %3222 = vmatpush2.bf16.msra.mxu0 %v8347_v8  ;;  %v1622_v8 = vld [vmem:[#allocation8 + $0x48] sm:$0xff] }
 0x166   :  { %3277 = vmatprep.subr.bf16.mxu0 %v8342_v10  ;;  %3265 = vmatpush2.bf16.msra.mxu1 %v8475_v29  ;;  %v8301_v10 = vcombine.low %v1630_v7, %v1634_v54  ;;  %v8294_v11 = vcombine.high %v1622_v8, %v1626_v9  ;;  %v8293_v16 = vcombine.low %v1622_v8, %v1626_v9  ;;  %v1663_v8 = vld [vmem:[#allocation8 + $0x190] sm:$0xff]  ;;  %v1794_v19 = vld [vmem:[#allocation8 + $0x5a8] sm:$0xff] }
 0x167   :  { %3320 = vmatprep.subr.bf16.mxu1 %v8470_v32  ;;  %v8397_v29 = vcombine.low %v1726_v23, %v1730_v24  ;;  %v8390_v32 = vcombine.high %v1718_v27, %v1722_v28  ;;  %v1667_v9 = vld [vmem:[#allocation8 + $0x1b0] sm:$0xff] }
 0x168   :  { %v1358_v34 = vpop.f32.mrf.mxu0  ;;  %v1655_v23 = vld [vmem:[#allocation8 + $0x150] sm:$0xff] }
 0x169   :  { %v1401_v12 = vpop.f32.mrf.mxu1  ;;  %v1659_v24 = vld [vmem:[#allocation8 + $0x170] sm:$0xff] }
 0x16a   :  { %v1360_v35 = vpop.f32.mrf.mxu0  ;;  %v1402_v47 = vadd.f32 %v1401_v12, %v1358_v34  ;;  %v1710_v34 = vld [vmem:[#allocation8 + $0x308] sm:$0xff] }
 0x16b   :  { %v1403_v36 = vpop.f32.mrf.mxu1  ;;  %v1714_v12 = vld [vmem:[#allocation8 + $0x328] sm:$0xff] }
 0x16c   :  { %v1362_v37 = vpop.f32.mrf.mxu0  ;;  %v1404_v45 = vadd.f32 %v1403_v36, %v1360_v35  ;;  %v8389_v35 = vcombine.low %v1718_v27, %v1722_v28  ;;  %v8462_v27 = vcombine.high %v1790_v18, %v1794_v19  ;;  %v8328_v28 = vcombine.high %v1655_v23, %v1659_v24 }
 0x16d   :  { %v1405_v38 = vpop.f32.mrf.mxu1 }
 0x16e   :  { %v1364_v13 = vpop.f32.mrf.mxu0  ;;  %v1406_v43 = vadd.f32 %v1405_v38, %v1362_v37  ;;  %v8382_v37 = vcombine.high %v1710_v34, %v1714_v12  ;;  %v1702_v38 = vld [vmem:[#allocation8 + $0x2c8] sm:$0xff] }
 0x16f   :  { %v1407_v40 = vpop.f32.mrf.mxu1 }
 0x170   :  { %v1408_v46 = vadd.f32 %v1407_v40, %v1364_v13  ;;  %v1706_v13 = vld [vmem:[#allocation8 + $0x2e8] sm:$0xff] }
 0x1a8   :  { %v1444_v22 = vpop.f32.mrf.mxu0 }
 0x1a9   :  { %v1445_v55 = vadd.f32 %v1444_v22, %v1402_v47  ;;  %v1487_v36 = vpop.f32.mrf.mxu1  ;;  %v8381_v22 = vcombine.low %v1710_v34, %v1714_v12  ;;  %v1647_v34 = vld [vmem:[#allocation8 + $0x110] sm:$0xff] }
 0x1aa   :  { %v1446_v42 = vpop.f32.mrf.mxu0  ;;  %v1651_v12 = vld [vmem:[#allocation8 + $0x130] sm:$0xff] }
 0x1ab   :  { %v1447_v50 = vadd.f32 %v1446_v42, %v1404_v45  ;;  %v1489_v40 = vpop.f32.mrf.mxu1  ;;  %v8374_v42 = vcombine.high %v1702_v38, %v1706_v13  ;;  %v8373_v45 = vcombine.low %v1702_v38, %v1706_v13  ;;  %v8320_v38 = vcombine.high %v1647_v34, %v1651_v12  ;;  %v1774_v13 = vld [vmem:[#allocation8 + $0x508] sm:$0xff] }
 0x1ac   :  { %v1448_v44 = vpop.f32.mrf.mxu0 }
 0x1ad   :  { %v1449_v48 = vadd.f32 %v1448_v44, %v1406_v43  ;;  %v1694_v43 = vld [vmem:[#allocation8 + $0x288] sm:$0xff] }
 0x1ae   :  { %v1450_v49 = vpop.f32.mrf.mxu0  ;;  %v1698_v44 = vld [vmem:[#allocation8 + $0x2a8] sm:$0xff] }
 0x1af   :  { %v1451_v51 = vadd.f32 %v1450_v49, %v1408_v46  ;;  %v9893_v57 = vpack.c.bf16 %v1449_v48, %v1445_v55  ;;  %v1491_v46 = vpop.f32.mrf.mxu1  ;;  %v8366_v47 = vcombine.high %v1694_v43, %v1698_v44  ;;  %v1686_v48 = vld [vmem:[#allocation8 + $0x248] sm:$0xff] }
 0x1b0   :  { %v1690_v49 = vld [vmem:[#allocation8 + $0x268] sm:$0xff] }
 0x1b1   :  { %v9891_v56 = vpack.c.bf16 %v1451_v51, %v1447_v50  ;;  %v8365_v50 = vcombine.low %v1694_v43, %v1698_v44  ;;  %v1493_v51 = vpop.f32.mrf.mxu1  ;;  %v8358_v52 = vcombine.high %v1686_v48, %v1690_v49  ;;  %v1682_v55 = vld [vmem:[#allocation8 + $0x228] sm:$0xff]  ;;  %v8357_v60 = vcombine.low %v1686_v48, %v1690_v49 }
 0x1b2   :  { %v8350_v63 = vcombine.high %v1678_v53, %v1682_v55  ;;  %v8319_v44 = vcombine.low %v1647_v34, %v1651_v12 }
 0x1b3   :  { %3223 = vmatprep.mubr.bf16.mxu0 %v9891_v56 }
 0x1b4   :  { %3224 = vmatmul.mubr.bf16.vlgmr.msra.gmra.mxu0 %v9893_v57 }
 0x1b5   :  { %3278 = vmatpush1.bf16.msra.mxu0 %v8341_v41  ;;  %3309 = vmatprep.mubr.bf16.mxu0 %v9891_v56  ;;  %v8302_v41 = vcombine.high %v1630_v7, %v1634_v54 }
 0x1b6   :  { %3279 = vmatprep.subr.bf16.mxu0 %v8334_v58 }
 0x1b9   :  { %3280 = vmatpush1.bf16.msra.mxu0 %v8333_v61 }
 0x1ba   :  { %3281 = vmatprep.subr.bf16.mxu0 %v8326_v62 }
 0x1bd   :  { %3282 = vmatpush1.bf16.msra.mxu0 %v8325_v1  ;;  %v1675_v1 = vld [vmem:[#allocation8 + $0x1f0] sm:$0xff] }
 0x1be   :  { %3283 = vmatprep.subr.bf16.mxu0 %v8318_v2  ;;  %v8344_v54 = vcombine.high %v1671_v0, %v1675_v1 }
 0x1c1   :  { %3284 = vmatpush1.bf16.msra.mxu0 %v8317_v5 }
 0x1c2   :  { %3285 = vmatprep.subr.bf16.mxu0 %v8310_v6  ;;  %v8349_v6 = vcombine.low %v1678_v53, %v1682_v55  ;;  %v1762_v53 = vld [vmem:[#allocation8 + $0x4a8] sm:$0xff]  ;;  %v1623_v55 = vld [vmem:[#allocation8 + $0x50] sm:$0xff] }
 0x1c5   :  { %3286 = vmatpush1.bf16.msra.mxu0 %v8309_v39 }
 0x1c6   :  { %3287 = vmatprep.subr.bf16.mxu0 %v8302_v41 }
 0x1c9   :  { %3288 = vmatpush1.bf16.msra.mxu0 %v8301_v10 }
 0x1ca   :  { %3289 = vmatprep.subr.bf16.mxu0 %v8294_v11 }
 0x1cd   :  { %3290 = vmatpush1.bf16.msra.mxu0 %v8293_v16  ;;  %v8343_v16 = vcombine.low %v1671_v0, %v1675_v1  ;;  %v1754_v0 = vld [vmem:[#allocation8 + $0x468] sm:$0xff]  ;;  %v1615_v1 = vld [vmem:[#allocation8 + $0x10] sm:$0xff] }
 0x1ce   :  { %3291 = vmatprep.subr.bf16.mxu0 %v8286_v17  ;;  %v8336_v17 = vcombine.high %v1663_v8, %v1667_v9 }
 0x1d1   :  { %3292 = vmatpush1.bf16.msra.mxu0 %v8285_v20 }
 0x1d2   :  { %3293 = vmatprep.subr.bf16.mxu0 %v8406_v21 }
 0x1d5   :  { %3294 = vmatpush2.bf16.msra.mxu0 %v8405_v25 }
 0x1d6   :  { %3295 = vmatprep.subr.bf16.mxu0 %v8398_v26  ;;  %v8335_v26 = vcombine.low %v1663_v8, %v1667_v9 }
 0x1d9   :  { %3296 = vmatpush2.bf16.msra.mxu0 %v8397_v29  ;;  %v1782_v29 = vld [vmem:[#allocation8 + $0x548] sm:$0xff] }
 0x1da   :  { %3297 = vmatprep.subr.bf16.mxu0 %v8390_v32  ;;  %v1786_v32 = vld [vmem:[#allocation8 + $0x568] sm:$0xff] }
 0x1db   :  { %v8453_v43 = vcombine.low %v1782_v29, %v1786_v32 }
 0x1dd   :  { %3298 = vmatpush2.bf16.msra.mxu0 %v8389_v35  ;;  %v8461_v35 = vcombine.low %v1790_v18, %v1794_v19 }
 0x1de   :  { %3299 = vmatprep.subr.bf16.mxu0 %v8382_v37  ;;  %v8454_v37 = vcombine.high %v1782_v29, %v1786_v32 }
 0x1e1   :  { %3300 = vmatpush2.bf16.msra.mxu0 %v8381_v22  ;;  %v1778_v22 = vld [vmem:[#allocation8 + $0x528] sm:$0xff] }
 0x1e2   :  { %3301 = vmatprep.subr.bf16.mxu0 %v8374_v42  ;;  %v1643_v42 = vld [vmem:[#allocation8 + $0xf0] sm:$0xff]  ;;  %v8446_v30 = vcombine.high %v1774_v13, %v1778_v22  ;;  %v8445_v48 = vcombine.low %v1774_v13, %v1778_v22 }
 0x1e5   :  { %3302 = vmatpush2.bf16.msra.mxu0 %v8373_v45  ;;  %v1770_v45 = vld [vmem:[#allocation8 + $0x4e8] sm:$0xff] }
 0x1e6   :  { %3303 = vmatprep.subr.bf16.mxu0 %v8366_v47  ;;  %v1635_v47 = vld [vmem:[#allocation8 + $0xb0] sm:$0xff] }
 0x1e8   :  { %v1530_v58 = vpop.f32.mrf.mxu0 }
 0x1e9   :  { %v1573_v59 = vpop.f32.mrf.mxu1  ;;  %3304 = vmatpush2.bf16.msra.mxu0 %v8365_v50  ;;  %v1531_v39 = vadd.f32 %v1530_v58, %v1487_v36  ;;  %v8327_v36 = vcombine.low %v1655_v23, %v1659_v24  ;;  %v1627_v58 = vld [vmem:[#allocation8 + $0x70] sm:$0xff]  ;;  %v1854_v24 = vld [vmem:[#allocation8 + $0x788] sm:$0xff] }
 0x1ea   :  { %v1532_v61 = vpop.f32.mrf.mxu0  ;;  %3305 = vmatprep.subr.bf16.mxu0 %v8358_v52  ;;  %v1758_v52 = vld [vmem:[#allocation8 + $0x488] sm:$0xff] }
 0x1eb   :  { %v1575_v62 = vpop.f32.mrf.mxu1  ;;  %v1533_v4 = vadd.f32 %v1532_v61, %v1489_v40  ;;  %v1574_v20 = vadd.f32 %v1573_v59, %v1531_v39  ;;  %v1639_v40 = vld [vmem:[#allocation8 + $0xd0] sm:$0xff]  ;;  %v8430_v61 = vcombine.high %v1758_v52, %v1762_v53 }
 0x1ec   :  { %v1534_v2 = vpop.f32.mrf.mxu0  ;;  %v8312_v31 = vcombine.high %v1639_v40, %v1643_v42  ;;  %v8311_v49 = vcombine.low %v1639_v40, %v1643_v42  ;;  %v1735_v39 = vld [vmem:[#allocation8 + $0x3d0] sm:$0xff] }
 0x1ed   :  { %v1577_v3 = vpop.f32.mrf.mxu1  ;;  %v1535_v5 = vadd.f32 %v1534_v2, %v1491_v46  ;;  %3306 = vmatpush2.bf16.msra.mxu0 %v8357_v60  ;;  %v1576_v11 = vadd.f32 %v1575_v62, %v1533_v4  ;;  %v1631_v46 = vld [vmem:[#allocation8 + $0x90] sm:$0xff]  ;;  %v8296_v62 = vcombine.high %v1623_v55, %v1627_v58  ;;  %v8295_v4 = vcombine.low %v1623_v55, %v1627_v58 }
 0x1ee   :  { %v1536_v7 = vpop.f32.mrf.mxu0  ;;  %3307 = vmatprep.subr.bf16.mxu0 %v8350_v63  ;;  %v8303_v60 = vcombine.low %v1631_v46, %v1635_v47  ;;  %v1750_v63 = vld [vmem:[#allocation8 + $0x448] sm:$0xff]  ;;  %v1619_v2 = vld [vmem:[#allocation8 + $0x30] sm:$0xff] }
 0x1ef   :  { %v1537_v41 = vadd.f32 %v1536_v7, %v1493_v51  ;;  %v1579_v10 = vpop.f32.mrf.mxu1  ;;  %v1578_v14 = vadd.f32 %v1577_v3, %v1535_v5  ;;  %v8304_v51 = vcombine.high %v1631_v46, %v1635_v47  ;;  %v8429_v3 = vcombine.low %v1758_v52, %v1762_v53  ;;  %v1742_v7 = vld [vmem:[#allocation8 + $0x408] sm:$0xff] }
 0x1f0   :  { %v8422_v5 = vcombine.high %v1750_v63, %v1754_v0  ;;  %v8421_v8 = vcombine.low %v1750_v63, %v1754_v0  ;;  %v8287_v9 = vcombine.low %v1615_v1, %v1619_v2 }
 0x1f1   :  { %v1580_v15 = vadd.f32 %v1579_v10, %v1537_v41  ;;  %3308 = vmatpush2.bf16.msra.mxu0 %v8349_v6  ;;  %v9904_v25 = vpack.c.bf16 %v1578_v14, %v1574_v20  ;;  %v8288_v6 = vcombine.high %v1615_v1, %v1619_v2  ;;  %v1739_v41 = vld [vmem:[#allocation8 + $0x3f0] sm:$0xff]  ;;  %v1862_v14 = vld [vmem:[#allocation8 + $0x7c8] sm:$0xff] }
 0x1f2   :  { %3363 = vmatprep.subr.bf16.mxu0 %v8344_v54  ;;  %v1746_v54 = vld [vmem:[#allocation8 + $0x428] sm:$0xff]  ;;  %v8407_v19 = vcombine.low %v1735_v39, %v1739_v41 }
 0x1f3   :  { %v9901_v21 = vpack.c.bf16 %v1580_v15, %v1576_v11  ;;  %v8414_v10 = vcombine.high %v1742_v7, %v1746_v54  ;;  %v8408_v11 = vcombine.high %v1735_v39, %v1739_v41  ;;  %v1866_v15 = vld [vmem:[#allocation8 + $0x7e8] sm:$0xff]  ;;  %v8413_v18 = vcombine.low %v1742_v7, %v1746_v54 }
 0x1f4   :  { %3310 = vmatmul.mubr.bf16.vlgmr.msra.gmra.mxu0 %v9893_v57  ;;  %v8534_v20 = vcombine.high %v1862_v14, %v1866_v15  ;;  %v8533_v29 = vcombine.low %v1862_v14, %v1866_v15 }
 0x1f5   :  { %3364 = vmatpush1.bf16.msra.mxu0 %v8343_v16  ;;  %3395 = vmatprep.mubr.bf16.mxu0 %v9891_v56  ;;  %v1727_v16 = vld [vmem:[#allocation8 + $0x390] sm:$0xff] }
 0x1f6   :  { %3266 = vmatprep.mubr.bf16.mxu1 %v9901_v21  ;;  %3365 = vmatprep.subr.bf16.mxu0 %v8336_v17  ;;  %v1731_v17 = vld [vmem:[#allocation8 + $0x3b0] sm:$0xff] }
 0x1f7   :  { %3267 = vmatmul.mubr.bf16.vlgmr.msra.gmra.mxu1 %v9904_v25  ;;  %v8400_v23 = vcombine.high %v1727_v16, %v1731_v17  ;;  %v8399_v32 = vcombine.low %v1727_v16, %v1731_v17 }
 0x1f8   :  { %3321 = vmatpush1.bf16.msra.mxu1 %v8469_v33  ;;  %3352 = vmatprep.mubr.bf16.mxu1 %v9901_v21  ;;  %v1766_v33 = vld [vmem:[#allocation8 + $0x4c8] sm:$0xff] }
 0x1f9   :  { %3366 = vmatpush1.bf16.msra.mxu0 %v8335_v26  ;;  %3322 = vmatprep.subr.bf16.mxu1 %v8462_v27  ;;  %v8438_v50 = vcombine.high %v1766_v33, %v1770_v45  ;;  %v8437_v59 = vcombine.low %v1766_v33, %v1770_v45  ;;  %v1858_v26 = vld [vmem:[#allocation8 + $0x7a8] sm:$0xff]  ;;  %v1719_v27 = vld [vmem:[#allocation8 + $0x350] sm:$0xff] }
 0x1fa   :  { %3367 = vmatprep.subr.bf16.mxu0 %v8328_v28  ;;  %v1723_v28 = vld [vmem:[#allocation8 + $0x370] sm:$0xff]  ;;  %v8526_v34 = vcombine.high %v1854_v24, %v1858_v26  ;;  %v8525_v13 = vcombine.low %v1854_v24, %v1858_v26 }
 0x1fb   :  { %v8392_v12 = vcombine.high %v1719_v27, %v1723_v28  ;;  %v8391_v22 = vcombine.low %v1719_v27, %v1723_v28 }
 0x1fc   :  { %3323 = vmatpush1.bf16.msra.mxu1 %v8461_v35  ;;  %v1846_v35 = vld [vmem:[#allocation8 + $0x748] sm:$0xff] }
 0x1fd   :  { %3368 = vmatpush1.bf16.msra.mxu0 %v8327_v36  ;;  %3324 = vmatprep.subr.bf16.mxu1 %v8454_v37  ;;  %v1850_v36 = vld [vmem:[#allocation8 + $0x768] sm:$0xff]  ;;  %v1711_v37 = vld [vmem:[#allocation8 + $0x310] sm:$0xff] }
 0x1fe   :  { %3369 = vmatprep.subr.bf16.mxu0 %v8320_v38  ;;  %v1715_v38 = vld [vmem:[#allocation8 + $0x330] sm:$0xff]  ;;  %v8518_v40 = vcombine.high %v1846_v35, %v1850_v36  ;;  %v8517_v33 = vcombine.low %v1846_v35, %v1850_v36 }
 0x1ff   :  { %v8384_v42 = vcombine.high %v1711_v37, %v1715_v38  ;;  %v8383_v45 = vcombine.low %v1711_v37, %v1715_v38 }
 0x200   :  { %3325 = vmatpush1.bf16.msra.mxu1 %v8453_v43  ;;  %v1838_v43 = vld [vmem:[#allocation8 + $0x708] sm:$0xff] }
 0x201   :  { %3370 = vmatpush1.bf16.msra.mxu0 %v8319_v44  ;;  %3326 = vmatprep.subr.bf16.mxu1 %v8446_v30  ;;  %v1842_v44 = vld [vmem:[#allocation8 + $0x728] sm:$0xff]  ;;  %v1703_v30 = vld [vmem:[#allocation8 + $0x2d0] sm:$0xff] }
 0x202   :  { %3371 = vmatprep.subr.bf16.mxu0 %v8312_v31  ;;  %v1707_v31 = vld [vmem:[#allocation8 + $0x2f0] sm:$0xff]  ;;  %v8510_v46 = vcombine.high %v1838_v43, %v1842_v44  ;;  %v8509_v52 = vcombine.low %v1838_v43, %v1842_v44 }
 0x203   :  { %v8376_v47 = vcombine.high %v1703_v30, %v1707_v31  ;;  %v8375_v53 = vcombine.low %v1703_v30, %v1707_v31  ;;  %v1775_v31 = vld [vmem:[#allocation8 + $0x510] sm:$0xff] }
 0x204   :  { %3327 = vmatpush1.bf16.msra.mxu1 %v8445_v48  ;;  %v1830_v48 = vld [vmem:[#allocation8 + $0x6c8] sm:$0xff] }
 0x205   :  { %3372 = vmatpush1.bf16.msra.mxu0 %v8311_v49  ;;  %3328 = vmatprep.subr.bf16.mxu1 %v8438_v50  ;;  %v1834_v49 = vld [vmem:[#allocation8 + $0x6e8] sm:$0xff]  ;;  %v1695_v50 = vld [vmem:[#allocation8 + $0x290] sm:$0xff] }
 0x206   :  { %3373 = vmatprep.subr.bf16.mxu0 %v8304_v51  ;;  %v1699_v51 = vld [vmem:[#allocation8 + $0x2b0] sm:$0xff]  ;;  %v8502_v55 = vcombine.high %v1830_v48, %v1834_v49  ;;  %v8501_v63 = vcombine.low %v1830_v48, %v1834_v49 }
 0x207   :  { %v8368_v58 = vcombine.high %v1695_v50, %v1699_v51  ;;  %v8367_v0 = vcombine.low %v1695_v50, %v1699_v51  ;;  %v1767_v51 = vld [vmem:[#allocation8 + $0x4d0] sm:$0xff] }
 0x208   :  { %3329 = vmatpush1.bf16.msra.mxu1 %v8437_v59  ;;  %v1822_v59 = vld [vmem:[#allocation8 + $0x688] sm:$0xff] }
 0x209   :  { %3374 = vmatpush1.bf16.msra.mxu0 %v8303_v60  ;;  %3330 = vmatprep.subr.bf16.mxu1 %v8430_v61  ;;  %v1826_v60 = vld [vmem:[#allocation8 + $0x6a8] sm:$0xff]  ;;  %v1687_v61 = vld [vmem:[#allocation8 + $0x250] sm:$0xff] }
 0x20a   :  { %3375 = vmatprep.subr.bf16.mxu0 %v8296_v62  ;;  %v1691_v62 = vld [vmem:[#allocation8 + $0x270] sm:$0xff]  ;;  %v8494_v1 = vcombine.high %v1822_v59, %v1826_v60  ;;  %v8493_v7 = vcombine.low %v1822_v59, %v1826_v60 }
 0x20b   :  { %v8360_v2 = vcombine.high %v1687_v61, %v1691_v62  ;;  %v8359_v54 = vcombine.low %v1687_v61, %v1691_v62  ;;  %v1759_v62 = vld [vmem:[#allocation8 + $0x490] sm:$0xff] }
 0x20c   :  { %3331 = vmatpush1.bf16.msra.mxu1 %v8429_v3  ;;  %v1814_v3 = vld [vmem:[#allocation8 + $0x648] sm:$0xff] }
 0x20d   :  { %3376 = vmatpush1.bf16.msra.mxu0 %v8295_v4  ;;  %3332 = vmatprep.subr.bf16.mxu1 %v8422_v5  ;;  %v1818_v4 = vld [vmem:[#allocation8 + $0x668] sm:$0xff]  ;;  %v1679_v5 = vld [vmem:[#allocation8 + $0x210] sm:$0xff] }
 0x20e   :  { %3377 = vmatprep.subr.bf16.mxu0 %v8288_v6  ;;  %v1683_v6 = vld [vmem:[#allocation8 + $0x230] sm:$0xff]  ;;  %v8486_v39 = vcombine.high %v1814_v3, %v1818_v4  ;;  %v8485_v14 = vcombine.low %v1814_v3, %v1818_v4 }
 0x20f   :  { %v8352_v41 = vcombine.high %v1679_v5, %v1683_v6  ;;  %v8351_v15 = vcombine.low %v1679_v5, %v1683_v6  ;;  %v1751_v6 = vld [vmem:[#allocation8 + $0x450] sm:$0xff] }
 0x210   :  { %3333 = vmatpush1.bf16.msra.mxu1 %v8421_v8  ;;  %v1806_v8 = vld [vmem:[#allocation8 + $0x608] sm:$0xff] }
 0x211   :  { %3378 = vmatpush1.bf16.msra.mxu0 %v8287_v9  ;;  %3334 = vmatprep.subr.bf16.mxu1 %v8414_v10  ;;  %v1810_v9 = vld [vmem:[#allocation8 + $0x628] sm:$0xff]  ;;  %v1672_v10 = vld [vmem:[#allocation8 + $0x1d8] sm:$0xff] }
 0x212   :  { %3379 = vmatprep.subr.bf16.mxu0 %v8408_v11  ;;  %v1676_v11 = vld [vmem:[#allocation8 + $0x1f8] sm:$0xff]  ;;  %v8478_v16 = vcombine.high %v1806_v8, %v1810_v9  ;;  %v8477_v24 = vcombine.low %v1806_v8, %v1810_v9 }
 0x213   :  { %v8346_v17 = vcombine.high %v1672_v10, %v1676_v11  ;;  %v8345_v26 = vcombine.low %v1672_v10, %v1676_v11  ;;  %v1743_v11 = vld [vmem:[#allocation8 + $0x410] sm:$0xff] }
 0x214   :  { %3335 = vmatpush1.bf16.msra.mxu1 %v8413_v18  ;;  %v1799_v18 = vld [vmem:[#allocation8 + $0x5d0] sm:$0xff] }
 0x215   :  { %3380 = vmatpush2.bf16.msra.mxu0 %v8407_v19  ;;  %3336 = vmatprep.subr.bf16.mxu1 %v8534_v20  ;;  %v1803_v19 = vld [vmem:[#allocation8 + $0x5f0] sm:$0xff]  ;;  %v1664_v20 = vld [vmem:[#allocation8 + $0x198] sm:$0xff] }
 0x216   :  { %3381 = vmatprep.subr.bf16.mxu0 %v8400_v23  ;;  %v1668_v23 = vld [vmem:[#allocation8 + $0x1b8] sm:$0xff]  ;;  %v8472_v27 = vcombine.high %v1799_v18, %v1803_v19  ;;  %v8471_v35 = vcombine.low %v1799_v18, %v1803_v19 }
 0x217   :  { %v8338_v28 = vcombine.high %v1664_v20, %v1668_v23  ;;  %v8337_v36 = vcombine.low %v1664_v20, %v1668_v23  ;;  %v1863_v23 = vld [vmem:[#allocation8 + $0x7d0] sm:$0xff] }
 0x218   :  { %3337 = vmatpush2.bf16.msra.mxu1 %v8533_v29  ;;  %v1791_v29 = vld [vmem:[#allocation8 + $0x590] sm:$0xff] }
 0x219   :  { %3382 = vmatpush2.bf16.msra.mxu0 %v8399_v32  ;;  %3338 = vmatprep.subr.bf16.mxu1 %v8526_v34  ;;  %v1795_v32 = vld [vmem:[#allocation8 + $0x5b0] sm:$0xff]  ;;  %v1656_v34 = vld [vmem:[#allocation8 + $0x158] sm:$0xff] }
 0x21a   :  { %3383 = vmatprep.subr.bf16.mxu0 %v8392_v12  ;;  %v1660_v12 = vld [vmem:[#allocation8 + $0x178] sm:$0xff]  ;;  %v8464_v37 = vcombine.high %v1791_v29, %v1795_v32  ;;  %v8463_v43 = vcombine.low %v1791_v29, %v1795_v32 }
 0x21b   :  { %v8330_v38 = vcombine.high %v1656_v34, %v1660_v12  ;;  %v8329_v44 = vcombine.low %v1656_v34, %v1660_v12  ;;  %v1855_v12 = vld [vmem:[#allocation8 + $0x790] sm:$0xff] }
 0x21c   :  { %3339 = vmatpush2.bf16.msra.mxu1 %v8525_v13  ;;  %v1783_v13 = vld [vmem:[#allocation8 + $0x550] sm:$0xff] }
 0x21d   :  { %3384 = vmatpush2.bf16.msra.mxu0 %v8391_v22  ;;  %3340 = vmatprep.subr.bf16.mxu1 %v8518_v40  ;;  %v1787_v22 = vld [vmem:[#allocation8 + $0x570] sm:$0xff]  ;;  %v1648_v40 = vld [vmem:[#allocation8 + $0x118] sm:$0xff] }
 0x21e   :  { %3385 = vmatprep.subr.bf16.mxu0 %v8384_v42  ;;  %v1652_v42 = vld [vmem:[#allocation8 + $0x138] sm:$0xff]  ;;  %v8456_v30 = vcombine.high %v1783_v13, %v1787_v22 }
 0x21f   :  { %v8321_v48 = vcombine.low %v1648_v40, %v1652_v42 }
 0x220   :  { %3341 = vmatpush2.bf16.msra.mxu1 %v8517_v33  ;;  %v1779_v33 = vld [vmem:[#allocation8 + $0x530] sm:$0xff] }
 0x221   :  { %3386 = vmatpush2.bf16.msra.mxu0 %v8383_v45  ;;  %3342 = vmatprep.subr.bf16.mxu1 %v8510_v46  ;;  %v1640_v45 = vld [vmem:[#allocation8 + $0xd8] sm:$0xff]  ;;  %v8448_v49 = vcombine.high %v1775_v31, %v1779_v33 }
 0x222   :  { %3387 = vmatprep.subr.bf16.mxu0 %v8376_v47  ;;  %v1644_v46 = vld [vmem:[#allocation8 + $0xf8] sm:$0xff]  ;;  %v8455_v47 = vcombine.low %v1783_v13, %v1787_v22 }
 0x223   :  { %v8314_v50 = vcombine.high %v1640_v45, %v1644_v46  ;;  %v8313_v59 = vcombine.low %v1640_v45, %v1644_v46  ;;  %v1839_v46 = vld [vmem:[#allocation8 + $0x710] sm:$0xff] }
 0x224   :  { %3343 = vmatpush2.bf16.msra.mxu1 %v8509_v52  ;;  %v1771_v52 = vld [vmem:[#allocation8 + $0x4f0] sm:$0xff] }
 0x225   :  { %3388 = vmatpush2.bf16.msra.mxu0 %v8375_v53  ;;  %3344 = vmatprep.subr.bf16.mxu1 %v8502_v55  ;;  %v1632_v53 = vld [vmem:[#allocation8 + $0x98] sm:$0xff]  ;;  %v8440_v60 = vcombine.high %v1767_v51, %v1771_v52 }
 0x226   :  { %3389 = vmatprep.subr.bf16.mxu0 %v8368_v58  ;;  %v1636_v55 = vld [vmem:[#allocation8 + $0xb8] sm:$0xff]  ;;  %v8447_v58 = vcombine.low %v1775_v31, %v1779_v33 }
 0x227   :  { %v8306_v61 = vcombine.high %v1632_v53, %v1636_v55  ;;  %v8305_v3 = vcombine.low %v1632_v53, %v1636_v55  ;;  %v1831_v55 = vld [vmem:[#allocation8 + $0x6d0] sm:$0xff] }
 0x228   :  { %3345 = vmatpush2.bf16.msra.mxu1 %v8501_v63  ;;  %v1763_v63 = vld [vmem:[#allocation8 + $0x4b0] sm:$0xff] }
 0x229   :  { %3390 = vmatpush2.bf16.msra.mxu0 %v8367_v0  ;;  %3346 = vmatprep.subr.bf16.mxu1 %v8494_v1  ;;  %v1624_v0 = vld [vmem:[#allocation8 + $0x58] sm:$0xff]  ;;  %v8432_v4 = vcombine.high %v1759_v62, %v1763_v63 }
 0x22a   :  { %3391 = vmatprep.subr.bf16.mxu0 %v8360_v2  ;;  %v1628_v1 = vld [vmem:[#allocation8 + $0x78] sm:$0xff]  ;;  %v8439_v2 = vcombine.low %v1767_v51, %v1771_v52 }
 0x22b   :  { %v8298_v5 = vcombine.high %v1624_v0, %v1628_v1  ;;  %v8297_v8 = vcombine.low %v1624_v0, %v1628_v1  ;;  %v1823_v1 = vld [vmem:[#allocation8 + $0x690] sm:$0xff] }
 0x22c   :  { %3347 = vmatpush2.bf16.msra.mxu1 %v8493_v7  ;;  %v1755_v7 = vld [vmem:[#allocation8 + $0x470] sm:$0xff] }
 0x22d   :  { %3392 = vmatpush2.bf16.msra.mxu0 %v8359_v54  ;;  %3348 = vmatprep.subr.bf16.mxu1 %v8486_v39  ;;  %v1616_v54 = vld [vmem:[#allocation8 + $0x18] sm:$0xff]  ;;  %v8424_v9 = vcombine.high %v1751_v6, %v1755_v7 }
 0x22e   :  { %3393 = vmatprep.subr.bf16.mxu0 %v8352_v41  ;;  %v1620_v39 = vld [vmem:[#allocation8 + $0x38] sm:$0xff]  ;;  %v8431_v41 = vcombine.low %v1759_v62, %v1763_v63 }
 0x22f   :  { %v8290_v10 = vcombine.high %v1616_v54, %v1620_v39  ;;  %v8289_v18 = vcombine.low %v1616_v54, %v1620_v39  ;;  %v1815_v39 = vld [vmem:[#allocation8 + $0x650] sm:$0xff] }
 0x230   :  { %3349 = vmatpush2.bf16.msra.mxu1 %v8485_v14  ;;  %v1747_v14 = vld [vmem:[#allocation8 + $0x430] sm:$0xff] }
 0x231   :  { %3394 = vmatpush2.bf16.msra.mxu0 %v8351_v15  ;;  %3350 = vmatprep.subr.bf16.mxu1 %v8478_v16  ;;  %v1736_v15 = vld [vmem:[#allocation8 + $0x3d8] sm:$0xff]  ;;  %v8416_v19 = vcombine.high %v1743_v11, %v1747_v14 }
 0x232   :  { %3449 = vmatprep.subr.bf16.mxu0 %v8346_v17  ;;  %v1740_v16 = vld [vmem:[#allocation8 + $0x3f8] sm:$0xff]  ;;  %v8423_v17 = vcombine.low %v1751_v6, %v1755_v7 }
 0x233   :  { %v8410_v20 = vcombine.high %v1736_v15, %v1740_v16  ;;  %v8409_v29 = vcombine.low %v1736_v15, %v1740_v16  ;;  %v1807_v16 = vld [vmem:[#allocation8 + $0x610] sm:$0xff] }
 0x234   :  { %3351 = vmatpush2.bf16.msra.mxu1 %v8477_v24  ;;  %3396 = vmatmul.mubr.bf16.vlgmr.msra.gmra.mxu0 %v9893_v57  ;;  %v1867_v24 = vld [vmem:[#allocation8 + $0x7f0] sm:$0xff] }
 0x235   :  { %3450 = vmatpush1.bf16.msra.mxu0 %v8345_v26  ;;  %3481 = vmatprep.mubr.bf16.mxu0 %v9891_v56  ;;  %v8322_v56 = vcombine.high %v1648_v40, %v1652_v42  ;;  %v1728_v26 = vld [vmem:[#allocation8 + $0x398] sm:$0xff]  ;;  %v8536_v32 = vcombine.high %v1863_v23, %v1867_v24  ;;  %v1847_v42 = vld [vmem:[#allocation8 + $0x750] sm:$0xff] }
 0x236   :  { %3406 = vmatprep.subr.bf16.mxu1 %v8472_v27  ;;  %3451 = vmatprep.subr.bf16.mxu0 %v8338_v28  ;;  %v1732_v27 = vld [vmem:[#allocation8 + $0x3b8] sm:$0xff]  ;;  %v8415_v28 = vcombine.low %v1743_v11, %v1747_v14 }
 0x237   :  { %3353 = vmatmul.mubr.bf16.vlgmr.msra.gmra.mxu1 %v9904_v25  ;;  %v8402_v34 = vcombine.high %v1728_v26, %v1732_v27  ;;  %v8401_v13 = vcombine.low %v1728_v26, %v1732_v27  ;;  %v1800_v26 = vld [vmem:[#allocation8 + $0x5d8] sm:$0xff] }
 0x238   :  { %3407 = vmatpush1.bf16.msra.mxu1 %v8471_v35  ;;  %3438 = vmatprep.mubr.bf16.mxu1 %v9901_v21  ;;  %v1859_v35 = vld [vmem:[#allocation8 + $0x7b0] sm:$0xff]  ;;  %v1804_v27 = vld [vmem:[#allocation8 + $0x5f8] sm:$0xff] }
 0x239   :  { %3452 = vmatpush1.bf16.msra.mxu0 %v8337_v36  ;;  %3408 = vmatprep.subr.bf16.mxu1 %v8464_v37  ;;  %v1720_v36 = vld [vmem:[#allocation8 + $0x358] sm:$0xff]  ;;  %v8528_v22 = vcombine.high %v1855_v12, %v1859_v35 }
 0x23a   :  { %3453 = vmatprep.subr.bf16.mxu0 %v8330_v38  ;;  %v1724_v37 = vld [vmem:[#allocation8 + $0x378] sm:$0xff]  ;;  %v8535_v38 = vcombine.low %v1863_v23, %v1867_v24 }
 0x23b   :  { %v8394_v40 = vcombine.high %v1720_v36, %v1724_v37  ;;  %v8393_v31 = vcombine.low %v1720_v36, %v1724_v37  ;;  %v1792_v36 = vld [vmem:[#allocation8 + $0x598] sm:$0xff] }
 0x23c   :  { %3409 = vmatpush1.bf16.msra.mxu1 %v8463_v43  ;;  %v1851_v43 = vld [vmem:[#allocation8 + $0x770] sm:$0xff]  ;;  %v1796_v37 = vld [vmem:[#allocation8 + $0x5b8] sm:$0xff] }
 0x23d   :  { %3454 = vmatpush1.bf16.msra.mxu0 %v8329_v44  ;;  %3410 = vmatprep.subr.bf16.mxu1 %v8456_v30  ;;  %v1712_v44 = vld [vmem:[#allocation8 + $0x318] sm:$0xff]  ;;  %v8520_v33 = vcombine.high %v1847_v42, %v1851_v43 }
 0x23e   :  { %3455 = vmatprep.subr.bf16.mxu0 %v8322_v56  ;;  %v1716_v30 = vld [vmem:[#allocation8 + $0x338] sm:$0xff]  ;;  %v8527_v56 = vcombine.low %v1855_v12, %v1859_v35  ;;  %v8474_v12 = vcombine.high %v1800_v26, %v1804_v27 }
 0x23f   :  { %v8386_v45 = vcombine.high %v1712_v44, %v1716_v30  ;;  %v8385_v51 = vcombine.low %v1712_v44, %v1716_v30  ;;  %v1784_v44 = vld [vmem:[#allocation8 + $0x558] sm:$0xff] }
 0x240   :  { %3411 = vmatpush1.bf16.msra.mxu1 %v8455_v47  ;;  %v1843_v47 = vld [vmem:[#allocation8 + $0x730] sm:$0xff]  ;;  %v1788_v30 = vld [vmem:[#allocation8 + $0x578] sm:$0xff] }
 0x241   :  { %3456 = vmatpush1.bf16.msra.mxu0 %v8321_v48  ;;  %3412 = vmatprep.subr.bf16.mxu1 %v8448_v49  ;;  %v1704_v48 = vld [vmem:[#allocation8 + $0x2d8] sm:$0xff]  ;;  %v8512_v52 = vcombine.high %v1839_v46, %v1843_v47 }
 0x242   :  { %3457 = vmatprep.subr.bf16.mxu0 %v8314_v50  ;;  %v1708_v49 = vld [vmem:[#allocation8 + $0x2f8] sm:$0xff]  ;;  %v8519_v50 = vcombine.low %v1847_v42, %v1851_v43  ;;  %v8466_v42 = vcombine.high %v1792_v36, %v1796_v37 }
 0x243   :  { %v8378_v53 = vcombine.high %v1704_v48, %v1708_v49  ;;  %v8377_v62 = vcombine.low %v1704_v48, %v1708_v49  ;;  %v1780_v48 = vld [vmem:[#allocation8 + $0x538] sm:$0xff] }
 0x244   :  { %3413 = vmatpush1.bf16.msra.mxu1 %v8447_v58  ;;  %v1835_v58 = vld [vmem:[#allocation8 + $0x6f0] sm:$0xff] }
 0x245   :  { %3458 = vmatpush1.bf16.msra.mxu0 %v8313_v59  ;;  %3414 = vmatprep.subr.bf16.mxu1 %v8440_v60  ;;  %v1696_v59 = vld [vmem:[#allocation8 + $0x298] sm:$0xff]  ;;  %v8504_v63 = vcombine.high %v1831_v55, %v1835_v58 }
 0x246   :  { %3459 = vmatprep.subr.bf16.mxu0 %v8306_v61  ;;  %v1700_v60 = vld [vmem:[#allocation8 + $0x2b8] sm:$0xff]  ;;  %v8511_v61 = vcombine.low %v1839_v46, %v1843_v47  ;;  %v8458_v46 = vcombine.high %v1784_v44, %v1788_v30 }
 0x247   :  { %v8370_v0 = vcombine.high %v1696_v59, %v1700_v60  ;;  %v8369_v6 = vcombine.low %v1696_v59, %v1700_v60  ;;  %v1776_v47 = vld [vmem:[#allocation8 + $0x518] sm:$0xff]  ;;  %v3575_v60 = vld [vmem:[#allocation11 + $0x80] sm:$0xff] }
 0x248   :  { %3415 = vmatpush1.bf16.msra.mxu1 %v8439_v2  ;;  %v1827_v2 = vld [vmem:[#allocation8 + $0x6b0] sm:$0xff]  ;;  %v1772_v59 = vld [vmem:[#allocation8 + $0x4f8] sm:$0xff] }
 0x249   :  { %3460 = vmatpush1.bf16.msra.mxu0 %v8305_v3  ;;  %3416 = vmatprep.subr.bf16.mxu1 %v8432_v4  ;;  %v1688_v3 = vld [vmem:[#allocation8 + $0x258] sm:$0xff]  ;;  %v8496_v7 = vcombine.high %v1823_v1, %v1827_v2 }
 0x24a   :  { %3461 = vmatprep.subr.bf16.mxu0 %v8298_v5  ;;  %v1692_v4 = vld [vmem:[#allocation8 + $0x278] sm:$0xff]  ;;  %v8503_v5 = vcombine.low %v1831_v55, %v1835_v58 }
 0x24b   :  { %v8362_v54 = vcombine.high %v1688_v3, %v1692_v4  ;;  %v8361_v11 = vcombine.low %v1688_v3, %v1692_v4  ;;  %v1768_v58 = vld [vmem:[#allocation8 + $0x4d8] sm:$0xff]  ;;  %v3567_v4 = vld [vmem:[#allocation11 + $0x40] sm:$0xff] }
 0x24c   :  { %3417 = vmatpush1.bf16.msra.mxu1 %v8431_v41  ;;  %v1819_v41 = vld [vmem:[#allocation8 + $0x670] sm:$0xff] }
 0x24d   :  { %3462 = vmatpush1.bf16.msra.mxu0 %v8297_v8  ;;  %3418 = vmatprep.subr.bf16.mxu1 %v8424_v9  ;;  %v1680_v8 = vld [vmem:[#allocation8 + $0x218] sm:$0xff]  ;;  %v8488_v14 = vcombine.high %v1815_v39, %v1819_v41 }
 0x24e   :  { %3463 = vmatprep.subr.bf16.mxu0 %v8290_v10  ;;  %v1684_v9 = vld [vmem:[#allocation8 + $0x238] sm:$0xff]  ;;  %v8495_v10 = vcombine.low %v1823_v1, %v1827_v2 }
 0x24f   :  { %v8354_v15 = vcombine.high %v1680_v8, %v1684_v9  ;;  %v8353_v23 = vcombine.low %v1680_v8, %v1684_v9  ;;  %v1760_v1 = vld [vmem:[#allocation8 + $0x498] sm:$0xff]  ;;  %v3559_v9 = vld [vmem:[#allocation11] sm:$0xff] }
 0x250   :  { %3419 = vmatpush1.bf16.msra.mxu1 %v8423_v17  ;;  %v1811_v17 = vld [vmem:[#allocation8 + $0x630] sm:$0xff]  ;;  %v1764_v2 = vld [vmem:[#allocation8 + $0x4b8] sm:$0xff] }
 0x251   :  { %3464 = vmatpush1.bf16.msra.mxu0 %v8289_v18  ;;  %3420 = vmatprep.subr.bf16.mxu1 %v8416_v19  ;;  %v3615_v18 = vld [vmem:[#allocation11 + $0x1c0] sm:$0xff]  ;;  %v8480_v24 = vcombine.high %v1807_v16, %v1811_v17 }
 0x252   :  { %3465 = vmatprep.subr.bf16.mxu0 %v8410_v20  ;;  %v3619_v19 = vld [vmem:[#allocation11 + $0x1e0] sm:$0xff]  ;;  %v8487_v20 = vcombine.low %v1815_v39, %v1819_v41  ;;  %v1752_v39 = vld [vmem:[#allocation8 + $0x458] sm:$0xff] }
 0x253   :  { %v8595_v35 = vcombine.low %v3615_v18, %v3619_v19  ;;  %v1756_v41 = vld [vmem:[#allocation8 + $0x478] sm:$0xff] }
 0x254   :  { %3421 = vmatpush1.bf16.msra.mxu1 %v8415_v28  ;;  %v8596_v28 = vcombine.high %v3615_v18, %v3619_v19  ;;  %v3679_v19 = vld [vmem:[#allocation11 + $0x3c0] sm:$0xff] }
 0x255   :  { %3466 = vmatpush2.bf16.msra.mxu0 %v8409_v29  ;;  %3422 = vmatprep.subr.bf16.mxu1 %v8536_v32  ;;  %v3607_v29 = vld [vmem:[#allocation11 + $0x180] sm:$0xff] }
 0x256   :  { %3467 = vmatprep.subr.bf16.mxu0 %v8402_v34  ;;  %v3611_v32 = vld [vmem:[#allocation11 + $0x1a0] sm:$0xff]  ;;  %v8479_v34 = vcombine.low %v1807_v16, %v1811_v17  ;;  %v1744_v16 = vld [vmem:[#allocation8 + $0x418] sm:$0xff] }
 0x257   :  { %v8587_v43 = vcombine.low %v3607_v29, %v3611_v32  ;;  %v1748_v17 = vld [vmem:[#allocation8 + $0x438] sm:$0xff] }
 0x258   :  { %3423 = vmatpush2.bf16.msra.mxu1 %v8535_v38  ;;  %v8588_v38 = vcombine.high %v3607_v29, %v3611_v32  ;;  %v3671_v32 = vld [vmem:[#allocation11 + $0x380] sm:$0xff] }
 0x259   :  { %3468 = vmatpush2.bf16.msra.mxu0 %v8401_v13  ;;  %3424 = vmatprep.subr.bf16.mxu1 %v8528_v22  ;;  %v3599_v13 = vld [vmem:[#allocation11 + $0x140] sm:$0xff] }
 0x25a   :  { %3469 = vmatprep.subr.bf16.mxu0 %v8394_v40  ;;  %v3603_v22 = vld [vmem:[#allocation11 + $0x160] sm:$0xff]  ;;  %v8473_v40 = vcombine.low %v1800_v26, %v1804_v27  ;;  %v1864_v27 = vld [vmem:[#allocation8 + $0x7d8] sm:$0xff] }
 0x25c   :  { %3425 = vmatpush2.bf16.msra.mxu1 %v8527_v56  ;;  %v8580_v56 = vcombine.high %v3599_v13, %v3603_v22 }
 0x25d   :  { %3470 = vmatpush2.bf16.msra.mxu0 %v8393_v31  ;;  %3426 = vmatprep.subr.bf16.mxu1 %v8520_v33  ;;  %v3591_v31 = vld [vmem:[#allocation11 + $0x100] sm:$0xff] }
 0x25e   :  { %3471 = vmatprep.subr.bf16.mxu0 %v8386_v45  ;;  %v3595_v33 = vld [vmem:[#allocation11 + $0x120] sm:$0xff]  ;;  %v8465_v45 = vcombine.low %v1792_v36, %v1796_v37  ;;  %v1856_v37 = vld [vmem:[#allocation8 + $0x798] sm:$0xff] }
 0x25f   :  { %v8572_v49 = vcombine.high %v3591_v31, %v3595_v33  ;;  %v8571_v55 = vcombine.low %v3591_v31, %v3595_v33  ;;  %v3655_v33 = vld [vmem:[#allocation11 + $0x300] sm:$0xff] }
 0x260   :  { %3427 = vmatpush2.bf16.msra.mxu1 %v8519_v50  ;;  %v3583_v50 = vld [vmem:[#allocation11 + $0xc0] sm:$0xff] }
 0x261   :  { %3472 = vmatpush2.bf16.msra.mxu0 %v8385_v51  ;;  %3428 = vmatprep.subr.bf16.mxu1 %v8512_v52  ;;  %v3587_v51 = vld [vmem:[#allocation11 + $0xe0] sm:$0xff]  ;;  %v8457_v52 = vcombine.low %v1784_v44, %v1788_v30  ;;  %v1848_v30 = vld [vmem:[#allocation8 + $0x758] sm:$0xff] }
 0x262   :  { %3473 = vmatprep.subr.bf16.mxu0 %v8378_v53  ;;  %v8450_v53 = vcombine.high %v1776_v47, %v1780_v48 }
 0x264   :  { %3429 = vmatpush2.bf16.msra.mxu1 %v8511_v61  ;;  %v3579_v61 = vld [vmem:[#allocation11 + $0xa0] sm:$0xff] }
 0x265   :  { %3474 = vmatpush2.bf16.msra.mxu0 %v8377_v62  ;;  %3430 = vmatprep.subr.bf16.mxu1 %v8504_v63  ;;  %v8449_v62 = vcombine.low %v1776_v47, %v1780_v48  ;;  %v8442_v63 = vcombine.high %v1768_v58, %v1772_v59  ;;  %v8556_v3 = vcombine.high %v3575_v60, %v3579_v61  ;;  %v1840_v48 = vld [vmem:[#allocation8 + $0x718] sm:$0xff] }
 0x266   :  { %3475 = vmatprep.subr.bf16.mxu0 %v8370_v0  ;;  %v8563_v0 = vcombine.low %v3583_v50, %v3587_v51 }
 0x268   :  { %3431 = vmatpush2.bf16.msra.mxu1 %v8503_v5  ;;  %v3571_v5 = vld [vmem:[#allocation11 + $0x60] sm:$0xff] }
 0x269   :  { %3476 = vmatpush2.bf16.msra.mxu0 %v8369_v6  ;;  %3432 = vmatprep.subr.bf16.mxu1 %v8496_v7  ;;  %v8441_v6 = vcombine.low %v1768_v58, %v1772_v59  ;;  %v8434_v7 = vcombine.high %v1760_v1, %v1764_v2  ;;  %v8548_v8 = vcombine.high %v3567_v4, %v3571_v5  ;;  %v1832_v59 = vld [vmem:[#allocation8 + $0x6d8] sm:$0xff] }
 0x26a   :  { %3477 = vmatprep.subr.bf16.mxu0 %v8362_v54  ;;  %v8555_v54 = vcombine.low %v3575_v60, %v3579_v61  ;;  %v3639_v61 = vld [vmem:[#allocation11 + $0x280] sm:$0xff] }
 0x26c   :  { %3433 = vmatpush2.bf16.msra.mxu1 %v8495_v10  ;;  %v3563_v10 = vld [vmem:[#allocation11 + $0x20] sm:$0xff] }
 0x26d   :  { %3478 = vmatpush2.bf16.msra.mxu0 %v8361_v11  ;;  %3434 = vmatprep.subr.bf16.mxu1 %v8488_v14  ;;  %v8433_v11 = vcombine.low %v1760_v1, %v1764_v2  ;;  %v8426_v14 = vcombine.high %v1752_v39, %v1756_v41  ;;  %v8540_v18 = vcombine.high %v3559_v9, %v3563_v10  ;;  %v1824_v2 = vld [vmem:[#allocation8 + $0x698] sm:$0xff] }
 0x26e   :  { %3479 = vmatprep.subr.bf16.mxu0 %v8354_v15  ;;  %v8547_v15 = vcombine.low %v3567_v4, %v3571_v5  ;;  %v8539_v26 = vcombine.low %v3559_v9, %v3563_v10  ;;  %v3631_v5 = vld [vmem:[#allocation11 + $0x240] sm:$0xff] }
 0x26f   :  { %v3623_v10 = vld [vmem:[#allocation11 + $0x200] sm:$0xff] }
 0x270   :  { %3435 = vmatpush2.bf16.msra.mxu1 %v8487_v20  ;;  %v3683_v20 = vld [vmem:[#allocation11 + $0x3e0] sm:$0xff] }
 0x271   :  { %3480 = vmatpush2.bf16.msra.mxu0 %v8353_v23  ;;  %3436 = vmatprep.subr.bf16.mxu1 %v8480_v24  ;;  %v8425_v23 = vcombine.low %v1752_v39, %v1756_v41  ;;  %v8418_v24 = vcombine.high %v1744_v16, %v1748_v17  ;;  %v8660_v29 = vcombine.high %v3679_v19, %v3683_v20  ;;  %v1816_v41 = vld [vmem:[#allocation8 + $0x658] sm:$0xff] }
 0x272   :  { %6673 = vmatprep.subr.bf16.mxu0 %v8596_v28  ;;  %v1868_v28 = vld [vmem:[#allocation8 + $0x7f8] sm:$0xff]  ;;  %v8659_v36 = vcombine.low %v3679_v19, %v3683_v20  ;;  %v1871_v20 = vlaneseq }
 0x274   :  { %3437 = vmatpush2.bf16.msra.mxu1 %v8479_v34  ;;  %3482 = vmatmul.mubr.bf16.vlgmr.msra.gmra.mxu0 %v9893_v57  ;;  %v8579_v57 = vcombine.low %v3599_v13, %v3603_v22  ;;  %v3675_v34 = vld [vmem:[#allocation11 + $0x3a0] sm:$0xff] }
 0x275   :  { %3492 = vmatprep.subr.bf16.mxu1 %v8474_v12  ;;  %6674 = vmatpush1.bf16.msra.mxu0 %v8595_v35  ;;  %v8417_v12 = vcombine.low %v1744_v16, %v1748_v17  ;;  %v8538_v35 = vcombine.high %v1864_v27, %v1868_v28  ;;  %v8652_v13 = vcombine.high %v3671_v32, %v3675_v34  ;;  %v3663_v22 = vld [vmem:[#allocation11 + $0x340] sm:$0xff]  ;;  %v1808_v17 = vld [vmem:[#allocation8 + $0x618] sm:$0xff] }
 0x276   :  { %6675 = vmatprep.subr.bf16.mxu0 %v8588_v38  ;;  %v1860_v38 = vld [vmem:[#allocation8 + $0x7b8] sm:$0xff]  ;;  %v8651_v44 = vcombine.low %v3671_v32, %v3675_v34  ;;  %v3743_v32 = vld [vmem:[#allocation11 + $0x5c0] sm:$0xff] }
 0x277   :  { %3439 = vmatmul.mubr.bf16.vlgmr.msra.gmra.mxu1 %v9904_v25  ;;  %v3747_v34 = vld [vmem:[#allocation11 + $0x5e0] sm:$0xff] }
 0x278   :  { %3493 = vmatpush1.bf16.msra.mxu1 %v8473_v40  ;;  %3524 = vmatprep.mubr.bf16.mxu1 %v9901_v21  ;;  %v8564_v21 = vcombine.high %v3583_v50, %v3587_v51  ;;  %v3667_v40 = vld [vmem:[#allocation11 + $0x360] sm:$0xff] }
 0x279   :  { %3494 = vmatprep.subr.bf16.mxu1 %v8466_v42  ;;  %6676 = vmatpush1.bf16.msra.mxu0 %v8587_v43  ;;  %v8537_v42 = vcombine.low %v1864_v27, %v1868_v28  ;;  %v8530_v43 = vcombine.high %v1856_v37, %v1860_v38  ;;  %v8644_v31 = vcombine.high %v3663_v22, %v3667_v40  ;;  %v3647_v51 = vld [vmem:[#allocation11 + $0x2c0] sm:$0xff]  ;;  %v3225_v27 = vpop.f32.mrf.mxu0 }
 0x27a   :  { %6677 = vmatprep.subr.bf16.mxu0 %v8580_v56  ;;  %v1852_v56 = vld [vmem:[#allocation8 + $0x778] sm:$0xff]  ;;  %v8643_v47 = vcombine.low %v3663_v22, %v3667_v40  ;;  %v3735_v22 = vld [vmem:[#allocation11 + $0x580] sm:$0xff] }
 0x27b   :  { %v3739_v40 = vld [vmem:[#allocation11 + $0x5a0] sm:$0xff] }
 0x27c   :  { %3495 = vmatpush1.bf16.msra.mxu1 %v8465_v45  ;;  %v3659_v45 = vld [vmem:[#allocation11 + $0x320] sm:$0xff] }
 0x27d   :  { %3496 = vmatprep.subr.bf16.mxu1 %v8458_v46  ;;  %6678 = vmatpush1.bf16.msra.mxu0 %v8579_v57  ;;  %v8529_v46 = vcombine.low %v1856_v37, %v1860_v38  ;;  %v8522_v57 = vcombine.high %v1848_v30, %v1852_v56  ;;  %v8636_v50 = vcombine.high %v3655_v33, %v3659_v45  ;;  %v3227_v37 = vpop.f32.mrf.mxu0 }
 0x27e   :  { %6679 = vmatprep.subr.bf16.mxu0 %v8572_v49  ;;  %v1844_v49 = vld [vmem:[#allocation8 + $0x738] sm:$0xff]  ;;  %v8635_v58 = vcombine.low %v3655_v33, %v3659_v45  ;;  %v8724_v38 = vcombine.high %v3743_v32, %v3747_v34  ;;  %v3727_v33 = vld [vmem:[#allocation11 + $0x540] sm:$0xff] }
 0x27f   :  { %v3731_v45 = vld [vmem:[#allocation11 + $0x560] sm:$0xff] }
 0x280   :  { %3497 = vmatpush1.bf16.msra.mxu1 %v8457_v52  ;;  %v3651_v52 = vld [vmem:[#allocation11 + $0x2e0] sm:$0xff] }
 0x281   :  { %3498 = vmatprep.subr.bf16.mxu1 %v8450_v53  ;;  %6680 = vmatpush1.bf16.msra.mxu0 %v8571_v55  ;;  %v8521_v53 = vcombine.low %v1848_v30, %v1852_v56  ;;  %v8514_v55 = vcombine.high %v1840_v48, %v1844_v49  ;;  %v8628_v60 = vcombine.high %v3647_v51, %v3651_v52  ;;  %v3229_v30 = vpop.f32.mrf.mxu0 }
 0x282   :  { %6681 = vmatprep.subr.bf16.mxu0 %v8564_v21  ;;  %v1836_v21 = vld [vmem:[#allocation8 + $0x6f8] sm:$0xff]  ;;  %v8627_v1 = vcombine.low %v3647_v51, %v3651_v52  ;;  %v8716_v56 = vcombine.high %v3735_v22, %v3739_v40 }
 0x284   :  { %3499 = vmatpush1.bf16.msra.mxu1 %v8449_v62  ;;  %v3643_v62 = vld [vmem:[#allocation11 + $0x2a0] sm:$0xff] }
 0x285   :  { %3500 = vmatprep.subr.bf16.mxu1 %v8442_v63  ;;  %6682 = vmatpush1.bf16.msra.mxu0 %v8563_v0  ;;  %v8513_v63 = vcombine.low %v1840_v48, %v1844_v49  ;;  %v8506_v0 = vcombine.high %v1832_v59, %v1836_v21  ;;  %v8620_v4 = vcombine.high %v3639_v61, %v3643_v62  ;;  %v3231_v48 = vpop.f32.mrf.mxu0 }
 0x286   :  { %6683 = vmatprep.subr.bf16.mxu0 %v8556_v3  ;;  %v1828_v3 = vld [vmem:[#allocation8 + $0x6b8] sm:$0xff]  ;;  %v8619_v39 = vcombine.low %v3639_v61, %v3643_v62  ;;  %v8707_v62 = vcombine.low %v3727_v33, %v3731_v45 }
 0x288   :  { %3501 = vmatpush1.bf16.msra.mxu1 %v8441_v6  ;;  %v3635_v6 = vld [vmem:[#allocation11 + $0x260] sm:$0xff] }
 0x289   :  { %3502 = vmatprep.subr.bf16.mxu1 %v8434_v7  ;;  %6684 = vmatpush1.bf16.msra.mxu0 %v8555_v54  ;;  %v8505_v7 = vcombine.low %v1832_v59, %v1836_v21  ;;  %v8498_v54 = vcombine.high %v1824_v2, %v1828_v3  ;;  %v8612_v9 = vcombine.high %v3631_v5, %v3635_v6 }
 0x28a   :  { %6685 = vmatprep.subr.bf16.mxu0 %v8548_v8  ;;  %v1820_v8 = vld [vmem:[#allocation8 + $0x678] sm:$0xff]  ;;  %v8611_v16 = vcombine.low %v3631_v5, %v3635_v6 }
 0x28c   :  { %3503 = vmatpush1.bf16.msra.mxu1 %v8433_v11  ;;  %v3627_v11 = vld [vmem:[#allocation11 + $0x220] sm:$0xff] }
 0x28d   :  { %3504 = vmatprep.subr.bf16.mxu1 %v8426_v14  ;;  %6686 = vmatpush1.bf16.msra.mxu0 %v8547_v15  ;;  %v8497_v14 = vcombine.low %v1824_v2, %v1828_v3  ;;  %v8490_v15 = vcombine.high %v1816_v41, %v1820_v8  ;;  %v8604_v19 = vcombine.high %v3623_v10, %v3627_v11  ;;  %v3711_v2 = vld [vmem:[#allocation11 + $0x4c0] sm:$0xff] }
 0x28e   :  { %6687 = vmatprep.subr.bf16.mxu0 %v8540_v18  ;;  %v1812_v18 = vld [vmem:[#allocation8 + $0x638] sm:$0xff]  ;;  %v3715_v3 = vld [vmem:[#allocation11 + $0x4e0] sm:$0xff] }
 0x28f   :  { %v8482_v28 = vcombine.high %v1808_v17, %v1812_v18 }
 0x290   :  { %3505 = vmatpush1.bf16.msra.mxu1 %v8425_v23  ;;  %v9920_v23 = vld [vmem:[#allocation11 + $0x9c0] sm:$0xff] }
 0x291   :  { %3506 = vmatprep.subr.bf16.mxu1 %v8418_v24  ;;  %6688 = vmatpush1.bf16.msra.mxu0 %v8539_v26  ;;  %v9922_v24 = vld [vmem:[#allocation11 + $0x9e0] sm:$0xff]  ;;  %v8489_v26 = vcombine.low %v1816_v41, %v1820_v8  ;;  %v8692_v8 = vcombine.high %v3711_v2, %v3715_v3 }
 0x292   :  { %6689 = vmatprep.subr.bf16.mxu0 %v8660_v29  ;;  %v8603_v29 = vcombine.low %v3623_v10, %v3627_v11  ;;  %v3703_v11 = vld [vmem:[#allocation11 + $0x480] sm:$0xff] }
 0x294   :  { %3507 = vmatpush1.bf16.msra.mxu1 %v8417_v12  ;;  %v8852_v12 = vcombine.high %v9920_v23, %v9922_v24 }
 0x295   :  { %3508 = vmatprep.subr.bf16.mxu1 %v8538_v35  ;;  %6690 = vmatpush2.bf16.msra.mxu0 %v8659_v36  ;;  %v9926_v35 = vshrl.u32 %v1871_v20, 7  ;;  %v8481_v36 = vcombine.low %v1808_v17, %v1812_v18  ;;  %v8691_v20 = vcombine.low %v3711_v2, %v3715_v3  ;;  %v3815_v2 = vld [vmem:[#allocation11 + $0x800] sm:$0xff] }
 0x296   :  { %6691 = vmatprep.subr.bf16.mxu0 %v8652_v13  ;;  %v3819_v3 = vld [vmem:[#allocation11 + $0x820] sm:$0xff] }
 0x297   :  { %v1877_v13 = vsub.s32 1, %v9926_v35 }
 0x298   :  { %3509 = vmatpush2.bf16.msra.mxu1 %v8537_v42  ;;  %v1873_v42 = vsub.s32 0, %v9926_v35 }
 0x299   :  { %3510 = vmatprep.subr.bf16.mxu1 %v8530_v43  ;;  %6692 = vmatpush2.bf16.msra.mxu0 %v8651_v44  ;;  %v9930_v43 = vld [vmem:[#allocation9] sm:$0xff]  ;;  %v8723_v44 = vcombine.low %v3743_v32, %v3747_v34 }
 0x29a   :  { %6693 = vmatprep.subr.bf16.mxu0 %v8644_v31  ;;  %v1878_v31 = vrot.slane %v9930_v43, %v1877_v13 }
 0x29c   :  { %3511 = vmatpush2.bf16.msra.mxu1 %v8529_v46  ;;  %v1874_v46 = vrot.slane %v9930_v43, %v1873_v42  ;;  %v3228_v51 = vadd.f32 %v3227_v37, %v1878_v31  ;;  %v3232_v21 = vadd.f32 %v3231_v48, %v1878_v31  ;;  %v3843_v31 = vld [vmem:[#allocation11 + $0x8e0] sm:$0xff] }
 0x29d   :  { %3512 = vmatprep.subr.bf16.mxu1 %v8522_v57  ;;  %6694 = vmatpush2.bf16.msra.mxu0 %v8643_v47  ;;  %v8715_v47 = vcombine.low %v3735_v22, %v3739_v40  ;;  %v3691_v22 = vld [vmem:[#allocation11 + $0x420] sm:$0xff] }
 0x29e   :  { %6695 = vmatprep.subr.bf16.mxu0 %v8636_v50  ;;  %v8708_v50 = vcombine.high %v3727_v33, %v3731_v45  ;;  %v3230_v52 = vadd.f32 %v3229_v30, %v1874_v46  ;;  %v3807_v45 = vld [vmem:[#allocation11 + $0x7c0] sm:$0xff] }
 0x2a0   :  { %3513 = vmatpush2.bf16.msra.mxu1 %v8521_v53  ;;  %v3719_v53 = vld [vmem:[#allocation11 + $0x500] sm:$0xff] }
 0x2a1   :  { %3514 = vmatprep.subr.bf16.mxu1 %v8514_v55  ;;  %6696 = vmatpush2.bf16.msra.mxu0 %v8635_v58  ;;  %v3723_v55 = vld [vmem:[#allocation11 + $0x520] sm:$0xff]  ;;  %v3226_v58 = vadd.f32 %v3225_v27, %v1874_v46 }
 0x2a2   :  { %6697 = vmatprep.subr.bf16.mxu0 %v8628_v60  ;;  %v3859_v27 = vld [vmem:[#allocation11 + $0x960] sm:$0xff] }
 0x2a3   :  { %v3811_v46 = vld [vmem:[#allocation11 + $0x7e0] sm:$0xff] }
 0x2a4   :  { %3515 = vmatpush2.bf16.msra.mxu1 %v8513_v63 }
 0x2a5   :  { %3516 = vmatprep.subr.bf16.mxu1 %v8506_v0  ;;  %6698 = vmatpush2.bf16.msra.mxu0 %v8627_v1  ;;  %v8700_v0 = vcombine.high %v3719_v53, %v3723_v55 }
 0x2a6   :  { %6699 = vmatprep.subr.bf16.mxu0 %v8620_v4 }
 0x2a8   :  { %3517 = vmatpush2.bf16.msra.mxu1 %v8505_v7  ;;  %v8699_v7 = vcombine.low %v3719_v53, %v3723_v55  ;;  %v3803_v53 = vld [vmem:[#allocation11 + $0x7a0] sm:$0xff] }
 0x2a9   :  { %3518 = vmatprep.subr.bf16.mxu1 %v8498_v54  ;;  %6700 = vmatpush2.bf16.msra.mxu0 %v8619_v39  ;;  %v3863_v54 = vld [vmem:[#allocation11 + $0x980] sm:$0xff] }
 0x2aa   :  { %6701 = vmatprep.subr.bf16.mxu0 %v8612_v9  ;;  %v3867_v39 = vld [vmem:[#allocation11 + $0x9a0] sm:$0xff]  ;;  %v9939_v9 = vld [vmem:[#allocation11 + $0x1c8] sm:$0xff] }
 0x2ab   :  { %v8844_v18 = vcombine.high %v3863_v54, %v3867_v39 }
 0x2ac   :  { %3519 = vmatpush2.bf16.msra.mxu1 %v8497_v14  ;;  %v3707_v14 = vld [vmem:[#allocation11 + $0x4a0] sm:$0xff] }
 0x2ad   :  { %3520 = vmatprep.subr.bf16.mxu1 %v8490_v15  ;;  %6702 = vmatpush2.bf16.msra.mxu0 %v8611_v16  ;;  %v8851_v15 = vcombine.low %v9920_v23, %v9922_v24  ;;  %v9945_v16 = vld [vmem:[#allocation11 + $0x1e8] sm:$0xff]  ;;  %v3699_v23 = vld [vmem:[#allocation11 + $0x460] sm:$0xff]  ;;  %v8843_v24 = vcombine.low %v3863_v54, %v3867_v39  ;;  %v8683_v34 = vcombine.low %v3703_v11, %v3707_v14 }
 0x2ae   :  { %6703 = vmatprep.subr.bf16.mxu0 %v8604_v19  ;;  %v8597_v19 = vcombine.low %v9939_v9, %v9945_v16  ;;  %v8796_v54 = vcombine.high %v3815_v2, %v3819_v3 }
 0x2b0   :  { %3521 = vmatpush2.bf16.msra.mxu1 %v8489_v26  ;;  %v3855_v26 = vld [vmem:[#allocation11 + $0x940] sm:$0xff] }
 0x2b1   :  { %3522 = vmatprep.subr.bf16.mxu1 %v8482_v28  ;;  %6704 = vmatpush2.bf16.msra.mxu0 %v8603_v29  ;;  %v8684_v28 = vcombine.high %v3703_v11, %v3707_v14  ;;  %v3695_v29 = vld [vmem:[#allocation11 + $0x440] sm:$0xff]  ;;  %v8836_v32 = vcombine.high %v3855_v26, %v3859_v27  ;;  %v8835_v40 = vcombine.low %v3855_v26, %v3859_v27 }
 0x2b2   :  { %6759 = vmatprep.subr.bf16.mxu0 %v8852_v12  ;;  %v3847_v12 = vld [vmem:[#allocation11 + $0x900] sm:$0xff]  ;;  %v8676_v37 = vcombine.high %v3695_v29, %v3699_v23  ;;  %v8675_v30 = vcombine.low %v3695_v29, %v3699_v23 }
 0x2b3   :  { %v3775_v14 = vld [vmem:[#allocation11 + $0x6c0] sm:$0xff] }
 0x2b4   :  { %3523 = vmatpush2.bf16.msra.mxu1 %v8481_v36  ;;  %v3851_v36 = vld [vmem:[#allocation11 + $0x920] sm:$0xff] }
 0x2b5   :  { %6716 = vmatprep.subr.bf16.mxu1 %v8724_v38  ;;  %v3687_v38 = vld [vmem:[#allocation11 + $0x400] sm:$0xff] }
 0x2b6   :  { %v8668_v33 = vcombine.high %v3687_v38, %v3691_v22  ;;  %v8667_v48 = vcombine.low %v3687_v38, %v3691_v22  ;;  %v3927_v27 = vld [vmem:[#allocation11 + $0xb80] sm:$0xff] }
 0x2b7   :  { %3525 = vmatmul.mubr.bf16.vlgmr.msra.gmra.mxu1 %v9904_v25  ;;  %v3268_v57 = vpop.f32.mrf.mxu1  ;;  %v3767_v23 = vld [vmem:[#allocation11 + $0x680] sm:$0xff] }
 0x2b8   :  { %6717 = vmatpush1.bf16.msra.mxu1 %v8723_v44  ;;  %v3269_v63 = vadd.f32 %v3268_v57, %v3226_v58  ;;  %v8828_v44 = vcombine.high %v3847_v12, %v3851_v36  ;;  %v8827_v57 = vcombine.low %v3847_v12, %v3851_v36  ;;  %v3919_v36 = vld [vmem:[#allocation11 + $0xb40] sm:$0xff] }
 0x2b9   :  { %v3270_v49 = vpop.f32.mrf.mxu1  ;;  %6718 = vmatprep.subr.bf16.mxu1 %v8716_v56  ;;  %v3839_v56 = vld [vmem:[#allocation11 + $0x8c0] sm:$0xff] }
 0x2ba   :  { %v3271_v60 = vadd.f32 %v3270_v49, %v3228_v51  ;;  %v3535_v41 = vmax.f32 %v3269_v63, 0.0  ;;  %v3831_v49 = vld [vmem:[#allocation11 + $0x880] sm:$0xff]  ;;  %v8788_v51 = vcombine.high %v3807_v45, %v3811_v46  ;;  %v8819_v55 = vcombine.low %v3839_v56, %v3843_v31 }
 0x2bb   :  { %v3272_v59 = vpop.f32.mrf.mxu1  ;;  %v3795_v63 = vld [vmem:[#allocation11 + $0x760] sm:$0xff] }
 0x2bc   :  { %v3273_v61 = vadd.f32 %v3272_v59, %v3230_v52  ;;  %6719 = vmatpush1.bf16.msra.mxu1 %v8715_v47  ;;  %v3536_v5 = vmax.f32 %v3271_v60, 0.0  ;;  %v8820_v47 = vcombine.high %v3839_v56, %v3843_v31  ;;  %v3799_v52 = vld [vmem:[#allocation11 + $0x780] sm:$0xff]  ;;  %v8787_v59 = vcombine.low %v3807_v45, %v3811_v46 }
 0x2bd   :  { %v3274_v25 = vpop.f32.mrf.mxu1  ;;  %6720 = vmatprep.subr.bf16.mxu1 %v8708_v50  ;;  %v3835_v50 = vld [vmem:[#allocation11 + $0x8a0] sm:$0xff] }
 0x2be   :  { %v3275_v1 = vadd.f32 %v3274_v25, %v3232_v21  ;;  %v3543_v4 = vmax.f32 %v3273_v61, 0.0  ;;  %v8812_v58 = vcombine.high %v3831_v49, %v3835_v50  ;;  %v3823_v21 = vld [vmem:[#allocation11 + $0x840] sm:$0xff]  ;;  %v8780_v61 = vcombine.high %v3799_v52, %v3803_v53 }
 0x2bf   :  { %v3827_v60 = vld [vmem:[#allocation11 + $0x860] sm:$0xff]  ;;  %v8811_v25 = vcombine.low %v3831_v49, %v3835_v50 }
 0x2c0   :  { %v3544_v6 = vmax.f32 %v3275_v1, 0.0  ;;  %6721 = vmatpush1.bf16.msra.mxu1 %v8707_v62  ;;  %v9947_v17 = vpack.c.bf16 %v3543_v4, %v3535_v41  ;;  %v3791_v62 = vld [vmem:[#allocation11 + $0x740] sm:$0xff]  ;;  %v8779_v1 = vcombine.low %v3799_v52, %v3803_v53  ;;  %v3311_v52 = vpop.f32.mrf.mxu0 }
 0x2c1   :  { %6722 = vmatprep.subr.bf16.mxu1 %v8700_v0  ;;  %v8804_v0 = vcombine.high %v3823_v21, %v3827_v60  ;;  %v8772_v4 = vcombine.high %v3791_v62, %v3795_v63  ;;  %v8771_v39 = vcombine.low %v3791_v62, %v3795_v63  ;;  %v3935_v41 = vld [vmem:[#allocation11 + $0xbc0] sm:$0xff] }
 0x2c2   :  { %v9941_v10 = vpack.c.bf16 %v3544_v6, %v3536_v5  ;;  %v3783_v5 = vld [vmem:[#allocation11 + $0x700] sm:$0xff]  ;;  %v3313_v63 = vpop.f32.mrf.mxu0 }
 0x2c3   :  { %v3787_v6 = vld [vmem:[#allocation11 + $0x720] sm:$0xff] }
 0x2c4   :  { %6705 = vmatprep.mubr.bf16.mxu0 %v9941_v10  ;;  %6723 = vmatpush1.bf16.msra.mxu1 %v8699_v7  ;;  %v8803_v7 = vcombine.low %v3823_v21, %v3827_v60  ;;  %v8764_v11 = vcombine.high %v3783_v5, %v3787_v6  ;;  %v8763_v26 = vcombine.low %v3783_v5, %v3787_v6  ;;  %v3759_v22 = vld [vmem:[#allocation11 + $0x640] sm:$0xff]  ;;  %v3315_v6 = vpop.f32.mrf.mxu0 }
 0x2c5   :  { %6706 = vmatmul.mubr.bf16.vlgmr.msra.gmra.mxu0 %v9947_v17  ;;  %6724 = vmatprep.subr.bf16.mxu1 %v8692_v8  ;;  %v3939_v8 = vld [vmem:[#allocation11 + $0xbe0] sm:$0xff] }
 0x2c6   :  { %6760 = vmatpush1.bf16.msra.mxu0 %v8851_v15  ;;  %v3779_v15 = vld [vmem:[#allocation11 + $0x6e0] sm:$0xff] }
 0x2c7   :  { %6761 = vmatprep.subr.bf16.mxu0 %v8844_v18  ;;  %v8795_v18 = vcombine.low %v3815_v2, %v3819_v3  ;;  %v8756_v29 = vcombine.high %v3775_v14, %v3779_v15  ;;  %v8755_v12 = vcombine.low %v3775_v14, %v3779_v15  ;;  %v3911_v31 = vld [vmem:[#allocation11 + $0xb00] sm:$0xff]  ;;  %v1881_v2 = vsub.s32 2, %v9926_v35  ;;  %v3317_v15 = vpop.f32.mrf.mxu0 }
 0x2c8   :  { %6725 = vmatpush1.bf16.msra.mxu1 %v8691_v20  ;;  %v8916_v20 = vcombine.high %v3935_v41, %v3939_v8  ;;  %v3751_v46 = vld [vmem:[#allocation11 + $0x600] sm:$0xff] }
 0x2c9   :  { %6726 = vmatprep.subr.bf16.mxu1 %v8684_v28  ;;  %v3931_v28 = vld [vmem:[#allocation11 + $0xba0] sm:$0xff] }
 0x2ca   :  { %6762 = vmatpush1.bf16.msra.mxu0 %v8843_v24  ;;  %v3771_v24 = vld [vmem:[#allocation11 + $0x6a0] sm:$0xff] }
 0x2cb   :  { %6763 = vmatprep.subr.bf16.mxu0 %v8836_v32  ;;  %v8915_v32 = vcombine.low %v3935_v41, %v3939_v8  ;;  %v8748_v38 = vcombine.high %v3767_v23, %v3771_v24  ;;  %v8747_v56 = vcombine.low %v3767_v23, %v3771_v24  ;;  %v3903_v50 = vld [vmem:[#allocation11 + $0xac0] sm:$0xff] }
 0x2cc   :  { %6727 = vmatpush1.bf16.msra.mxu1 %v8683_v34  ;;  %v8908_v34 = vcombine.high %v3927_v27, %v3931_v28  ;;  %v3899_v62 = vld [vmem:[#allocation11 + $0xaa0] sm:$0xff] }
 0x2cd   :  { %6728 = vmatprep.subr.bf16.mxu1 %v8676_v37  ;;  %v3923_v37 = vld [vmem:[#allocation11 + $0xb60] sm:$0xff] }
 0x2ce   :  { %6764 = vmatpush1.bf16.msra.mxu0 %v8835_v40  ;;  %v3763_v40 = vld [vmem:[#allocation11 + $0x660] sm:$0xff] }
 0x2cf   :  { %6765 = vmatprep.subr.bf16.mxu0 %v8828_v44  ;;  %v8907_v44 = vcombine.low %v3927_v27, %v3931_v28  ;;  %v8740_v45 = vcombine.high %v3759_v22, %v3763_v40  ;;  %v8739_v49 = vcombine.low %v3759_v22, %v3763_v40  ;;  %v3891_v5 = vld [vmem:[#allocation11 + $0xa60] sm:$0xff]  ;;  %v8598_v40 = vcombine.high %v9939_v9, %v9945_v16  ;;  %v3580_v9 = vld [vmem:[#allocation11 + $0xa8] sm:$0xff] }
 0x2d0   :  { %6729 = vmatpush1.bf16.msra.mxu1 %v8675_v30  ;;  %v8900_v30 = vcombine.high %v3919_v36, %v3923_v37  ;;  %v3883_v14 = vld [vmem:[#allocation11 + $0xa20] sm:$0xff] }
 0x2d1   :  { %6730 = vmatprep.subr.bf16.mxu1 %v8668_v33  ;;  %v3915_v33 = vld [vmem:[#allocation11 + $0xb20] sm:$0xff] }
 0x2d2   :  { %6766 = vmatpush1.bf16.msra.mxu0 %v8827_v57  ;;  %v3755_v57 = vld [vmem:[#allocation11 + $0x620] sm:$0xff] }
 0x2d3   :  { %6767 = vmatprep.subr.bf16.mxu0 %v8820_v47  ;;  %v8899_v47 = vcombine.low %v3919_v36, %v3923_v37  ;;  %v8732_v53 = vcombine.high %v3751_v46, %v3755_v57  ;;  %v8731_v60 = vcombine.low %v3751_v46, %v3755_v57  ;;  %v9973_v57 = vld [vmem:[#allocation11 + $0x5c8] sm:$0xff] }
 0x2d4   :  { %6731 = vmatpush1.bf16.msra.mxu1 %v8667_v48  ;;  %v8892_v48 = vcombine.high %v3911_v31, %v3915_v33 }
 0x2d5   :  { %6732 = vmatprep.subr.bf16.mxu1 %v8788_v51  ;;  %v3907_v51 = vld [vmem:[#allocation11 + $0xae0] sm:$0xff] }
 0x2d6   :  { %6768 = vmatpush1.bf16.msra.mxu0 %v8819_v55  ;;  %v8891_v55 = vcombine.low %v3911_v31, %v3915_v33  ;;  %v8884_v21 = vcombine.high %v3903_v50, %v3907_v51  ;;  %v3995_v31 = vld [vmem:[#allocation11 + $0xda0] sm:$0xff] }
 0x2d7   :  { %6769 = vmatprep.subr.bf16.mxu0 %v8812_v58  ;;  %v9953_v58 = vld [vmem:[#allocation11 + $0xdc0] sm:$0xff] }
 0x2d8   :  { %6733 = vmatpush2.bf16.msra.mxu1 %v8787_v59  ;;  %v9955_v59 = vld [vmem:[#allocation11 + $0xde0] sm:$0xff] }
 0x2d9   :  { %6734 = vmatprep.subr.bf16.mxu1 %v8780_v61  ;;  %v3895_v61 = vld [vmem:[#allocation11 + $0xa80] sm:$0xff]  ;;  %v8979_v46 = vcombine.low %v9953_v58, %v9955_v59 }
 0x2da   :  { %6770 = vmatpush1.bf16.msra.mxu0 %v8811_v25  ;;  %v8980_v25 = vcombine.high %v9953_v58, %v9955_v59  ;;  %v8876_v3 = vcombine.high %v3895_v61, %v3899_v62  ;;  %v3975_v58 = vld [vmem:[#allocation11 + $0xd00] sm:$0xff] }
 0x2db   :  { %6771 = vmatprep.subr.bf16.mxu0 %v8804_v0  ;;  %v1885_v0 = vsub.s32 3, %v9926_v35  ;;  %v3979_v59 = vld [vmem:[#allocation11 + $0xd20] sm:$0xff] }
 0x2dc   :  { %6735 = vmatpush2.bf16.msra.mxu1 %v8779_v1  ;;  %v8883_v1 = vcombine.low %v3903_v50, %v3907_v51  ;;  %v3983_v50 = vld [vmem:[#allocation11 + $0xd40] sm:$0xff] }
 0x2dd   :  { %6736 = vmatprep.subr.bf16.mxu1 %v8772_v4  ;;  %v3887_v4 = vld [vmem:[#allocation11 + $0xa40] sm:$0xff] }
 0x2de   :  { %6772 = vmatpush1.bf16.msra.mxu0 %v8803_v7  ;;  %v1886_v7 = vrot.slane %v9930_v43, %v1885_v0  ;;  %v8868_v8 = vcombine.high %v3887_v4, %v3891_v5  ;;  %v8867_v27 = vcombine.low %v3887_v4, %v3891_v5  ;;  %v3987_v51 = vld [vmem:[#allocation11 + $0xd60] sm:$0xff] }
 0x2df   :  { %6773 = vmatprep.subr.bf16.mxu0 %v8796_v54  ;;  %v8875_v54 = vcombine.low %v3895_v61, %v3899_v62  ;;  %v3967_v61 = vld [vmem:[#allocation11 + $0xcc0] sm:$0xff] }
 0x2e0   :  { %6737 = vmatpush2.bf16.msra.mxu1 %v8771_v39  ;;  %v1882_v39 = vrot.slane %v9930_v43, %v1881_v2  ;;  %v3318_v24 = vadd.f32 %v3317_v15, %v1886_v7  ;;  %v3971_v62 = vld [vmem:[#allocation11 + $0xce0] sm:$0xff] }
 0x2e1   :  { %6738 = vmatprep.subr.bf16.mxu1 %v8764_v11  ;;  %v3879_v11 = vld [vmem:[#allocation11 + $0xa00] sm:$0xff]  ;;  %v8947_v4 = vcombine.low %v3967_v61, %v3971_v62 }
 0x2e2   :  { %6774 = vmatpush1.bf16.msra.mxu0 %v8795_v18  ;;  %v3312_v28 = vadd.f32 %v3311_v52, %v1882_v39  ;;  %v8860_v23 = vcombine.high %v3879_v11, %v3883_v14  ;;  %v4063_v15 = vld [vmem:[#allocation11 + $0xfc0] sm:$0xff] }
 0x2e3   :  { %6775 = vmatprep.subr.bf16.mxu0 %v8916_v20  ;;  %v3314_v20 = vadd.f32 %v3313_v63, %v1886_v7  ;;  %v8955_v63 = vcombine.low %v3975_v58, %v3979_v59  ;;  %v3955_v7 = vld [vmem:[#allocation11 + $0xc60] sm:$0xff] }
 0x2e4   :  { %6739 = vmatpush2.bf16.msra.mxu1 %v8763_v26  ;;  %v3316_v26 = vadd.f32 %v3315_v6, %v1882_v39  ;;  %v3951_v6 = vld [vmem:[#allocation11 + $0xc40] sm:$0xff] }
 0x2e5   :  { %6740 = vmatprep.subr.bf16.mxu1 %v8756_v29  ;;  %v8932_v39 = vcombine.high %v3951_v6, %v3955_v7 }
 0x2e6   :  { %6776 = vmatpush2.bf16.msra.mxu0 %v8915_v32 }
 0x2e7   :  { %6777 = vmatprep.subr.bf16.mxu0 %v8908_v34 }
 0x2e8   :  { %6741 = vmatpush2.bf16.msra.mxu1 %v8755_v12 }
 0x2e9   :  { %6742 = vmatprep.subr.bf16.mxu1 %v8748_v38  ;;  %v8859_v38 = vcombine.low %v3879_v11, %v3883_v14  ;;  %v8931_v11 = vcombine.low %v3951_v6, %v3955_v7 }
 0x2ea   :  { %6778 = vmatpush2.bf16.msra.mxu0 %v8907_v44 }
 0x2eb   :  { %6779 = vmatprep.subr.bf16.mxu0 %v8900_v30 }
 0x2ec   :  { %6743 = vmatpush2.bf16.msra.mxu1 %v8747_v56  ;;  %v3991_v56 = vld [vmem:[#allocation11 + $0xd80] sm:$0xff] }
 0x2ed   :  { %6744 = vmatprep.subr.bf16.mxu1 %v8740_v45 }
 0x2ee   :  { %6780 = vmatpush2.bf16.msra.mxu0 %v8899_v47  ;;  %v9975_v47 = vld [vmem:[#allocation11 + $0x5e8] sm:$0xff] }
 0x2ef   :  { %6781 = vmatprep.subr.bf16.mxu0 %v8892_v48  ;;  %v8725_v52 = vcombine.low %v9973_v57, %v9975_v47 }
 0x2f0   :  { %6745 = vmatpush2.bf16.msra.mxu1 %v8739_v49  ;;  %v8972_v49 = vcombine.high %v3991_v56, %v3995_v31 }
 0x2f1   :  { %6746 = vmatprep.subr.bf16.mxu1 %v8732_v53  ;;  %v8971_v53 = vcombine.low %v3991_v56, %v3995_v31 }
 0x2f2   :  { %6782 = vmatpush2.bf16.msra.mxu0 %v8891_v55  ;;  %v8964_v55 = vcombine.high %v3983_v50, %v3987_v51 }
 0x2f3   :  { %6783 = vmatprep.subr.bf16.mxu0 %v8884_v21  ;;  %v8963_v21 = vcombine.low %v3983_v50, %v3987_v51  ;;  %v1893_v50 = vsub.s32 5, %v9926_v35 }
 0x2f4   :  { %6747 = vmatpush2.bf16.msra.mxu1 %v8731_v60  ;;  %v8956_v60 = vcombine.high %v3975_v58, %v3979_v59  ;;  %v4015_v58 = vld [vmem:[#allocation11 + $0xe40] sm:$0xff] }
 0x2f5   :  { %6802 = vmatprep.subr.bf16.mxu1 %v8980_v25  ;;  %v8948_v25 = vcombine.high %v3967_v61, %v3971_v62  ;;  %v4019_v59 = vld [vmem:[#allocation11 + $0xe60] sm:$0xff] }
 0x2f6   :  { %6784 = vmatpush2.bf16.msra.mxu0 %v8883_v1  ;;  %v3959_v1 = vld [vmem:[#allocation11 + $0xc80] sm:$0xff] }
 0x2f7   :  { %v3354_v41 = vpop.f32.mrf.mxu1  ;;  %6785 = vmatprep.subr.bf16.mxu0 %v8876_v3  ;;  %v3963_v3 = vld [vmem:[#allocation11 + $0xca0] sm:$0xff] }
 0x2f8   :  { %v3355_v12 = vadd.f32 %v3354_v41, %v3312_v28  ;;  %v8940_v5 = vcombine.high %v3959_v1, %v3963_v3  ;;  %v3943_v41 = vld [vmem:[#allocation11 + $0xc00] sm:$0xff] }
 0x2f9   :  { %v3356_v18 = vpop.f32.mrf.mxu1  ;;  %v4059_v28 = vld [vmem:[#allocation11 + $0xfa0] sm:$0xff] }
 0x2fa   :  { %6786 = vmatpush2.bf16.msra.mxu0 %v8875_v54  ;;  %v3357_v32 = vadd.f32 %v3356_v18, %v3314_v20  ;;  %v3537_v33 = vmax.f32 %v3355_v12, 0.0  ;;  %v8939_v54 = vcombine.low %v3959_v1, %v3963_v3  ;;  %v4067_v18 = vld [vmem:[#allocation11 + $0xfe0] sm:$0xff] }
 0x2fb   :  { %v3358_v29 = vpop.f32.mrf.mxu1  ;;  %6787 = vmatprep.subr.bf16.mxu0 %v8868_v8  ;;  %v3947_v8 = vld [vmem:[#allocation11 + $0xc20] sm:$0xff] }
 0x2fc   :  { %v3359_v34 = vadd.f32 %v3358_v29, %v3316_v26  ;;  %v3538_v44 = vmax.f32 %v3357_v32, 0.0  ;;  %v8924_v14 = vcombine.high %v3943_v41, %v3947_v8  ;;  %v8923_v20 = vcombine.low %v3943_v41, %v3947_v8  ;;  %v4051_v32 = vld [vmem:[#allocation11 + $0xf60] sm:$0xff] }
 0x2fd   :  { %v3360_v36 = vpop.f32.mrf.mxu1  ;;  %v9044_v26 = vcombine.high %v4063_v15, %v4067_v18  ;;  %v9043_v29 = vcombine.low %v4063_v15, %v4067_v18  ;;  %v4007_v1 = vld [vmem:[#allocation11 + $0xe00] sm:$0xff] }
 0x2fe   :  { %v3361_v37 = vadd.f32 %v3360_v36, %v3318_v24  ;;  %6788 = vmatpush2.bf16.msra.mxu0 %v8867_v27  ;;  %v3545_v22 = vmax.f32 %v3359_v34, 0.0  ;;  %v4055_v27 = vld [vmem:[#allocation11 + $0xf80] sm:$0xff] }
 0x2ff   :  { %6789 = vmatprep.subr.bf16.mxu0 %v8860_v23  ;;  %v9036_v23 = vcombine.high %v4055_v27, %v4059_v28  ;;  %v4047_v24 = vld [vmem:[#allocation11 + $0xf40] sm:$0xff]  ;;  %v9035_v34 = vcombine.low %v4055_v27, %v4059_v28 }
 0x300   :  { %v3546_v30 = vmax.f32 %v3361_v37, 0.0  ;;  %v9977_v48 = vpack.c.bf16 %v3545_v22, %v3537_v33  ;;  %v9028_v12 = vcombine.high %v4047_v24, %v4051_v32  ;;  %v4039_v36 = vld [vmem:[#allocation11 + $0xf00] sm:$0xff] }
 0x301   :  { %v4043_v37 = vld [vmem:[#allocation11 + $0xf20] sm:$0xff] }
 0x302   :  { %v9969_v45 = vpack.c.bf16 %v3546_v30, %v3538_v44  ;;  %6790 = vmatpush2.bf16.msra.mxu0 %v8859_v38  ;;  %v9027_v38 = vcombine.low %v4047_v24, %v4051_v32  ;;  %v9020_v22 = vcombine.high %v4039_v36, %v4043_v37  ;;  %v4035_v44 = vld [vmem:[#allocation11 + $0xee0] sm:$0xff]  ;;  %v3397_v30 = vpop.f32.mrf.mxu0  ;;  %v9019_v56 = vcombine.low %v4039_v36, %v4043_v37  ;;  %v3608_v32 = vld [vmem:[#allocation11 + $0x188] sm:$0xff] }
 0x303   :  { %6845 = vmatprep.subr.bf16.mxu0 %v8598_v40  ;;  %v4031_v40 = vld [vmem:[#allocation11 + $0xec0] sm:$0xff] }
 0x304   :  { %6748 = vmatprep.mubr.bf16.mxu1 %v9969_v45  ;;  %v9012_v31 = vcombine.high %v4031_v40, %v4035_v44  ;;  %v4023_v33 = vld [vmem:[#allocation11 + $0xe80] sm:$0xff]  ;;  %v9011_v51 = vcombine.low %v4031_v40, %v4035_v44  ;;  %v3604_v40 = vld [vmem:[#allocation11 + $0x168] sm:$0xff] }
 0x305   :  { %6749 = vmatmul.mubr.bf16.vlgmr.msra.gmra.mxu1 %v9977_v48  ;;  %v4011_v3 = vld [vmem:[#allocation11 + $0xe20] sm:$0xff] }
 0x306   :  { %6803 = vmatpush1.bf16.msra.mxu1 %v8979_v46  ;;  %v4027_v46 = vld [vmem:[#allocation11 + $0xea0] sm:$0xff]  ;;  %v8988_v8 = vcombine.high %v4007_v1, %v4011_v3  ;;  %v8987_v27 = vcombine.low %v4007_v1, %v4011_v3 }
 0x307   :  { %6804 = vmatprep.subr.bf16.mxu1 %v8972_v49  ;;  %v3399_v49 = vpop.f32.mrf.mxu0  ;;  %v9003_v61 = vcombine.low %v4023_v33, %v4027_v46 }
 0x30a   :  { %6805 = vmatpush1.bf16.msra.mxu1 %v8971_v53  ;;  %v1889_v53 = vsub.s32 4, %v9926_v35 }
 0x30b   :  { %6806 = vmatprep.subr.bf16.mxu1 %v8964_v55  ;;  %v9004_v55 = vcombine.high %v4023_v33, %v4027_v46 }
 0x30c   :  { %v1890_v62 = vrot.slane %v9930_v43, %v1889_v53 }
 0x30e   :  { %6807 = vmatpush1.bf16.msra.mxu1 %v8963_v21  ;;  %v3401_v21 = vpop.f32.mrf.mxu0 }
 0x30f   :  { %6808 = vmatprep.subr.bf16.mxu1 %v8956_v60  ;;  %v1894_v60 = vrot.slane %v9930_v43, %v1893_v50  ;;  %v3402_v7 = vadd.f32 %v3401_v21, %v1890_v62  ;;  %v3568_v21 = vld [vmem:[#allocation11 + $0x48] sm:$0xff] }
 0x311   :  { %v3400_v6 = vadd.f32 %v3399_v49, %v1894_v60  ;;  %v3584_v49 = vld [vmem:[#allocation11 + $0xc8] sm:$0xff] }
 0x312   :  { %6809 = vmatpush1.bf16.msra.mxu1 %v8955_v63 }
 0x313   :  { %6810 = vmatprep.subr.bf16.mxu1 %v8948_v25  ;;  %v8996_v25 = vcombine.high %v4015_v58, %v4019_v59 }
 0x316   :  { %6811 = vmatpush1.bf16.msra.mxu1 %v8947_v4  ;;  %v3403_v4 = vpop.f32.mrf.mxu0 }
 0x317   :  { %6812 = vmatprep.subr.bf16.mxu1 %v8940_v5 }
 0x31a   :  { %6813 = vmatpush1.bf16.msra.mxu1 %v8939_v54  ;;  %v8995_v54 = vcombine.low %v4015_v58, %v4019_v59  ;;  %v3576_v59 = vld [vmem:[#allocation11 + $0x88] sm:$0xff] }
 0x31b   :  { %6814 = vmatprep.subr.bf16.mxu1 %v8932_v39  ;;  %v3398_v39 = vadd.f32 %v3397_v30, %v1890_v62 }
 0x31e   :  { %6815 = vmatpush1.bf16.msra.mxu1 %v8931_v11  ;;  %v3404_v11 = vadd.f32 %v3403_v4, %v1894_v60  ;;  %v3572_v60 = vld [vmem:[#allocation11 + $0x68] sm:$0xff] }
 0x31f   :  { %6816 = vmatprep.subr.bf16.mxu1 %v8924_v14  ;;  %v8550_v62 = vcombine.high %v3568_v21, %v3572_v60  ;;  %v8549_v1 = vcombine.low %v3568_v21, %v3572_v60  ;;  %v3680_v4 = vld [vmem:[#allocation11 + $0x3c8] sm:$0xff] }
 0x322   :  { %6817 = vmatpush1.bf16.msra.mxu1 %v8923_v20 }
 0x323   :  { %6818 = vmatprep.subr.bf16.mxu1 %v9044_v26 }
 0x326   :  { %6819 = vmatpush2.bf16.msra.mxu1 %v9043_v29  ;;  %v8726_v29 = vcombine.high %v9973_v57, %v9975_v47 }
 0x327   :  { %6820 = vmatprep.subr.bf16.mxu1 %v9036_v23 }
 0x32a   :  { %6821 = vmatpush2.bf16.msra.mxu1 %v9035_v34  ;;  %v3612_v34 = vld [vmem:[#allocation11 + $0x1a8] sm:$0xff] }
 0x32b   :  { %6822 = vmatprep.subr.bf16.mxu1 %v9028_v12  ;;  %v8589_v44 = vcombine.low %v3608_v32, %v3612_v34 }
 0x32e   :  { %6823 = vmatpush2.bf16.msra.mxu1 %v9027_v38  ;;  %v8590_v38 = vcombine.high %v3608_v32, %v3612_v34 }
 0x32f   :  { %6824 = vmatprep.subr.bf16.mxu1 %v9020_v22  ;;  %v3600_v22 = vld [vmem:[#allocation11 + $0x148] sm:$0xff] }
 0x330   :  { %v8582_v30 = vcombine.high %v3600_v22, %v3604_v40  ;;  %v8581_v33 = vcombine.low %v3600_v22, %v3604_v40  ;;  %v1901_v40 = vsub.s32 7, %v9926_v35 }
 0x332   :  { %6825 = vmatpush2.bf16.msra.mxu1 %v9019_v56  ;;  %v3592_v56 = vld [vmem:[#allocation11 + $0x108] sm:$0xff] }
 0x333   :  { %6826 = vmatprep.subr.bf16.mxu1 %v9012_v31  ;;  %v3596_v31 = vld [vmem:[#allocation11 + $0x128] sm:$0xff] }
 0x334   :  { %v8574_v46 = vcombine.high %v3592_v56, %v3596_v31 }
 0x336   :  { %6827 = vmatpush2.bf16.msra.mxu1 %v9011_v51  ;;  %v3588_v51 = vld [vmem:[#allocation11 + $0xe8] sm:$0xff] }
 0x337   :  { %v3440_v63 = vpop.f32.mrf.mxu1  ;;  %6828 = vmatprep.subr.bf16.mxu1 %v9004_v55  ;;  %v8573_v55 = vcombine.low %v3592_v56, %v3596_v31  ;;  %v8566_v58 = vcombine.high %v3584_v49, %v3588_v51  ;;  %v8565_v16 = vcombine.low %v3584_v49, %v3588_v51  ;;  %v3632_v31 = vld [vmem:[#allocation11 + $0x248] sm:$0xff]  ;;  %v1902_v49 = vrot.slane %v9930_v43, %v1901_v40 }
 0x338   :  { %v3441_v18 = vadd.f32 %v3440_v63, %v3398_v39  ;;  %v3560_v63 = vld [vmem:[#allocation11 + $0x8] sm:$0xff] }
 0x339   :  { %v3442_v5 = vpop.f32.mrf.mxu1  ;;  %v3676_v39 = vld [vmem:[#allocation11 + $0x3a8] sm:$0xff] }
 0x33a   :  { %6829 = vmatpush2.bf16.msra.mxu1 %v9003_v61  ;;  %v3443_v14 = vadd.f32 %v3442_v5, %v3400_v6  ;;  %v3539_v12 = vmax.f32 %v3441_v18, 0.0  ;;  %v8557_v61 = vcombine.low %v3576_v59, %v3580_v9  ;;  %v3684_v5 = vld [vmem:[#allocation11 + $0x3e8] sm:$0xff] }
 0x33b   :  { %v3444_v41 = vpop.f32.mrf.mxu1  ;;  %6830 = vmatprep.subr.bf16.mxu1 %v8996_v25  ;;  %v3564_v25 = vld [vmem:[#allocation11 + $0x28] sm:$0xff] }
 0x33c   :  { %v3445_v15 = vadd.f32 %v3444_v41, %v3402_v7  ;;  %v3540_v23 = vmax.f32 %v3443_v14, 0.0  ;;  %v8542_v3 = vcombine.high %v3560_v63, %v3564_v25  ;;  %v8541_v6 = vcombine.low %v3560_v63, %v3564_v25  ;;  %v3668_v14 = vld [vmem:[#allocation11 + $0x368] sm:$0xff] }
 0x33d   :  { %v3446_v20 = vpop.f32.mrf.mxu1  ;;  %v8662_v7 = vcombine.high %v3680_v4, %v3684_v5  ;;  %v8661_v41 = vcombine.low %v3680_v4, %v3684_v5 }
 0x33e   :  { %v3447_v26 = vadd.f32 %v3446_v20, %v3404_v11  ;;  %6831 = vmatpush2.bf16.msra.mxu1 %v8995_v54  ;;  %v3547_v28 = vmax.f32 %v3445_v15, 0.0  ;;  %v3672_v54 = vld [vmem:[#allocation11 + $0x388] sm:$0xff] }
 0x33f   :  { %6832 = vmatprep.subr.bf16.mxu1 %v8988_v8  ;;  %v8654_v8 = vcombine.high %v3672_v54, %v3676_v39  ;;  %v3664_v11 = vld [vmem:[#allocation11 + $0x348] sm:$0xff]  ;;  %v8653_v15 = vcombine.low %v3672_v54, %v3676_v39 }
 0x340   :  { %v3548_v24 = vmax.f32 %v3447_v26, 0.0  ;;  %v9995_v37 = vpack.c.bf16 %v3547_v28, %v3539_v12  ;;  %v8646_v18 = vcombine.high %v3664_v11, %v3668_v14  ;;  %v3656_v20 = vld [vmem:[#allocation11 + $0x308] sm:$0xff] }
 0x341   :  { %v3660_v26 = vld [vmem:[#allocation11 + $0x328] sm:$0xff] }
 0x342   :  { %v9993_v36 = vpack.c.bf16 %v3548_v24, %v3540_v23  ;;  %6833 = vmatpush2.bf16.msra.mxu1 %v8987_v27  ;;  %v8645_v27 = vcombine.low %v3664_v11, %v3668_v14  ;;  %v8638_v28 = vcombine.high %v3656_v20, %v3660_v26  ;;  %v3652_v23 = vld [vmem:[#allocation11 + $0x2e8] sm:$0xff]  ;;  %v3483_v24 = vpop.f32.mrf.mxu0  ;;  %v8637_v32 = vcombine.low %v3656_v20, %v3660_v26 }
 0x343   :  { %6888 = vmatprep.subr.bf16.mxu1 %v8726_v29  ;;  %v3648_v29 = vld [vmem:[#allocation11 + $0x2c8] sm:$0xff] }
 0x344   :  { %6791 = vmatprep.mubr.bf16.mxu0 %v9993_v36  ;;  %v8630_v34 = vcombine.high %v3648_v29, %v3652_v23  ;;  %v3640_v12 = vld [vmem:[#allocation11 + $0x288] sm:$0xff]  ;;  %v3485_v22 = vpop.f32.mrf.mxu0 }
 0x345   :  { %6792 = vmatmul.mubr.bf16.vlgmr.msra.gmra.mxu0 %v9995_v37  ;;  %v3486_v60 = vadd.f32 %v3485_v22, %v1902_v49  ;;  %v3740_v26 = vld [vmem:[#allocation11 + $0x5a8] sm:$0xff] }
 0x346   :  { %6846 = vmatpush1.bf16.msra.mxu0 %v8597_v19  ;;  %6877 = vmatprep.mubr.bf16.mxu0 %v9941_v10  ;;  %v8558_v19 = vcombine.high %v3576_v59, %v3580_v9  ;;  %v3624_v9 = vld [vmem:[#allocation11 + $0x208] sm:$0xff] }
 0x347   :  { %6847 = vmatprep.subr.bf16.mxu0 %v8590_v38  ;;  %v3644_v38 = vld [vmem:[#allocation11 + $0x2a8] sm:$0xff] }
 0x348   :  { %v8622_v56 = vcombine.high %v3640_v12, %v3644_v38  ;;  %v8621_v51 = vcombine.low %v3640_v12, %v3644_v38  ;;  %v3732_v38 = vld [vmem:[#allocation11 + $0x568] sm:$0xff] }
 0x349   :  { %v3856_v22 = vld [vmem:[#allocation11 + $0x948] sm:$0xff] }
 0x34a   :  { %6848 = vmatpush1.bf16.msra.mxu0 %v8589_v44  ;;  %v8629_v44 = vcombine.low %v3648_v29, %v3652_v23 }
 0x34b   :  { %6849 = vmatprep.subr.bf16.mxu0 %v8582_v30  ;;  %v1897_v30 = vsub.s32 6, %v9926_v35 }
 0x34e   :  { %6850 = vmatpush1.bf16.msra.mxu0 %v8581_v33  ;;  %v3636_v33 = vld [vmem:[#allocation11 + $0x268] sm:$0xff] }
 0x34f   :  { %6851 = vmatprep.subr.bf16.mxu0 %v8574_v46  ;;  %v3487_v46 = vpop.f32.mrf.mxu0  ;;  %v8614_v59 = vcombine.high %v3632_v31, %v3636_v33 }
 0x352   :  { %6852 = vmatpush1.bf16.msra.mxu0 %v8573_v55  ;;  %v1898_v55 = vrot.slane %v9930_v43, %v1897_v30  ;;  %v3876_v43 = vld [vmem:[#allocation11 + $0x9e8] sm:$0xff] }
 0x353   :  { %6853 = vmatprep.subr.bf16.mxu0 %v8566_v58 }
 0x354   :  { %v3484_v63 = vadd.f32 %v3483_v24, %v1898_v55 }
 0x356   :  { %6854 = vmatpush1.bf16.msra.mxu0 %v8565_v16  ;;  %v3628_v16 = vld [vmem:[#allocation11 + $0x228] sm:$0xff] }
 0x357   :  { %6855 = vmatprep.subr.bf16.mxu0 %v8558_v19  ;;  %v3489_v19 = vpop.f32.mrf.mxu0 }
 0x35a   :  { %6856 = vmatpush1.bf16.msra.mxu0 %v8557_v61  ;;  %v3488_v61 = vadd.f32 %v3487_v46, %v1898_v55  ;;  %v3848_v55 = vld [vmem:[#allocation11 + $0x908] sm:$0xff] }
 0x35b   :  { %6857 = vmatprep.subr.bf16.mxu0 %v8550_v62  ;;  %v8613_v62 = vcombine.low %v3632_v31, %v3636_v33 }
 0x35e   :  { %6858 = vmatpush1.bf16.msra.mxu0 %v8549_v1  ;;  %v8606_v1 = vcombine.high %v3624_v9, %v3628_v16 }
 0x35f   :  { %6859 = vmatprep.subr.bf16.mxu0 %v8542_v3  ;;  %v3490_v3 = vadd.f32 %v3489_v19, %v1902_v49  ;;  %v3720_v49 = vld [vmem:[#allocation11 + $0x508] sm:$0xff] }
 0x360   :  { %v3840_v19 = vld [vmem:[#allocation11 + $0x8c8] sm:$0xff] }
 0x362   :  { %6860 = vmatpush1.bf16.msra.mxu0 %v8541_v6  ;;  %v3872_v6 = vld [vmem:[#allocation11 + $0x9c8] sm:$0xff] }
 0x363   :  { %6861 = vmatprep.subr.bf16.mxu0 %v8662_v7  ;;  %v8854_v11 = vcombine.high %v3872_v6, %v3876_v43  ;;  %v8853_v23 = vcombine.low %v3872_v6, %v3876_v43 }
 0x366   :  { %6862 = vmatpush2.bf16.msra.mxu0 %v8661_v41  ;;  %v8605_v41 = vcombine.low %v3624_v9, %v3628_v16  ;;  %v3712_v9 = vld [vmem:[#allocation11 + $0x4c8] sm:$0xff] }
 0x367   :  { %6863 = vmatprep.subr.bf16.mxu0 %v8654_v8  ;;  %v3716_v16 = vld [vmem:[#allocation11 + $0x4e8] sm:$0xff] }
 0x36a   :  { %6864 = vmatpush2.bf16.msra.mxu0 %v8653_v15 }
 0x36b   :  { %6865 = vmatprep.subr.bf16.mxu0 %v8646_v18  ;;  %v3736_v18 = vld [vmem:[#allocation11 + $0x588] sm:$0xff] }
 0x36e   :  { %6866 = vmatpush2.bf16.msra.mxu0 %v8645_v27  ;;  %v3864_v27 = vld [vmem:[#allocation11 + $0x988] sm:$0xff] }
 0x36f   :  { %6867 = vmatprep.subr.bf16.mxu0 %v8638_v28  ;;  %v3868_v28 = vld [vmem:[#allocation11 + $0x9a8] sm:$0xff] }
 0x370   :  { %v8846_v12 = vcombine.high %v3864_v27, %v3868_v28  ;;  %v8845_v31 = vcombine.low %v3864_v27, %v3868_v28  ;;  %v3816_v27 = vld [vmem:[#allocation11 + $0x808] sm:$0xff] }
 0x371   :  { %v3820_v28 = vld [vmem:[#allocation11 + $0x828] sm:$0xff] }
 0x372   :  { %6868 = vmatpush2.bf16.msra.mxu0 %v8637_v32  ;;  %v3728_v32 = vld [vmem:[#allocation11 + $0x548] sm:$0xff] }
 0x373   :  { %6869 = vmatprep.subr.bf16.mxu0 %v8630_v34  ;;  %v8718_v34 = vcombine.high %v3736_v18, %v3740_v26  ;;  %v8710_v33 = vcombine.high %v3728_v32, %v3732_v38 }
 0x376   :  { %6870 = vmatpush2.bf16.msra.mxu0 %v8629_v44  ;;  %v3860_v44 = vld [vmem:[#allocation11 + $0x968] sm:$0xff] }
 0x377   :  { %v3526_v58 = vpop.f32.mrf.mxu1  ;;  %6871 = vmatprep.subr.bf16.mxu0 %v8622_v56  ;;  %v8717_v56 = vcombine.low %v3736_v18, %v3740_v26  ;;  %v8838_v46 = vcombine.high %v3856_v22, %v3860_v44  ;;  %v8837_v57 = vcombine.low %v3856_v22, %v3860_v44  ;;  %v3692_v26 = vld [vmem:[#allocation11 + $0x428] sm:$0xff] }
 0x378   :  { %v3527_v7 = vadd.f32 %v3526_v58, %v3484_v63  ;;  %v3852_v58 = vld [vmem:[#allocation11 + $0x928] sm:$0xff] }
 0x379   :  { %v3528_v21 = vpop.f32.mrf.mxu1  ;;  %v3812_v22 = vld [vmem:[#allocation11 + $0x7e8] sm:$0xff] }
 0x37a   :  { %6872 = vmatpush2.bf16.msra.mxu0 %v8621_v51  ;;  %v3529_v4 = vadd.f32 %v3528_v21, %v3486_v60  ;;  %v3541_v20 = vmax.f32 %v3527_v7, 0.0  ;;  %v3724_v51 = vld [vmem:[#allocation11 + $0x528] sm:$0xff] }
 0x37b   :  { %v3530_v25 = vpop.f32.mrf.mxu1  ;;  %6873 = vmatprep.subr.bf16.mxu0 %v8614_v59  ;;  %v8709_v59 = vcombine.low %v3728_v32, %v3732_v38  ;;  %v8702_v47 = vcombine.high %v3720_v49, %v3724_v51  ;;  %v3844_v21 = vld [vmem:[#allocation11 + $0x8e8] sm:$0xff]  ;;  %v8701_v60 = vcombine.low %v3720_v49, %v3724_v51 }
 0x37c   :  { %v3531_v5 = vadd.f32 %v3530_v25, %v3488_v61  ;;  %v3542_v14 = vmax.f32 %v3529_v4, 0.0  ;;  %v8829_v61 = vcombine.low %v3848_v55, %v3852_v58  ;;  %v8822_v63 = vcombine.high %v3840_v19, %v3844_v21  ;;  %v3704_v25 = vld [vmem:[#allocation11 + $0x488] sm:$0xff] }
 0x37d   :  { %v3532_v54 = vpop.f32.mrf.mxu1  ;;  %v3836_v4 = vld [vmem:[#allocation11 + $0x8a8] sm:$0xff]  ;;  %v8821_v6 = vcombine.low %v3840_v19, %v3844_v21 }
 0x37e   :  { %v3533_v39 = vadd.f32 %v3532_v54, %v3490_v3  ;;  %6874 = vmatpush2.bf16.msra.mxu0 %v8613_v62  ;;  %v3549_v8 = vmax.f32 %v3531_v5, 0.0  ;;  %v8694_v62 = vcombine.high %v3712_v9, %v3716_v16  ;;  %v3832_v3 = vld [vmem:[#allocation11 + $0x888] sm:$0xff]  ;;  %v8693_v5 = vcombine.low %v3712_v9, %v3716_v16 }
 0x37f   :  { %6875 = vmatprep.subr.bf16.mxu0 %v8606_v1  ;;  %v3708_v1 = vld [vmem:[#allocation11 + $0x4a8] sm:$0xff]  ;;  %v8814_v7 = vcombine.high %v3832_v3, %v3836_v4 }
 0x380   :  { %v3550_v15 = vmax.f32 %v3533_v39, 0.0  ;;  %v10013_v24 = vpack.c.bf16 %v3549_v8, %v3541_v20  ;;  %v8686_v43 = vcombine.high %v3704_v25, %v3708_v1  ;;  %v3696_v54 = vld [vmem:[#allocation11 + $0x448] sm:$0xff] }
 0x381   :  { %v3700_v39 = vld [vmem:[#allocation11 + $0x468] sm:$0xff] }
 0x382   :  { %v10011_v29 = vpack.c.bf16 %v3550_v15, %v3542_v14  ;;  %6876 = vmatpush2.bf16.msra.mxu0 %v8605_v41  ;;  %v3824_v41 = vld [vmem:[#allocation11 + $0x848] sm:$0xff]  ;;  %v8813_v14 = vcombine.low %v3832_v3, %v3836_v4  ;;  %v8678_v15 = vcombine.high %v3696_v54, %v3700_v39 }
 0x383   :  { %6931 = vmatprep.subr.bf16.mxu0 %v8854_v11  ;;  %v3828_v8 = vld [vmem:[#allocation11 + $0x868] sm:$0xff]  ;;  %v8685_v11 = vcombine.low %v3704_v25, %v3708_v1 }
 0x384   :  { %6834 = vmatprep.mubr.bf16.mxu1 %v10011_v29  ;;  %v8806_v18 = vcombine.high %v3824_v41, %v3828_v8  ;;  %v3688_v20 = vld [vmem:[#allocation11 + $0x408] sm:$0xff]  ;;  %v8805_v32 = vcombine.low %v3824_v41, %v3828_v8 }
 0x385   :  { %6878 = vmatmul.mubr.bf16.vlgmr.msra.gmra.mxu0 %v9947_v17  ;;  %6835 = vmatmul.mubr.bf16.vlgmr.msra.gmra.mxu1 %v10013_v24  ;;  %v3808_v38 = vld [vmem:[#allocation11 + $0x7c8] sm:$0xff] }
 0x386   :  { %6889 = vmatpush1.bf16.msra.mxu1 %v8725_v52  ;;  %6932 = vmatpush1.bf16.msra.mxu0 %v8853_v23  ;;  %v8830_v52 = vcombine.high %v3848_v55, %v3852_v58  ;;  %v8677_v23 = vcombine.low %v3696_v54, %v3700_v39  ;;  %v3936_v44 = vld [vmem:[#allocation11 + $0xbc8] sm:$0xff] }
 0x387   :  { %6963 = vmatprep.mubr.bf16.mxu0 %v9993_v36  ;;  %6920 = vmatprep.mubr.bf16.mxu1 %v9969_v45  ;;  %v3800_v51 = vld [vmem:[#allocation11 + $0x788] sm:$0xff] }
 0x388   :  { %6890 = vmatprep.subr.bf16.mxu1 %v8718_v34  ;;  %6933 = vmatprep.subr.bf16.mxu0 %v8846_v12  ;;  %v8670_v34 = vcombine.high %v3688_v20, %v3692_v26  ;;  %v8798_v12 = vcombine.high %v3816_v27, %v3820_v28  ;;  %v3804_v55 = vld [vmem:[#allocation11 + $0x7a8] sm:$0xff] }
 0x389   :  { %v3928_v58 = vld [vmem:[#allocation11 + $0xb88] sm:$0xff] }
 0x38a   :  { %6891 = vmatpush1.bf16.msra.mxu1 %v8717_v56  ;;  %6934 = vmatpush1.bf16.msra.mxu0 %v8845_v31  ;;  %v3940_v56 = vld [vmem:[#allocation11 + $0xbe8] sm:$0xff]  ;;  %v8669_v31 = vcombine.low %v3688_v20, %v3692_v26 }
 0x38b   :  { %6892 = vmatprep.subr.bf16.mxu1 %v8710_v33  ;;  %6935 = vmatprep.subr.bf16.mxu0 %v8838_v46  ;;  %v8797_v33 = vcombine.low %v3816_v27, %v3820_v28  ;;  %v8790_v46 = vcombine.high %v3808_v38, %v3812_v22  ;;  %v8918_v49 = vcombine.high %v3936_v44, %v3940_v56  ;;  %v3792_v16 = vld [vmem:[#allocation11 + $0x748] sm:$0xff] }
 0x38c   :  { %v3796_v19 = vld [vmem:[#allocation11 + $0x768] sm:$0xff] }
 0x38d   :  { %v3920_v21 = vld [vmem:[#allocation11 + $0xb48] sm:$0xff] }
 0x38e   :  { %6893 = vmatpush1.bf16.msra.mxu1 %v8709_v59  ;;  %6936 = vmatpush1.bf16.msra.mxu0 %v8837_v57  ;;  %v3932_v59 = vld [vmem:[#allocation11 + $0xba8] sm:$0xff]  ;;  %v8789_v57 = vcombine.low %v3808_v38, %v3812_v22 }
 0x38f   :  { %6894 = vmatprep.subr.bf16.mxu1 %v8702_v47  ;;  %6937 = vmatprep.subr.bf16.mxu0 %v8830_v52  ;;  %v8917_v47 = vcombine.low %v3936_v44, %v3940_v56  ;;  %v8782_v52 = vcombine.high %v3800_v51, %v3804_v55  ;;  %v8910_v9 = vcombine.high %v3928_v58, %v3932_v59  ;;  %v3784_v1 = vld [vmem:[#allocation11 + $0x708] sm:$0xff] }
 0x390   :  { %v3788_v3 = vld [vmem:[#allocation11 + $0x728] sm:$0xff] }
 0x391   :  { %v3912_v4 = vld [vmem:[#allocation11 + $0xb08] sm:$0xff] }
 0x392   :  { %6895 = vmatpush1.bf16.msra.mxu1 %v8701_v60  ;;  %6938 = vmatpush1.bf16.msra.mxu0 %v8829_v61  ;;  %v3924_v60 = vld [vmem:[#allocation11 + $0xb68] sm:$0xff]  ;;  %v8781_v61 = vcombine.low %v3800_v51, %v3804_v55 }
 0x393   :  { %6896 = vmatprep.subr.bf16.mxu1 %v8694_v62  ;;  %6939 = vmatprep.subr.bf16.mxu0 %v8822_v63  ;;  %v8909_v62 = vcombine.low %v3928_v58, %v3932_v59  ;;  %v8774_v63 = vcombine.high %v3792_v16, %v3796_v19  ;;  %v8902_v25 = vcombine.high %v3920_v21, %v3924_v60  ;;  %v3776_v39 = vld [vmem:[#allocation11 + $0x6c8] sm:$0xff] }
 0x394   :  { %v3780_v41 = vld [vmem:[#allocation11 + $0x6e8] sm:$0xff] }
 0x395   :  { %v3904_v8 = vld [vmem:[#allocation11 + $0xac8] sm:$0xff] }
 0x396   :  { %6897 = vmatpush1.bf16.msra.mxu1 %v8693_v5  ;;  %6940 = vmatpush1.bf16.msra.mxu0 %v8821_v6  ;;  %v3916_v5 = vld [vmem:[#allocation11 + $0xb28] sm:$0xff]  ;;  %v8773_v6 = vcombine.low %v3792_v16, %v3796_v19 }
 0x397   :  { %6898 = vmatprep.subr.bf16.mxu1 %v8686_v43  ;;  %6941 = vmatprep.subr.bf16.mxu0 %v8814_v7  ;;  %v8901_v43 = vcombine.low %v3920_v21, %v3924_v60  ;;  %v8766_v7 = vcombine.high %v3784_v1, %v3788_v3  ;;  %v8894_v54 = vcombine.high %v3912_v4, %v3916_v5  ;;  %v3768_v26 = vld [vmem:[#allocation11 + $0x688] sm:$0xff]  ;;  %v3617_v60 = vld [vmem:[#allocation11 + $0x1d0] sm:$0xff] }
 0x398   :  { %v3772_v27 = vld [vmem:[#allocation11 + $0x6a8] sm:$0xff] }
 0x399   :  { %v3896_v28 = vld [vmem:[#allocation11 + $0xa88] sm:$0xff] }
 0x39a   :  { %6899 = vmatpush1.bf16.msra.mxu1 %v8685_v11  ;;  %6942 = vmatpush1.bf16.msra.mxu0 %v8813_v14  ;;  %v3908_v11 = vld [vmem:[#allocation11 + $0xae8] sm:$0xff]  ;;  %v8765_v14 = vcombine.low %v3784_v1, %v3788_v3 }
 0x39b   :  { %6900 = vmatprep.subr.bf16.mxu1 %v8678_v15  ;;  %6943 = vmatprep.subr.bf16.mxu0 %v8806_v18  ;;  %v8893_v15 = vcombine.low %v3912_v4, %v3916_v5  ;;  %v8758_v18 = vcombine.high %v3776_v39, %v3780_v41  ;;  %v8886_v20 = vcombine.high %v3904_v8, %v3908_v11  ;;  %v3760_v22 = vld [vmem:[#allocation11 + $0x648] sm:$0xff]  ;;  %v3609_v5 = vld [vmem:[#allocation11 + $0x190] sm:$0xff] }
 0x39c   :  { %v3764_v44 = vld [vmem:[#allocation11 + $0x668] sm:$0xff] }
 0x39d   :  { %v3888_v56 = vld [vmem:[#allocation11 + $0xa48] sm:$0xff] }
 0x39e   :  { %6901 = vmatpush1.bf16.msra.mxu1 %v8677_v23  ;;  %6944 = vmatpush1.bf16.msra.mxu0 %v8805_v32  ;;  %v3900_v23 = vld [vmem:[#allocation11 + $0xaa8] sm:$0xff]  ;;  %v8757_v32 = vcombine.low %v3776_v39, %v3780_v41 }
 0x39f   :  { %6902 = vmatprep.subr.bf16.mxu1 %v8670_v34  ;;  %6945 = vmatprep.subr.bf16.mxu0 %v8798_v12  ;;  %v8885_v34 = vcombine.low %v3904_v8, %v3908_v11  ;;  %v8750_v12 = vcombine.high %v3768_v26, %v3772_v27  ;;  %v8878_v38 = vcombine.high %v3896_v28, %v3900_v23  ;;  %v3752_v55 = vld [vmem:[#allocation11 + $0x608] sm:$0xff]  ;;  %v3601_v11 = vld [vmem:[#allocation11 + $0x150] sm:$0xff] }
 0x3a0   :  { %v3756_v58 = vld [vmem:[#allocation11 + $0x628] sm:$0xff] }
 0x3a1   :  { %v3880_v59 = vld [vmem:[#allocation11 + $0xa08] sm:$0xff] }
 0x3a2   :  { %6903 = vmatpush1.bf16.msra.mxu1 %v8669_v31  ;;  %6946 = vmatpush1.bf16.msra.mxu0 %v8797_v33  ;;  %v3892_v31 = vld [vmem:[#allocation11 + $0xa68] sm:$0xff]  ;;  %v8749_v33 = vcombine.low %v3768_v26, %v3772_v27 }
 0x3a3   :  { %6904 = vmatprep.subr.bf16.mxu1 %v8790_v46  ;;  %6947 = vmatprep.subr.bf16.mxu0 %v8918_v49  ;;  %v8877_v46 = vcombine.low %v3896_v28, %v3900_v23  ;;  %v8742_v49 = vcombine.high %v3760_v22, %v3764_v44  ;;  %v8870_v51 = vcombine.high %v3888_v56, %v3892_v31  ;;  %v4000_v19 = vld [vmem:[#allocation11 + $0xdc8] sm:$0xff]  ;;  %v3593_v23 = vld [vmem:[#allocation11 + $0x110] sm:$0xff] }
 0x3a4   :  { %v4004_v21 = vld [vmem:[#allocation11 + $0xde8] sm:$0xff] }
 0x3a5   :  { %v3992_v3 = vld [vmem:[#allocation11 + $0xd88] sm:$0xff] }
 0x3a6   :  { %6905 = vmatpush2.bf16.msra.mxu1 %v8789_v57  ;;  %6948 = vmatpush2.bf16.msra.mxu0 %v8917_v47  ;;  %v3884_v57 = vld [vmem:[#allocation11 + $0xa28] sm:$0xff]  ;;  %v8741_v47 = vcombine.low %v3760_v22, %v3764_v44 }
 0x3a7   :  { %6906 = vmatprep.subr.bf16.mxu1 %v8782_v52  ;;  %6949 = vmatprep.subr.bf16.mxu0 %v8910_v9  ;;  %v8869_v52 = vcombine.low %v3888_v56, %v3892_v31  ;;  %v8734_v9 = vcombine.high %v3752_v55, %v3756_v58  ;;  %v8862_v16 = vcombine.high %v3880_v59, %v3884_v57  ;;  %v3996_v4 = vld [vmem:[#allocation11 + $0xda8] sm:$0xff]  ;;  %v3585_v31 = vld [vmem:[#allocation11 + $0xd0] sm:$0xff] }
 0x3a8   :  { %v3984_v41 = vld [vmem:[#allocation11 + $0xd48] sm:$0xff] }
 0x3a9   :  { %v3988_v8 = vld [vmem:[#allocation11 + $0xd68] sm:$0xff] }
 0x3aa   :  { %6907 = vmatpush2.bf16.msra.mxu1 %v8781_v61  ;;  %6950 = vmatpush2.bf16.msra.mxu0 %v8909_v62  ;;  %v3621_v61 = vld [vmem:[#allocation11 + $0x1f0] sm:$0xff]  ;;  %v8733_v62 = vcombine.low %v3752_v55, %v3756_v58  ;;  %v3976_v27 = vld [vmem:[#allocation11 + $0xd08] sm:$0xff] }
 0x3ab   :  { %6908 = vmatprep.subr.bf16.mxu1 %v8774_v63  ;;  %6951 = vmatprep.subr.bf16.mxu0 %v8902_v25  ;;  %v8861_v63 = vcombine.low %v3880_v59, %v3884_v57  ;;  %v8982_v25 = vcombine.high %v4000_v19, %v4004_v21  ;;  %v8600_v1 = vcombine.high %v3617_v60, %v3621_v61  ;;  %v3980_v28 = vld [vmem:[#allocation11 + $0xd28] sm:$0xff]  ;;  %v3577_v57 = vld [vmem:[#allocation11 + $0x90] sm:$0xff] }
 0x3ac   :  { %v3968_v44 = vld [vmem:[#allocation11 + $0xcc8] sm:$0xff] }
 0x3ad   :  { %v3972_v56 = vld [vmem:[#allocation11 + $0xce8] sm:$0xff] }
 0x3ae   :  { %6909 = vmatpush2.bf16.msra.mxu1 %v8773_v6  ;;  %6952 = vmatpush2.bf16.msra.mxu0 %v8901_v43  ;;  %v3613_v6 = vld [vmem:[#allocation11 + $0x1b0] sm:$0xff]  ;;  %v8981_v43 = vcombine.low %v4000_v19, %v4004_v21  ;;  %v3960_v58 = vld [vmem:[#allocation11 + $0xc88] sm:$0xff] }
 0x3af   :  { %6910 = vmatprep.subr.bf16.mxu1 %v8766_v7  ;;  %6953 = vmatprep.subr.bf16.mxu0 %v8894_v54  ;;  %v8599_v7 = vcombine.low %v3617_v60, %v3621_v61  ;;  %v8974_v54 = vcombine.high %v3992_v3, %v3996_v4  ;;  %v8592_v39 = vcombine.high %v3609_v5, %v3613_v6  ;;  %v3964_v59 = vld [vmem:[#allocation11 + $0xca8] sm:$0xff]  ;;  %v3569_v61 = vld [vmem:[#allocation11 + $0x50] sm:$0xff] }
 0x3b0   :  { %v3952_v21 = vld [vmem:[#allocation11 + $0xc48] sm:$0xff] }
 0x3b1   :  { %v3956_v60 = vld [vmem:[#allocation11 + $0xc68] sm:$0xff] }
 0x3b2   :  { %6911 = vmatpush2.bf16.msra.mxu1 %v8765_v14  ;;  %6954 = vmatpush2.bf16.msra.mxu0 %v8893_v15  ;;  %v3605_v14 = vld [vmem:[#allocation11 + $0x170] sm:$0xff]  ;;  %v8973_v15 = vcombine.low %v3992_v3, %v3996_v4  ;;  %v3944_v4 = vld [vmem:[#allocation11 + $0xc08] sm:$0xff] }
 0x3b3   :  { %6912 = vmatprep.subr.bf16.mxu1 %v8758_v18  ;;  %6955 = vmatprep.subr.bf16.mxu0 %v8886_v20  ;;  %v8591_v18 = vcombine.low %v3609_v5, %v3613_v6  ;;  %v8966_v20 = vcombine.high %v3984_v41, %v3988_v8  ;;  %v8584_v26 = vcombine.high %v3601_v11, %v3605_v14  ;;  %v3948_v5 = vld [vmem:[#allocation11 + $0xc28] sm:$0xff]  ;;  %v3561_v6 = vld [vmem:[#allocation11 + $0x10] sm:$0xff] }
 0x3b6   :  { %6913 = vmatpush2.bf16.msra.mxu1 %v8757_v32  ;;  %6956 = vmatpush2.bf16.msra.mxu0 %v8885_v34  ;;  %v3597_v32 = vld [vmem:[#allocation11 + $0x130] sm:$0xff]  ;;  %v8965_v34 = vcombine.low %v3984_v41, %v3988_v8  ;;  %v4064_v8 = vld [vmem:[#allocation11 + $0xfc8] sm:$0xff] }
 0x3b7   :  { %6914 = vmatprep.subr.bf16.mxu1 %v8750_v12  ;;  %6957 = vmatprep.subr.bf16.mxu0 %v8878_v38  ;;  %v8583_v12 = vcombine.low %v3601_v11, %v3605_v14  ;;  %v8958_v38 = vcombine.high %v3976_v27, %v3980_v28  ;;  %v8576_v22 = vcombine.high %v3593_v23, %v3597_v32  ;;  %v4068_v11 = vld [vmem:[#allocation11 + $0xfe8] sm:$0xff]  ;;  %v3681_v14 = vld [vmem:[#allocation11 + $0x3d0] sm:$0xff] }
 0x3ba   :  { %6915 = vmatpush2.bf16.msra.mxu1 %v8749_v33  ;;  %6958 = vmatpush2.bf16.msra.mxu0 %v8877_v46  ;;  %v3589_v33 = vld [vmem:[#allocation11 + $0xf0] sm:$0xff]  ;;  %v8957_v46 = vcombine.low %v3976_v27, %v3980_v28  ;;  %v4056_v28 = vld [vmem:[#allocation11 + $0xf88] sm:$0xff] }
 0x3bb   :  { %6916 = vmatprep.subr.bf16.mxu1 %v8742_v49  ;;  %6959 = vmatprep.subr.bf16.mxu0 %v8870_v51  ;;  %v8575_v49 = vcombine.low %v3593_v23, %v3597_v32  ;;  %v8950_v51 = vcombine.high %v3968_v44, %v3972_v56  ;;  %v8568_v55 = vcombine.high %v3585_v31, %v3589_v33  ;;  %v4060_v23 = vld [vmem:[#allocation11 + $0xfa8] sm:$0xff]  ;;  %v3673_v32 = vld [vmem:[#allocation11 + $0x390] sm:$0xff] }
 0x3be   :  { %6917 = vmatpush2.bf16.msra.mxu1 %v8741_v47  ;;  %6960 = vmatpush2.bf16.msra.mxu0 %v8869_v52  ;;  %v3581_v47 = vld [vmem:[#allocation11 + $0xb0] sm:$0xff]  ;;  %v8949_v52 = vcombine.low %v3968_v44, %v3972_v56  ;;  %v4048_v56 = vld [vmem:[#allocation11 + $0xf48] sm:$0xff] }
 0x3bf   :  { %6918 = vmatprep.subr.bf16.mxu1 %v8734_v9  ;;  %6961 = vmatprep.subr.bf16.mxu0 %v8862_v16  ;;  %v8567_v9 = vcombine.low %v3585_v31, %v3589_v33  ;;  %v8942_v16 = vcombine.high %v3960_v58, %v3964_v59  ;;  %v8560_v19 = vcombine.high %v3577_v57, %v3581_v47  ;;  %v4052_v31 = vld [vmem:[#allocation11 + $0xf68] sm:$0xff]  ;;  %v3665_v33 = vld [vmem:[#allocation11 + $0x350] sm:$0xff] }
 0x3c2   :  { %6919 = vmatpush2.bf16.msra.mxu1 %v8733_v62  ;;  %6962 = vmatpush2.bf16.msra.mxu0 %v8861_v63  ;;  %v3573_v62 = vld [vmem:[#allocation11 + $0x70] sm:$0xff]  ;;  %v8941_v63 = vcombine.low %v3960_v58, %v3964_v59  ;;  %v4040_v59 = vld [vmem:[#allocation11 + $0xf08] sm:$0xff] }
 0x3c3   :  { %6974 = vmatprep.subr.bf16.mxu1 %v8982_v25  ;;  %7017 = vmatprep.subr.bf16.mxu0 %v8600_v1  ;;  %v8559_v25 = vcombine.low %v3577_v57, %v3581_v47  ;;  %v8934_v1 = vcombine.high %v3952_v21, %v3956_v60  ;;  %v8552_v3 = vcombine.high %v3569_v61, %v3573_v62  ;;  %v4044_v57 = vld [vmem:[#allocation11 + $0xf28] sm:$0xff]  ;;  %v3657_v47 = vld [vmem:[#allocation11 + $0x310] sm:$0xff] }
 0x3c5   :  { %6921 = vmatmul.mubr.bf16.vlgmr.msra.gmra.mxu1 %v9977_v48  ;;  %6964 = vmatmul.mubr.bf16.vlgmr.msra.gmra.mxu0 %v9995_v37 }
 0x3c6   :  { %6975 = vmatpush1.bf16.msra.mxu1 %v8981_v43  ;;  %7006 = vmatprep.mubr.bf16.mxu1 %v10011_v29  ;;  %v3565_v43 = vld [vmem:[#allocation11 + $0x30] sm:$0xff] }
 0x3c7   :  { %7018 = vmatpush1.bf16.msra.mxu0 %v8599_v7  ;;  %7049 = vmatprep.mubr.bf16.mxu0 %v9941_v10  ;;  %v8933_v7 = vcombine.low %v3952_v21, %v3956_v60  ;;  %v8544_v41 = vcombine.high %v3561_v6, %v3565_v43  ;;  %v4032_v60 = vld [vmem:[#allocation11 + $0xec8] sm:$0xff] }
 0x3c8   :  { %6976 = vmatprep.subr.bf16.mxu1 %v8974_v54  ;;  %7019 = vmatprep.subr.bf16.mxu0 %v8592_v39  ;;  %v8551_v54 = vcombine.low %v3569_v61, %v3573_v62  ;;  %v8926_v39 = vcombine.high %v3944_v4, %v3948_v5  ;;  %v4036_v61 = vld [vmem:[#allocation11 + $0xee8] sm:$0xff]  ;;  %v3649_v62 = vld [vmem:[#allocation11 + $0x2d0] sm:$0xff] }
 0x3ca   :  { %6977 = vmatpush1.bf16.msra.mxu1 %v8973_v15  ;;  %v3685_v15 = vld [vmem:[#allocation11 + $0x3f0] sm:$0xff] }
 0x3cb   :  { %7020 = vmatpush1.bf16.msra.mxu0 %v8591_v18  ;;  %6978 = vmatprep.subr.bf16.mxu1 %v8966_v20  ;;  %v8925_v18 = vcombine.low %v3944_v4, %v3948_v5  ;;  %v8543_v20 = vcombine.low %v3561_v6, %v3565_v43  ;;  %v8664_v27 = vcombine.high %v3681_v14, %v3685_v15  ;;  %v4024_v5 = vld [vmem:[#allocation11 + $0xe88] sm:$0xff]  ;;  %v3641_v43 = vld [vmem:[#allocation11 + $0x290] sm:$0xff] }
 0x3cc   :  { %7021 = vmatprep.subr.bf16.mxu0 %v8584_v26  ;;  %v9046_v26 = vcombine.high %v4064_v8, %v4068_v11  ;;  %v4028_v6 = vld [vmem:[#allocation11 + $0xea8] sm:$0xff] }
 0x3ce   :  { %6979 = vmatpush1.bf16.msra.mxu1 %v8965_v34  ;;  %v3677_v34 = vld [vmem:[#allocation11 + $0x3b0] sm:$0xff] }
 0x3cf   :  { %7022 = vmatpush1.bf16.msra.mxu0 %v8583_v12  ;;  %6980 = vmatprep.subr.bf16.mxu1 %v8958_v38  ;;  %v9045_v12 = vcombine.low %v4064_v8, %v4068_v11  ;;  %v8663_v38 = vcombine.low %v3681_v14, %v3685_v15  ;;  %v8656_v44 = vcombine.high %v3673_v32, %v3677_v34  ;;  %v4016_v11 = vld [vmem:[#allocation11 + $0xe48] sm:$0xff]  ;;  %v3633_v15 = vld [vmem:[#allocation11 + $0x250] sm:$0xff] }
 0x3d0   :  { %7023 = vmatprep.subr.bf16.mxu0 %v8576_v22  ;;  %v9038_v22 = vcombine.high %v4056_v28, %v4060_v23  ;;  %v4020_v14 = vld [vmem:[#allocation11 + $0xe68] sm:$0xff] }
 0x3d2   :  { %6981 = vmatpush1.bf16.msra.mxu1 %v8957_v46  ;;  %v3669_v46 = vld [vmem:[#allocation11 + $0x370] sm:$0xff] }
 0x3d3   :  { %7024 = vmatpush1.bf16.msra.mxu0 %v8575_v49  ;;  %6982 = vmatprep.subr.bf16.mxu1 %v8950_v51  ;;  %v9037_v49 = vcombine.low %v4056_v28, %v4060_v23  ;;  %v8655_v51 = vcombine.low %v3673_v32, %v3677_v34  ;;  %v8648_v58 = vcombine.high %v3665_v33, %v3669_v46  ;;  %v4008_v23 = vld [vmem:[#allocation11 + $0xe08] sm:$0xff]  ;;  %v3625_v34 = vld [vmem:[#allocation11 + $0x210] sm:$0xff] }
 0x3d4   :  { %7025 = vmatprep.subr.bf16.mxu0 %v8568_v55  ;;  %v9030_v55 = vcombine.high %v4048_v56, %v4052_v31  ;;  %v4012_v32 = vld [vmem:[#allocation11 + $0xe28] sm:$0xff] }
 0x3d6   :  { %6983 = vmatpush1.bf16.msra.mxu1 %v8949_v52  ;;  %v3661_v52 = vld [vmem:[#allocation11 + $0x330] sm:$0xff] }
 0x3d7   :  { %7026 = vmatpush1.bf16.msra.mxu0 %v8567_v9  ;;  %6984 = vmatprep.subr.bf16.mxu1 %v8942_v16  ;;  %v9029_v9 = vcombine.low %v4048_v56, %v4052_v31  ;;  %v8647_v16 = vcombine.low %v3665_v33, %v3669_v46  ;;  %v8640_v21 = vcombine.high %v3657_v47, %v3661_v52  ;;  %v3745_v31 = vld [vmem:[#allocation11 + $0x5d0] sm:$0xff] }
 0x3d8   :  { %7027 = vmatprep.subr.bf16.mxu0 %v8560_v19  ;;  %v9022_v19 = vcombine.high %v4040_v59, %v4044_v57  ;;  %v3749_v33 = vld [vmem:[#allocation11 + $0x5f0] sm:$0xff] }
 0x3d9   :  { %v3873_v46 = vld [vmem:[#allocation11 + $0x9d0] sm:$0xff] }
 0x3da   :  { %6985 = vmatpush1.bf16.msra.mxu1 %v8941_v63  ;;  %v3653_v63 = vld [vmem:[#allocation11 + $0x2f0] sm:$0xff] }
 0x3db   :  { %7028 = vmatpush1.bf16.msra.mxu0 %v8559_v25  ;;  %6986 = vmatprep.subr.bf16.mxu1 %v8934_v1  ;;  %v9021_v25 = vcombine.low %v4040_v59, %v4044_v57  ;;  %v8639_v1 = vcombine.low %v3657_v47, %v3661_v52  ;;  %v8632_v4 = vcombine.high %v3649_v62, %v3653_v63  ;;  %v3737_v57 = vld [vmem:[#allocation11 + $0x590] sm:$0xff] }
 0x3dc   :  { %7029 = vmatprep.subr.bf16.mxu0 %v8552_v3  ;;  %v9014_v3 = vcombine.high %v4032_v60, %v4036_v61  ;;  %v3741_v47 = vld [vmem:[#allocation11 + $0x5b0] sm:$0xff]  ;;  %v8727_v52 = vcombine.low %v3745_v31, %v3749_v33 }
 0x3de   :  { %6987 = vmatpush1.bf16.msra.mxu1 %v8933_v7  ;;  %v3645_v7 = vld [vmem:[#allocation11 + $0x2b0] sm:$0xff] }
 0x3df   :  { %7030 = vmatpush1.bf16.msra.mxu0 %v8551_v54  ;;  %6988 = vmatprep.subr.bf16.mxu1 %v8926_v39  ;;  %v9013_v54 = vcombine.low %v4032_v60, %v4036_v61  ;;  %v8631_v39 = vcombine.low %v3649_v62, %v3653_v63  ;;  %v8624_v8 = vcombine.high %v3641_v43, %v3645_v7  ;;  %v3729_v60 = vld [vmem:[#allocation11 + $0x550] sm:$0xff] }
 0x3e0   :  { %7031 = vmatprep.subr.bf16.mxu0 %v8544_v41  ;;  %v9006_v41 = vcombine.high %v4024_v5, %v4028_v6  ;;  %v3733_v61 = vld [vmem:[#allocation11 + $0x570] sm:$0xff] }
 0x3e1   :  { %v3857_v63 = vld [vmem:[#allocation11 + $0x950] sm:$0xff] }
 0x3e2   :  { %6989 = vmatpush1.bf16.msra.mxu1 %v8925_v18  ;;  %v3637_v18 = vld [vmem:[#allocation11 + $0x270] sm:$0xff] }
 0x3e3   :  { %7032 = vmatpush1.bf16.msra.mxu0 %v8543_v20  ;;  %6990 = vmatprep.subr.bf16.mxu1 %v9046_v26  ;;  %v9005_v20 = vcombine.low %v4024_v5, %v4028_v6  ;;  %v8623_v26 = vcombine.low %v3641_v43, %v3645_v7  ;;  %v8616_v28 = vcombine.high %v3633_v15, %v3637_v18  ;;  %v3721_v6 = vld [vmem:[#allocation11 + $0x510] sm:$0xff] }
 0x3e4   :  { %7033 = vmatprep.subr.bf16.mxu0 %v8664_v27  ;;  %v8998_v27 = vcombine.high %v4016_v11, %v4020_v14  ;;  %v3725_v43 = vld [vmem:[#allocation11 + $0x530] sm:$0xff] }
 0x3e5   :  { %v3849_v7 = vld [vmem:[#allocation11 + $0x910] sm:$0xff] }
 0x3e6   :  { %6991 = vmatpush2.bf16.msra.mxu1 %v9045_v12  ;;  %v3629_v12 = vld [vmem:[#allocation11 + $0x230] sm:$0xff] }
 0x3e7   :  { %7034 = vmatpush2.bf16.msra.mxu0 %v8663_v38  ;;  %6992 = vmatprep.subr.bf16.mxu1 %v9038_v22  ;;  %v8997_v38 = vcombine.low %v4016_v11, %v4020_v14  ;;  %v8615_v22 = vcombine.low %v3633_v15, %v3637_v18  ;;  %v8608_v56 = vcombine.high %v3625_v34, %v3629_v12  ;;  %v3713_v14 = vld [vmem:[#allocation11 + $0x4d0] sm:$0xff] }
 0x3e8   :  { %7035 = vmatprep.subr.bf16.mxu0 %v8656_v44  ;;  %v8990_v44 = vcombine.high %v4008_v23, %v4012_v32  ;;  %v3717_v15 = vld [vmem:[#allocation11 + $0x4f0] sm:$0xff] }
 0x3e9   :  { %v3841_v18 = vld [vmem:[#allocation11 + $0x8d0] sm:$0xff] }
 0x3ea   :  { %6993 = vmatpush2.bf16.msra.mxu1 %v9037_v49  ;;  %v3877_v49 = vld [vmem:[#allocation11 + $0x9f0] sm:$0xff] }
 0x3eb   :  { %7036 = vmatpush2.bf16.msra.mxu0 %v8655_v51  ;;  %6994 = vmatprep.subr.bf16.mxu1 %v9030_v55  ;;  %v8989_v51 = vcombine.low %v4008_v23, %v4012_v32  ;;  %v8607_v55 = vcombine.low %v3625_v34, %v3629_v12  ;;  %v8856_v59 = vcombine.high %v3873_v46, %v3877_v49  ;;  %v3705_v32 = vld [vmem:[#allocation11 + $0x490] sm:$0xff] }
 0x3ec   :  { %7037 = vmatprep.subr.bf16.mxu0 %v8648_v58  ;;  %v8728_v58 = vcombine.high %v3745_v31, %v3749_v33  ;;  %v3709_v34 = vld [vmem:[#allocation11 + $0x4b0] sm:$0xff] }
 0x3ed   :  { %v3833_v12 = vld [vmem:[#allocation11 + $0x890] sm:$0xff] }
 0x3ee   :  { %6995 = vmatpush2.bf16.msra.mxu1 %v9029_v9  ;;  %v3865_v9 = vld [vmem:[#allocation11 + $0x990] sm:$0xff] }
 0x3ef   :  { %7038 = vmatpush2.bf16.msra.mxu0 %v8647_v16  ;;  %6996 = vmatprep.subr.bf16.mxu1 %v9022_v19  ;;  %v3869_v16 = vld [vmem:[#allocation11 + $0x9b0] sm:$0xff]  ;;  %v8855_v19 = vcombine.low %v3873_v46, %v3877_v49 }
 0x3f0   :  { %7039 = vmatprep.subr.bf16.mxu0 %v8640_v21  ;;  %v8720_v21 = vcombine.high %v3737_v57, %v3741_v47  ;;  %v8848_v62 = vcombine.high %v3865_v9, %v3869_v16  ;;  %v3697_v33 = vld [vmem:[#allocation11 + $0x450] sm:$0xff] }
 0x3f1   :  { %v3701_v46 = vld [vmem:[#allocation11 + $0x470] sm:$0xff] }
 0x3f2   :  { %6997 = vmatpush2.bf16.msra.mxu1 %v9021_v25  ;;  %v3861_v25 = vld [vmem:[#allocation11 + $0x970] sm:$0xff] }
 0x3f3   :  { %7040 = vmatpush2.bf16.msra.mxu0 %v8639_v1  ;;  %6998 = vmatprep.subr.bf16.mxu1 %v9014_v3  ;;  %v8719_v1 = vcombine.low %v3737_v57, %v3741_v47  ;;  %v8847_v3 = vcombine.low %v3865_v9, %v3869_v16  ;;  %v8840_v5 = vcombine.high %v3857_v63, %v3861_v25  ;;  %v3825_v49 = vld [vmem:[#allocation11 + $0x850] sm:$0xff] }
 0x3f4   :  { %7041 = vmatprep.subr.bf16.mxu0 %v8632_v4  ;;  %v8712_v4 = vcombine.high %v3729_v60, %v3733_v61  ;;  %v3689_v47 = vld [vmem:[#allocation11 + $0x410] sm:$0xff] }
 0x3f5   :  { %v3817_v9 = vld [vmem:[#allocation11 + $0x810] sm:$0xff] }
 0x3f6   :  { %6999 = vmatpush2.bf16.msra.mxu1 %v9013_v54  ;;  %v3853_v54 = vld [vmem:[#allocation11 + $0x930] sm:$0xff] }
 0x3f7   :  { %7042 = vmatpush2.bf16.msra.mxu0 %v8631_v39  ;;  %7000 = vmatprep.subr.bf16.mxu1 %v9006_v41  ;;  %v8711_v39 = vcombine.low %v3729_v60, %v3733_v61  ;;  %v8839_v41 = vcombine.low %v3857_v63, %v3861_v25  ;;  %v8832_v11 = vcombine.high %v3849_v7, %v3853_v54  ;;  %v3821_v16 = vld [vmem:[#allocation11 + $0x830] sm:$0xff] }
 0x3f8   :  { %7043 = vmatprep.subr.bf16.mxu0 %v8624_v8  ;;  %v8704_v8 = vcombine.high %v3721_v6, %v3725_v43  ;;  %v8800_v61 = vcombine.high %v3817_v9, %v3821_v16  ;;  %v3813_v63 = vld [vmem:[#allocation11 + $0x7f0] sm:$0xff] }
 0x3f9   :  { %v3937_v25 = vld [vmem:[#allocation11 + $0xbd0] sm:$0xff] }
 0x3fa   :  { %7001 = vmatpush2.bf16.msra.mxu1 %v9005_v20  ;;  %v3845_v20 = vld [vmem:[#allocation11 + $0x8f0] sm:$0xff] }
 0x3fb   :  { %7044 = vmatpush2.bf16.msra.mxu0 %v8623_v26  ;;  %7002 = vmatprep.subr.bf16.mxu1 %v8998_v27  ;;  %v8703_v26 = vcombine.low %v3721_v6, %v3725_v43  ;;  %v8831_v27 = vcombine.low %v3849_v7, %v3853_v54  ;;  %v8824_v23 = vcombine.high %v3841_v18, %v3845_v20  ;;  %v3801_v43 = vld [vmem:[#allocation11 + $0x790] sm:$0xff] }
 0x3fc   :  { %7045 = vmatprep.subr.bf16.mxu0 %v8616_v28  ;;  %v8696_v28 = vcombine.high %v3713_v14, %v3717_v15  ;;  %v3805_v7 = vld [vmem:[#allocation11 + $0x7b0] sm:$0xff] }
 0x3fd   :  { %v3929_v54 = vld [vmem:[#allocation11 + $0xb90] sm:$0xff] }
 0x3fe   :  { %7003 = vmatpush2.bf16.msra.mxu1 %v8997_v38  ;;  %v3837_v38 = vld [vmem:[#allocation11 + $0x8b0] sm:$0xff] }
 0x3ff   :  { %7046 = vmatpush2.bf16.msra.mxu0 %v8615_v22  ;;  %7004 = vmatprep.subr.bf16.mxu1 %v8990_v44  ;;  %v8695_v22 = vcombine.low %v3713_v14, %v3717_v15  ;;  %v8823_v44 = vcombine.low %v3841_v18, %v3845_v20  ;;  %v8816_v31 = vcombine.high %v3833_v12, %v3837_v38  ;;  %v3793_v15 = vld [vmem:[#allocation11 + $0x750] sm:$0xff] }
 0x400   :  { %7047 = vmatprep.subr.bf16.mxu0 %v8608_v56  ;;  %v8688_v56 = vcombine.high %v3705_v32, %v3709_v34  ;;  %v3797_v18 = vld [vmem:[#allocation11 + $0x770] sm:$0xff] }
 0x401   :  { %v3921_v20 = vld [vmem:[#allocation11 + $0xb50] sm:$0xff] }
 0x402   :  { %7005 = vmatpush2.bf16.msra.mxu1 %v8989_v51  ;;  %v3829_v51 = vld [vmem:[#allocation11 + $0x870] sm:$0xff] }
 0x403   :  { %7048 = vmatpush2.bf16.msra.mxu0 %v8607_v55  ;;  %7060 = vmatprep.subr.bf16.mxu1 %v8728_v58  ;;  %v8687_v55 = vcombine.low %v3705_v32, %v3709_v34  ;;  %v8815_v58 = vcombine.low %v3833_v12, %v3837_v38  ;;  %v8808_v57 = vcombine.high %v3825_v49, %v3829_v51  ;;  %v3785_v34 = vld [vmem:[#allocation11 + $0x710] sm:$0xff] }
 0x404   :  { %7103 = vmatprep.subr.bf16.mxu0 %v8856_v59  ;;  %v8680_v59 = vcombine.high %v3697_v33, %v3701_v46  ;;  %v3789_v12 = vld [vmem:[#allocation11 + $0x730] sm:$0xff] }
 0x405   :  { %7007 = vmatmul.mubr.bf16.vlgmr.msra.gmra.mxu1 %v10013_v24  ;;  %v3913_v38 = vld [vmem:[#allocation11 + $0xb10] sm:$0xff] }
 0x406   :  { %7050 = vmatmul.mubr.bf16.vlgmr.msra.gmra.mxu0 %v9947_v17  ;;  %7061 = vmatpush1.bf16.msra.mxu1 %v8727_v52  ;;  %v3693_v52 = vld [vmem:[#allocation11 + $0x430] sm:$0xff] }
 0x407   :  { %7092 = vmatprep.mubr.bf16.mxu1 %v9969_v45  ;;  %7104 = vmatpush1.bf16.msra.mxu0 %v8855_v19  ;;  %v8679_v19 = vcombine.low %v3697_v33, %v3701_v46  ;;  %v8672_v60 = vcombine.high %v3689_v47, %v3693_v52  ;;  %v3777_v46 = vld [vmem:[#allocation11 + $0x6d0] sm:$0xff] }
 0x408   :  { %7135 = vmatprep.mubr.bf16.mxu0 %v9993_v36  ;;  %7062 = vmatprep.subr.bf16.mxu1 %v8720_v21  ;;  %v8807_v21 = vcombine.low %v3825_v49, %v3829_v51  ;;  %v3781_v49 = vld [vmem:[#allocation11 + $0x6f0] sm:$0xff] }
 0x409   :  { %7105 = vmatprep.subr.bf16.mxu0 %v8848_v62  ;;  %v3809_v62 = vld [vmem:[#allocation11 + $0x7d0] sm:$0xff] }
 0x40a   :  { %7063 = vmatpush1.bf16.msra.mxu1 %v8719_v1  ;;  %v3941_v1 = vld [vmem:[#allocation11 + $0xbf0] sm:$0xff] }
 0x40b   :  { %7106 = vmatpush1.bf16.msra.mxu0 %v8847_v3  ;;  %7064 = vmatprep.subr.bf16.mxu1 %v8712_v4  ;;  %v8671_v3 = vcombine.low %v3689_v47, %v3693_v52  ;;  %v8799_v4 = vcombine.low %v3817_v9, %v3821_v16  ;;  %v8920_v6 = vcombine.high %v3937_v25, %v3941_v1  ;;  %v3905_v51 = vld [vmem:[#allocation11 + $0xad0] sm:$0xff] }
 0x40c   :  { %7107 = vmatprep.subr.bf16.mxu0 %v8840_v5  ;;  %v8792_v5 = vcombine.high %v3809_v62, %v3813_v63  ;;  %v3769_v52 = vld [vmem:[#allocation11 + $0x690] sm:$0xff] }
 0x40d   :  { %v3773_v9 = vld [vmem:[#allocation11 + $0x6b0] sm:$0xff] }
 0x40e   :  { %7065 = vmatpush1.bf16.msra.mxu1 %v8711_v39  ;;  %v3933_v39 = vld [vmem:[#allocation11 + $0xbb0] sm:$0xff] }
 0x40f   :  { %7108 = vmatpush1.bf16.msra.mxu0 %v8839_v41  ;;  %7066 = vmatprep.subr.bf16.mxu1 %v8704_v8  ;;  %v8791_v41 = vcombine.low %v3809_v62, %v3813_v63  ;;  %v8919_v8 = vcombine.low %v3937_v25, %v3941_v1  ;;  %v8912_v14 = vcombine.high %v3929_v54, %v3933_v39  ;;  %v3897_v16 = vld [vmem:[#allocation11 + $0xa90] sm:$0xff] }
 0x410   :  { %7109 = vmatprep.subr.bf16.mxu0 %v8832_v11  ;;  %v8784_v11 = vcombine.high %v3801_v43, %v3805_v7  ;;  %v3761_v63 = vld [vmem:[#allocation11 + $0x650] sm:$0xff] }
 0x411   :  { %v3765_v25 = vld [vmem:[#allocation11 + $0x670] sm:$0xff] }
 0x412   :  { %7067 = vmatpush1.bf16.msra.mxu1 %v8703_v26  ;;  %v3925_v26 = vld [vmem:[#allocation11 + $0xb70] sm:$0xff] }
 0x413   :  { %7110 = vmatpush1.bf16.msra.mxu0 %v8831_v27  ;;  %7068 = vmatprep.subr.bf16.mxu1 %v8696_v28  ;;  %v8783_v27 = vcombine.low %v3801_v43, %v3805_v7  ;;  %v8911_v28 = vcombine.low %v3929_v54, %v3933_v39  ;;  %v8904_v32 = vcombine.high %v3921_v20, %v3925_v26  ;;  %v3889_v1 = vld [vmem:[#allocation11 + $0xa50] sm:$0xff] }
 0x414   :  { %7111 = vmatprep.subr.bf16.mxu0 %v8824_v23  ;;  %v8776_v23 = vcombine.high %v3793_v15, %v3797_v18  ;;  %v3753_v7 = vld [vmem:[#allocation11 + $0x610] sm:$0xff] }
 0x415   :  { %v3757_v54 = vld [vmem:[#allocation11 + $0x630] sm:$0xff] }
 0x416   :  { %7069 = vmatpush1.bf16.msra.mxu1 %v8695_v22  ;;  %v3917_v22 = vld [vmem:[#allocation11 + $0xb30] sm:$0xff] }
 0x417   :  { %7112 = vmatpush1.bf16.msra.mxu0 %v8823_v44  ;;  %7070 = vmatprep.subr.bf16.mxu1 %v8688_v56  ;;  %v8775_v44 = vcombine.low %v3793_v15, %v3797_v18  ;;  %v8903_v56 = vcombine.low %v3921_v20, %v3925_v26  ;;  %v8896_v33 = vcombine.high %v3913_v38, %v3917_v22  ;;  %v3881_v39 = vld [vmem:[#allocation11 + $0xa10] sm:$0xff]  ;;  %v3618_v26 = vld [vmem:[#allocation11 + $0x1d8] sm:$0xff] }
 0x418   :  { %7113 = vmatprep.subr.bf16.mxu0 %v8816_v31  ;;  %v8768_v31 = vcombine.high %v3785_v34, %v3789_v12  ;;  %v4001_v18 = vld [vmem:[#allocation11 + $0xdd0] sm:$0xff] }
 0x419   :  { %v4005_v20 = vld [vmem:[#allocation11 + $0xdf0] sm:$0xff] }
 0x41a   :  { %7071 = vmatpush1.bf16.msra.mxu1 %v8687_v55  ;;  %v3909_v55 = vld [vmem:[#allocation11 + $0xaf0] sm:$0xff] }
 0x41b   :  { %7114 = vmatpush1.bf16.msra.mxu0 %v8815_v58  ;;  %7072 = vmatprep.subr.bf16.mxu1 %v8680_v59  ;;  %v8767_v58 = vcombine.low %v3785_v34, %v3789_v12  ;;  %v8895_v59 = vcombine.low %v3913_v38, %v3917_v22  ;;  %v8888_v47 = vcombine.high %v3905_v51, %v3909_v55  ;;  %v3993_v12 = vld [vmem:[#allocation11 + $0xd90] sm:$0xff] }
 0x41c   :  { %7115 = vmatprep.subr.bf16.mxu0 %v8808_v57  ;;  %v8760_v57 = vcombine.high %v3777_v46, %v3781_v49  ;;  %v3997_v38 = vld [vmem:[#allocation11 + $0xdb0] sm:$0xff]  ;;  %v8983_v22 = vcombine.low %v4001_v18, %v4005_v20 }
 0x41e   :  { %7073 = vmatpush1.bf16.msra.mxu1 %v8679_v19  ;;  %v3901_v19 = vld [vmem:[#allocation11 + $0xab0] sm:$0xff] }
 0x41f   :  { %7116 = vmatpush1.bf16.msra.mxu0 %v8807_v21  ;;  %7074 = vmatprep.subr.bf16.mxu1 %v8672_v60  ;;  %v8759_v21 = vcombine.low %v3777_v46, %v3781_v49  ;;  %v8887_v60 = vcombine.low %v3905_v51, %v3909_v55  ;;  %v8880_v62 = vcombine.high %v3897_v16, %v3901_v19  ;;  %v3985_v46 = vld [vmem:[#allocation11 + $0xd50] sm:$0xff]  ;;  %v3602_v55 = vld [vmem:[#allocation11 + $0x158] sm:$0xff] }
 0x420   :  { %7117 = vmatprep.subr.bf16.mxu0 %v8800_v61  ;;  %v8752_v61 = vcombine.high %v3769_v52, %v3773_v9  ;;  %v3989_v49 = vld [vmem:[#allocation11 + $0xd70] sm:$0xff] }
 0x422   :  { %7075 = vmatpush1.bf16.msra.mxu1 %v8671_v3  ;;  %v3893_v3 = vld [vmem:[#allocation11 + $0xa70] sm:$0xff] }
 0x423   :  { %7118 = vmatpush1.bf16.msra.mxu0 %v8799_v4  ;;  %7076 = vmatprep.subr.bf16.mxu1 %v8792_v5  ;;  %v8751_v4 = vcombine.low %v3769_v52, %v3773_v9  ;;  %v8879_v5 = vcombine.low %v3897_v16, %v3901_v19  ;;  %v8872_v43 = vcombine.high %v3889_v1, %v3893_v3  ;;  %v3977_v9 = vld [vmem:[#allocation11 + $0xd10] sm:$0xff]  ;;  %v3594_v19 = vld [vmem:[#allocation11 + $0x118] sm:$0xff] }
 0x424   :  { %7119 = vmatprep.subr.bf16.mxu0 %v8920_v6  ;;  %v8744_v6 = vcombine.high %v3761_v63, %v3765_v25  ;;  %v3981_v16 = vld [vmem:[#allocation11 + $0xd30] sm:$0xff] }
 0x426   :  { %7077 = vmatpush2.bf16.msra.mxu1 %v8791_v41  ;;  %v3885_v41 = vld [vmem:[#allocation11 + $0xa30] sm:$0xff] }
 0x427   :  { %7120 = vmatpush2.bf16.msra.mxu0 %v8919_v8  ;;  %7078 = vmatprep.subr.bf16.mxu1 %v8784_v11  ;;  %v8743_v8 = vcombine.low %v3761_v63, %v3765_v25  ;;  %v8871_v11 = vcombine.low %v3889_v1, %v3893_v3  ;;  %v8864_v15 = vcombine.high %v3881_v39, %v3885_v41  ;;  %v3969_v25 = vld [vmem:[#allocation11 + $0xcd0] sm:$0xff]  ;;  %v3586_v3 = vld [vmem:[#allocation11 + $0xd8] sm:$0xff] }
 0x428   :  { %7121 = vmatprep.subr.bf16.mxu0 %v8912_v14  ;;  %v8736_v14 = vcombine.high %v3753_v7, %v3757_v54  ;;  %v3973_v1 = vld [vmem:[#allocation11 + $0xcf0] sm:$0xff] }
 0x42a   :  { %7079 = vmatpush2.bf16.msra.mxu1 %v8783_v27  ;;  %v3622_v27 = vld [vmem:[#allocation11 + $0x1f8] sm:$0xff] }
 0x42b   :  { %7122 = vmatpush2.bf16.msra.mxu0 %v8911_v28  ;;  %7080 = vmatprep.subr.bf16.mxu1 %v8776_v23  ;;  %v8735_v28 = vcombine.low %v3753_v7, %v3757_v54  ;;  %v8863_v23 = vcombine.low %v3881_v39, %v3885_v41  ;;  %v8602_v34 = vcombine.high %v3618_v26, %v3622_v27  ;;  %v3961_v7 = vld [vmem:[#allocation11 + $0xc90] sm:$0xff]  ;;  %v3578_v39 = vld [vmem:[#allocation11 + $0x98] sm:$0xff] }
 0x42c   :  { %7123 = vmatprep.subr.bf16.mxu0 %v8904_v32  ;;  %v8984_v32 = vcombine.high %v4001_v18, %v4005_v20  ;;  %v3965_v54 = vld [vmem:[#allocation11 + $0xcb0] sm:$0xff]  ;;  %v3582_v41 = vld [vmem:[#allocation11 + $0xb8] sm:$0xff] }
 0x42d   :  { %v3953_v18 = vld [vmem:[#allocation11 + $0xc50] sm:$0xff] }
 0x42e   :  { %7081 = vmatpush2.bf16.msra.mxu1 %v8775_v44  ;;  %v3610_v44 = vld [vmem:[#allocation11 + $0x198] sm:$0xff]  ;;  %v3957_v20 = vld [vmem:[#allocation11 + $0xc70] sm:$0xff] }
 0x42f   :  { %7124 = vmatpush2.bf16.msra.mxu0 %v8903_v56  ;;  %7082 = vmatprep.subr.bf16.mxu1 %v8768_v31  ;;  %v3614_v56 = vld [vmem:[#allocation11 + $0x1b8] sm:$0xff]  ;;  %v8601_v31 = vcombine.low %v3618_v26, %v3622_v27 }
 0x430   :  { %7125 = vmatprep.subr.bf16.mxu0 %v8896_v33  ;;  %v8976_v33 = vcombine.high %v3993_v12, %v3997_v38  ;;  %v8594_v51 = vcombine.high %v3610_v44, %v3614_v56  ;;  %v3570_v26 = vld [vmem:[#allocation11 + $0x58] sm:$0xff] }
 0x431   :  { %v3574_v27 = vld [vmem:[#allocation11 + $0x78] sm:$0xff] }
 0x432   :  { %7083 = vmatpush2.bf16.msra.mxu1 %v8767_v58  ;;  %v3606_v58 = vld [vmem:[#allocation11 + $0x178] sm:$0xff] }
 0x433   :  { %7126 = vmatpush2.bf16.msra.mxu0 %v8895_v59  ;;  %7084 = vmatprep.subr.bf16.mxu1 %v8760_v57  ;;  %v8975_v59 = vcombine.low %v3993_v12, %v3997_v38  ;;  %v8593_v57 = vcombine.low %v3610_v44, %v3614_v56  ;;  %v8586_v52 = vcombine.high %v3602_v55, %v3606_v58  ;;  %v3945_v12 = vld [vmem:[#allocation11 + $0xc10] sm:$0xff]  ;;  %v3566_v44 = vld [vmem:[#allocation11 + $0x38] sm:$0xff] }
 0x434   :  { %7127 = vmatprep.subr.bf16.mxu0 %v8888_v47  ;;  %v8968_v47 = vcombine.high %v3985_v46, %v3989_v49  ;;  %v3949_v38 = vld [vmem:[#allocation11 + $0xc30] sm:$0xff]  ;;  %v8935_v56 = vcombine.low %v3953_v18, %v3957_v20 }
 0x436   :  { %7085 = vmatpush2.bf16.msra.mxu1 %v8759_v21  ;;  %v3598_v21 = vld [vmem:[#allocation11 + $0x138] sm:$0xff] }
 0x437   :  { %7128 = vmatpush2.bf16.msra.mxu0 %v8887_v60  ;;  %7086 = vmatprep.subr.bf16.mxu1 %v8752_v61  ;;  %v8967_v60 = vcombine.low %v3985_v46, %v3989_v49  ;;  %v8585_v61 = vcombine.low %v3602_v55, %v3606_v58  ;;  %v8578_v63 = vcombine.high %v3594_v19, %v3598_v21  ;;  %v4065_v49 = vld [vmem:[#allocation11 + $0xfd0] sm:$0xff]  ;;  %v3682_v55 = vld [vmem:[#allocation11 + $0x3d8] sm:$0xff] }
 0x438   :  { %7129 = vmatprep.subr.bf16.mxu0 %v8880_v62  ;;  %v8960_v62 = vcombine.high %v3977_v9, %v3981_v16  ;;  %v3686_v58 = vld [vmem:[#allocation11 + $0x3f8] sm:$0xff] }
 0x43a   :  { %7087 = vmatpush2.bf16.msra.mxu1 %v8751_v4  ;;  %v3590_v4 = vld [vmem:[#allocation11 + $0xf8] sm:$0xff] }
 0x43b   :  { %7130 = vmatpush2.bf16.msra.mxu0 %v8879_v5  ;;  %7088 = vmatprep.subr.bf16.mxu1 %v8744_v6  ;;  %v8577_v5 = vcombine.low %v3594_v19, %v3598_v21  ;;  %v8952_v6 = vcombine.high %v3969_v25, %v3973_v1  ;;  %v3674_v19 = vld [vmem:[#allocation11 + $0x398] sm:$0xff] }
 0x43c   :  { %7131 = vmatprep.subr.bf16.mxu0 %v8872_v43  ;;  %v8570_v43 = vcombine.high %v3586_v3, %v3590_v4  ;;  %v3678_v21 = vld [vmem:[#allocation11 + $0x3b8] sm:$0xff] }
 0x43e   :  { %7089 = vmatpush2.bf16.msra.mxu1 %v8743_v8  ;;  %v8951_v8 = vcombine.low %v3969_v25, %v3973_v1  ;;  %v4049_v25 = vld [vmem:[#allocation11 + $0xf50] sm:$0xff] }
 0x43f   :  { %7132 = vmatpush2.bf16.msra.mxu0 %v8871_v11  ;;  %7090 = vmatprep.subr.bf16.mxu1 %v8736_v14  ;;  %v8569_v11 = vcombine.low %v3586_v3, %v3590_v4  ;;  %v8944_v14 = vcombine.high %v3961_v7, %v3965_v54  ;;  %v4053_v1 = vld [vmem:[#allocation11 + $0xf70] sm:$0xff]  ;;  %v3666_v3 = vld [vmem:[#allocation11 + $0x358] sm:$0xff] }
 0x440   :  { %7133 = vmatprep.subr.bf16.mxu0 %v8864_v15  ;;  %v8562_v15 = vcombine.high %v3578_v39, %v3582_v41  ;;  %v3670_v4 = vld [vmem:[#allocation11 + $0x378] sm:$0xff] }
 0x442   :  { %7091 = vmatpush2.bf16.msra.mxu1 %v8735_v28  ;;  %v8943_v28 = vcombine.low %v3961_v7, %v3965_v54  ;;  %v4041_v7 = vld [vmem:[#allocation11 + $0xf10] sm:$0xff] }
 0x443   :  { %7134 = vmatpush2.bf16.msra.mxu0 %v8863_v23  ;;  %7146 = vmatprep.subr.bf16.mxu1 %v8984_v32  ;;  %v8561_v23 = vcombine.low %v3578_v39, %v3582_v41  ;;  %v8936_v32 = vcombine.high %v3953_v18, %v3957_v20  ;;  %v4045_v54 = vld [vmem:[#allocation11 + $0xf30] sm:$0xff]  ;;  %v3658_v39 = vld [vmem:[#allocation11 + $0x318] sm:$0xff] }
 0x444   :  { %7189 = vmatprep.subr.bf16.mxu0 %v8602_v34  ;;  %v8554_v34 = vcombine.high %v3570_v26, %v3574_v27  ;;  %v3662_v41 = vld [vmem:[#allocation11 + $0x338] sm:$0xff]  ;;  %v4033_v18 = vld [vmem:[#allocation11 + $0xed0] sm:$0xff] }
 0x445   :  { %7093 = vmatmul.mubr.bf16.vlgmr.msra.gmra.mxu1 %v9977_v48  ;;  %v4037_v20 = vld [vmem:[#allocation11 + $0xef0] sm:$0xff] }
 0x446   :  { %7136 = vmatmul.mubr.bf16.vlgmr.msra.gmra.mxu0 %v9995_v37  ;;  %7147 = vmatpush1.bf16.msra.mxu1 %v8983_v22  ;;  %v3562_v22 = vld [vmem:[#allocation11 + $0x18] sm:$0xff] }
 0x447   :  { %7178 = vmatprep.mubr.bf16.mxu1 %v10011_v29  ;;  %7190 = vmatpush1.bf16.msra.mxu0 %v8601_v31  ;;  %v8553_v31 = vcombine.low %v3570_v26, %v3574_v27  ;;  %v8546_v46 = vcombine.high %v3562_v22, %v3566_v44  ;;  %v3650_v26 = vld [vmem:[#allocation11 + $0x2d8] sm:$0xff] }
 0x448   :  { %7221 = vmatprep.mubr.bf16.mxu0 %v9941_v10  ;;  %7148 = vmatprep.subr.bf16.mxu1 %v8976_v33  ;;  %v8959_v10 = vcombine.low %v3977_v9, %v3981_v16  ;;  %v8928_v33 = vcombine.high %v3945_v12, %v3949_v38  ;;  %v4057_v9 = vld [vmem:[#allocation11 + $0xf90] sm:$0xff]  ;;  %v3654_v27 = vld [vmem:[#allocation11 + $0x2f8] sm:$0xff] }
 0x449   :  { %7191 = vmatprep.subr.bf16.mxu0 %v8594_v51  ;;  %v4069_v51 = vld [vmem:[#allocation11 + $0xff0] sm:$0xff] }
 0x44a   :  { %7149 = vmatpush1.bf16.msra.mxu1 %v8975_v59  ;;  %v8927_v59 = vcombine.low %v3945_v12, %v3949_v38  ;;  %v4061_v16 = vld [vmem:[#allocation11 + $0xfb0] sm:$0xff] }
 0x44b   :  { %7192 = vmatpush1.bf16.msra.mxu0 %v8593_v57  ;;  %7150 = vmatprep.subr.bf16.mxu1 %v8968_v47  ;;  %v8545_v57 = vcombine.low %v3562_v22, %v3566_v44  ;;  %v9048_v47 = vcombine.high %v4065_v49, %v4069_v51  ;;  %v4025_v12 = vld [vmem:[#allocation11 + $0xe90] sm:$0xff]  ;;  %v3642_v22 = vld [vmem:[#allocation11 + $0x298] sm:$0xff] }
 0x44c   :  { %7193 = vmatprep.subr.bf16.mxu0 %v8586_v52  ;;  %v8666_v52 = vcombine.high %v3682_v55, %v3686_v58  ;;  %v4029_v38 = vld [vmem:[#allocation11 + $0xeb0] sm:$0xff]  ;;  %v3646_v44 = vld [vmem:[#allocation11 + $0x2b8] sm:$0xff] }
 0x44e   :  { %7151 = vmatpush1.bf16.msra.mxu1 %v8967_v60  ;;  %v9047_v60 = vcombine.low %v4065_v49, %v4069_v51  ;;  %v4017_v49 = vld [vmem:[#allocation11 + $0xe50] sm:$0xff] }
 0x44f   :  { %7194 = vmatpush1.bf16.msra.mxu0 %v8585_v61  ;;  %7152 = vmatprep.subr.bf16.mxu1 %v8960_v62  ;;  %v8665_v61 = vcombine.low %v3682_v55, %v3686_v58  ;;  %v9040_v62 = vcombine.high %v4057_v9, %v4061_v16  ;;  %v4021_v51 = vld [vmem:[#allocation11 + $0xe70] sm:$0xff]  ;;  %v3634_v55 = vld [vmem:[#allocation11 + $0x258] sm:$0xff] }
 0x450   :  { %7195 = vmatprep.subr.bf16.mxu0 %v8578_v63  ;;  %v8658_v63 = vcombine.high %v3674_v19, %v3678_v21  ;;  %v3638_v58 = vld [vmem:[#allocation11 + $0x278] sm:$0xff] }
 0x452   :  { %7153 = vmatpush1.bf16.msra.mxu1 %v8959_v10  ;;  %v9039_v10 = vcombine.low %v4057_v9, %v4061_v16  ;;  %v4009_v9 = vld [vmem:[#allocation11 + $0xe10] sm:$0xff] }
 0x453   :  { %7196 = vmatpush1.bf16.msra.mxu0 %v8577_v5  ;;  %7154 = vmatprep.subr.bf16.mxu1 %v8952_v6  ;;  %v8657_v5 = vcombine.low %v3674_v19, %v3678_v21  ;;  %v9032_v6 = vcombine.high %v4049_v25, %v4053_v1  ;;  %v4013_v16 = vld [vmem:[#allocation11 + $0xe30] sm:$0xff]  ;;  %v3626_v19 = vld [vmem:[#allocation11 + $0x218] sm:$0xff] }
 0x454   :  { %7197 = vmatprep.subr.bf16.mxu0 %v8570_v43  ;;  %v8650_v43 = vcombine.high %v3666_v3, %v3670_v4  ;;  %v3630_v21 = vld [vmem:[#allocation11 + $0x238] sm:$0xff] }
 0x456   :  { %7155 = vmatpush1.bf16.msra.mxu1 %v8951_v8  ;;  %v9031_v8 = vcombine.low %v4049_v25, %v4053_v1  ;;  %v3746_v25 = vld [vmem:[#allocation11 + $0x5d8] sm:$0xff] }
 0x457   :  { %7198 = vmatpush1.bf16.msra.mxu0 %v8569_v11  ;;  %7156 = vmatprep.subr.bf16.mxu1 %v8944_v14  ;;  %v8649_v11 = vcombine.low %v3666_v3, %v3670_v4  ;;  %v9024_v14 = vcombine.high %v4041_v7, %v4045_v54  ;;  %v3750_v1 = vld [vmem:[#allocation11 + $0x5f8] sm:$0xff] }
 0x458   :  { %7199 = vmatprep.subr.bf16.mxu0 %v8562_v15  ;;  %v8642_v15 = vcombine.high %v3658_v39, %v3662_v41  ;;  %v3874_v3 = vld [vmem:[#allocation11 + $0x9d8] sm:$0xff] }
 0x459   :  { %v3878_v4 = vld [vmem:[#allocation11 + $0x9f8] sm:$0xff] }
 0x45a   :  { %7157 = vmatpush1.bf16.msra.mxu1 %v8943_v28  ;;  %v9023_v28 = vcombine.low %v4041_v7, %v4045_v54  ;;  %v3738_v7 = vld [vmem:[#allocation11 + $0x598] sm:$0xff] }
 0x45b   :  { %7200 = vmatpush1.bf16.msra.mxu0 %v8561_v23  ;;  %7158 = vmatprep.subr.bf16.mxu1 %v8936_v32  ;;  %v8641_v23 = vcombine.low %v3658_v39, %v3662_v41  ;;  %v9016_v32 = vcombine.high %v4033_v18, %v4037_v20  ;;  %v3742_v54 = vld [vmem:[#allocation11 + $0x5b8] sm:$0xff]  ;;  %v8729_v39 = vcombine.low %v3746_v25, %v3750_v1 }
 0x45c   :  { %7201 = vmatprep.subr.bf16.mxu0 %v8554_v34  ;;  %v8634_v34 = vcombine.high %v3650_v26, %v3654_v27  ;;  %v3866_v41 = vld [vmem:[#allocation11 + $0x998] sm:$0xff] }
 0x45e   :  { %7159 = vmatpush1.bf16.msra.mxu1 %v8935_v56  ;;  %v9015_v56 = vcombine.low %v4033_v18, %v4037_v20  ;;  %v3734_v18 = vld [vmem:[#allocation11 + $0x578] sm:$0xff] }
 0x45f   :  { %7202 = vmatpush1.bf16.msra.mxu0 %v8553_v31  ;;  %7160 = vmatprep.subr.bf16.mxu1 %v8928_v33  ;;  %v8633_v31 = vcombine.low %v3650_v26, %v3654_v27  ;;  %v9008_v33 = vcombine.high %v4025_v12, %v4029_v38  ;;  %v3858_v26 = vld [vmem:[#allocation11 + $0x958] sm:$0xff] }
 0x460   :  { %7203 = vmatprep.subr.bf16.mxu0 %v8546_v46  ;;  %v8626_v46 = vcombine.high %v3642_v22, %v3646_v44  ;;  %v3862_v27 = vld [vmem:[#allocation11 + $0x978] sm:$0xff] }
 0x462   :  { %7161 = vmatpush1.bf16.msra.mxu1 %v8927_v59  ;;  %v9007_v59 = vcombine.low %v4025_v12, %v4029_v38  ;;  %v3722_v12 = vld [vmem:[#allocation11 + $0x518] sm:$0xff] }
 0x463   :  { %7204 = vmatpush1.bf16.msra.mxu0 %v8545_v57  ;;  %7162 = vmatprep.subr.bf16.mxu1 %v9048_v47  ;;  %v8625_v57 = vcombine.low %v3642_v22, %v3646_v44  ;;  %v9000_v47 = vcombine.high %v4017_v49, %v4021_v51  ;;  %v3726_v38 = vld [vmem:[#allocation11 + $0x538] sm:$0xff] }
 0x464   :  { %7205 = vmatprep.subr.bf16.mxu0 %v8666_v52  ;;  %v8618_v52 = vcombine.high %v3634_v55, %v3638_v58  ;;  %v3850_v22 = vld [vmem:[#allocation11 + $0x918] sm:$0xff] }
 0x465   :  { %v3854_v44 = vld [vmem:[#allocation11 + $0x938] sm:$0xff] }
 0x466   :  { %7163 = vmatpush2.bf16.msra.mxu1 %v9047_v60  ;;  %v8999_v60 = vcombine.low %v4017_v49, %v4021_v51  ;;  %v3842_v49 = vld [vmem:[#allocation11 + $0x8d8] sm:$0xff] }
 0x467   :  { %7206 = vmatpush2.bf16.msra.mxu0 %v8665_v61  ;;  %7164 = vmatprep.subr.bf16.mxu1 %v9040_v62  ;;  %v8617_v61 = vcombine.low %v3634_v55, %v3638_v58  ;;  %v8992_v62 = vcombine.high %v4009_v9, %v4013_v16  ;;  %v3846_v51 = vld [vmem:[#allocation11 + $0x8f8] sm:$0xff]  ;;  %v8833_v55 = vcombine.low %v3850_v22, %v3854_v44 }
 0x468   :  { %7207 = vmatprep.subr.bf16.mxu0 %v8658_v63  ;;  %v8610_v63 = vcombine.high %v3626_v19, %v3630_v21 }
 0x46a   :  { %7165 = vmatpush2.bf16.msra.mxu1 %v9039_v10  ;;  %v8991_v10 = vcombine.low %v4009_v9, %v4013_v16  ;;  %v3838_v9 = vld [vmem:[#allocation11 + $0x8b8] sm:$0xff] }
 0x46b   :  { %7208 = vmatpush2.bf16.msra.mxu0 %v8657_v5  ;;  %7166 = vmatprep.subr.bf16.mxu1 %v9032_v6  ;;  %v8609_v5 = vcombine.low %v3626_v19, %v3630_v21  ;;  %v8730_v6 = vcombine.high %v3746_v25, %v3750_v1  ;;  %v8825_v19 = vcombine.low %v3842_v49, %v3846_v51  ;;  %v3830_v25 = vld [vmem:[#allocation11 + $0x878] sm:$0xff] }
 0x46c   :  { %7209 = vmatprep.subr.bf16.mxu0 %v8650_v43  ;;  %v8858_v43 = vcombine.high %v3874_v3, %v3878_v4 }
 0x46e   :  { %7167 = vmatpush2.bf16.msra.mxu1 %v9031_v8  ;;  %v3870_v8 = vld [vmem:[#allocation11 + $0x9b8] sm:$0xff] }
 0x46f   :  { %7210 = vmatpush2.bf16.msra.mxu0 %v8649_v11  ;;  %7168 = vmatprep.subr.bf16.mxu1 %v9024_v14  ;;  %v8857_v11 = vcombine.low %v3874_v3, %v3878_v4  ;;  %v8722_v14 = vcombine.high %v3738_v7, %v3742_v54  ;;  %v8850_v20 = vcombine.high %v3866_v41, %v3870_v8 }
 0x470   :  { %7211 = vmatprep.subr.bf16.mxu0 %v8642_v15  ;;  %v3730_v15 = vld [vmem:[#allocation11 + $0x558] sm:$0xff] }
 0x472   :  { %7169 = vmatpush2.bf16.msra.mxu1 %v9023_v28  ;;  %v8721_v28 = vcombine.low %v3738_v7, %v3742_v54  ;;  %v3822_v7 = vld [vmem:[#allocation11 + $0x838] sm:$0xff] }
 0x473   :  { %7212 = vmatpush2.bf16.msra.mxu0 %v8641_v23  ;;  %7170 = vmatprep.subr.bf16.mxu1 %v9016_v32  ;;  %v8849_v23 = vcombine.low %v3866_v41, %v3870_v8  ;;  %v8714_v32 = vcombine.high %v3730_v15, %v3734_v18 }
 0x474   :  { %7213 = vmatprep.subr.bf16.mxu0 %v8634_v34  ;;  %v8842_v34 = vcombine.high %v3858_v26, %v3862_v27 }
 0x476   :  { %7171 = vmatpush2.bf16.msra.mxu1 %v9015_v56  ;;  %v8713_v56 = vcombine.low %v3730_v15, %v3734_v18  ;;  %v3938_v15 = vld [vmem:[#allocation11 + $0xbd8] sm:$0xff] }
 0x477   :  { %7214 = vmatpush2.bf16.msra.mxu0 %v8633_v31  ;;  %7172 = vmatprep.subr.bf16.mxu1 %v9008_v33  ;;  %v8706_v31 = vcombine.high %v3722_v12, %v3726_v38  ;;  %v3714_v33 = vld [vmem:[#allocation11 + $0x4d8] sm:$0xff] }
 0x478   :  { %7215 = vmatprep.subr.bf16.mxu0 %v8626_v46  ;;  %v3718_v46 = vld [vmem:[#allocation11 + $0x4f8] sm:$0xff] }
 0x479   :  { %v8698_v58 = vcombine.high %v3714_v33, %v3718_v46  ;;  %v8697_v16 = vcombine.low %v3714_v33, %v3718_v46  ;;  %v3942_v18 = vld [vmem:[#allocation11 + $0xbf8] sm:$0xff] }
 0x47a   :  { %7173 = vmatpush2.bf16.msra.mxu1 %v9007_v59  ;;  %v8826_v59 = vcombine.high %v3842_v49, %v3846_v51  ;;  %v3794_v33 = vld [vmem:[#allocation11 + $0x758] sm:$0xff] }
 0x47b   :  { %7216 = vmatpush2.bf16.msra.mxu0 %v8625_v57  ;;  %7174 = vmatprep.subr.bf16.mxu1 %v9000_v47  ;;  %v3706_v57 = vld [vmem:[#allocation11 + $0x498] sm:$0xff] }
 0x47c   :  { %7217 = vmatprep.subr.bf16.mxu0 %v8618_v52  ;;  %v3710_v47 = vld [vmem:[#allocation11 + $0x4b8] sm:$0xff] }
 0x47d   :  { %v3834_v52 = vld [vmem:[#allocation11 + $0x898] sm:$0xff]  ;;  %v8690_v21 = vcombine.high %v3706_v57, %v3710_v47  ;;  %v8689_v1 = vcombine.low %v3706_v57, %v3710_v47 }
 0x47e   :  { %7175 = vmatpush2.bf16.msra.mxu1 %v8999_v60  ;;  %v8818_v60 = vcombine.high %v3834_v52, %v3838_v9  ;;  %v8817_v3 = vcombine.low %v3834_v52, %v3838_v9  ;;  %v3798_v46 = vld [vmem:[#allocation11 + $0x778] sm:$0xff] }
 0x47f   :  { %7218 = vmatpush2.bf16.msra.mxu0 %v8617_v61  ;;  %7176 = vmatprep.subr.bf16.mxu1 %v8992_v62  ;;  %v3698_v61 = vld [vmem:[#allocation11 + $0x458] sm:$0xff]  ;;  %v8778_v57 = vcombine.high %v3794_v33, %v3798_v46 }
 0x480   :  { %7219 = vmatprep.subr.bf16.mxu0 %v8610_v63  ;;  %v3702_v62 = vld [vmem:[#allocation11 + $0x478] sm:$0xff] }
 0x481   :  { %v3826_v63 = vld [vmem:[#allocation11 + $0x858] sm:$0xff]  ;;  %v8682_v4 = vcombine.high %v3698_v61, %v3702_v62  ;;  %v8681_v54 = vcombine.low %v3698_v61, %v3702_v62 }
 0x482   :  { %7177 = vmatpush2.bf16.msra.mxu1 %v8991_v10  ;;  %v8810_v10 = vcombine.high %v3826_v63, %v3830_v25  ;;  %v3922_v51 = vld [vmem:[#allocation11 + $0xb58] sm:$0xff] }
 0x483   :  { %7220 = vmatpush2.bf16.msra.mxu0 %v8609_v5  ;;  %7232 = vmatprep.subr.bf16.mxu1 %v8730_v6  ;;  %v3690_v5 = vld [vmem:[#allocation11 + $0x418] sm:$0xff] }
 0x484   :  { %7275 = vmatprep.subr.bf16.mxu0 %v8858_v43  ;;  %v3694_v6 = vld [vmem:[#allocation11 + $0x438] sm:$0xff] }
 0x485   :  { %7179 = vmatmul.mubr.bf16.vlgmr.msra.gmra.mxu1 %v10013_v24  ;;  %v3818_v43 = vld [vmem:[#allocation11 + $0x818] sm:$0xff]  ;;  %v8674_v41 = vcombine.high %v3690_v5, %v3694_v6 }
 0x486   :  { %7222 = vmatmul.mubr.bf16.vlgmr.msra.gmra.mxu0 %v9947_v17  ;;  %7233 = vmatpush1.bf16.msra.mxu1 %v8729_v39  ;;  %v8841_v17 = vcombine.low %v3858_v26, %v3862_v27  ;;  %v8809_v39 = vcombine.low %v3826_v63, %v3830_v25  ;;  %v8802_v8 = vcombine.high %v3818_v43, %v3822_v7  ;;  %v10039_v26 = vpop.f32.mrf.mxu0  ;;  %v3786_v52 = vld [vmem:[#allocation11 + $0x718] sm:$0xff] }
 0x487   :  { %7264 = vmatprep.mubr.bf16.mxu1 %v9969_v45  ;;  %7276 = vmatpush1.bf16.msra.mxu0 %v8857_v11  ;;  %v8834_v45 = vcombine.high %v3850_v22, %v3854_v44  ;;  %v3810_v11 = vld [vmem:[#allocation11 + $0x7d8] sm:$0xff]  ;;  %v8801_v27 = vcombine.low %v3818_v43, %v3822_v7 }
 0x488   :  { %7307 = vmatprep.mubr.bf16.mxu0 %v9993_v36  ;;  %7234 = vmatprep.subr.bf16.mxu1 %v8722_v14  ;;  %v8705_v36 = vcombine.low %v3722_v12, %v3726_v38  ;;  %v3814_v14 = vld [vmem:[#allocation11 + $0x7f8] sm:$0xff]  ;;  %v10041_v12 = vpop.f32.mrf.mxu1 }
 0x489   :  { %7277 = vmatprep.subr.bf16.mxu0 %v8850_v20  ;;  %v8673_v20 = vcombine.low %v3690_v5, %v3694_v6  ;;  %v3930_v38 = vld [vmem:[#allocation11 + $0xb98] sm:$0xff]  ;;  %v8793_v44 = vcombine.low %v3810_v11, %v3814_v14 }
 0x48a   :  { %7235 = vmatpush1.bf16.msra.mxu1 %v8721_v28  ;;  %v8794_v28 = vcombine.high %v3810_v11, %v3814_v14  ;;  %v3934_v22 = vld [vmem:[#allocation11 + $0xbb8] sm:$0xff]  ;;  %v10045_v49 = vpop.f32.mrf.mxu1 }
 0x48b   :  { %7278 = vmatpush1.bf16.msra.mxu0 %v8849_v23  ;;  %7236 = vmatprep.subr.bf16.mxu1 %v8714_v32  ;;  %v8922_v23 = vcombine.high %v3938_v15, %v3942_v18  ;;  %v3802_v32 = vld [vmem:[#allocation11 + $0x798] sm:$0xff] }
 0x48c   :  { %7279 = vmatprep.subr.bf16.mxu0 %v8842_v34  ;;  %v3806_v34 = vld [vmem:[#allocation11 + $0x7b8] sm:$0xff] }
 0x48d   :  { %v3790_v9 = vld [vmem:[#allocation11 + $0x738] sm:$0xff] }
 0x48e   :  { %7237 = vmatpush1.bf16.msra.mxu1 %v8713_v56  ;;  %v10043_v56 = vpop.f32.mrf.mxu0  ;;  %v8770_v63 = vcombine.high %v3786_v52, %v3790_v9  ;;  %v3906_v5 = vld [vmem:[#allocation11 + $0xad8] sm:$0xff]  ;;  %v8769_v43 = vcombine.low %v3786_v52, %v3790_v9 }
 0x48f   :  { %7280 = vmatpush1.bf16.msra.mxu0 %v8841_v17  ;;  %7238 = vmatprep.subr.bf16.mxu1 %v8706_v31  ;;  %v8921_v17 = vcombine.low %v3938_v15, %v3942_v18  ;;  %v8786_v31 = vcombine.high %v3802_v32, %v3806_v34  ;;  %v3910_v6 = vld [vmem:[#allocation11 + $0xaf8] sm:$0xff] }
 0x490   :  { %7281 = vmatprep.subr.bf16.mxu0 %v8834_v45  ;;  %v8914_v45 = vcombine.high %v3930_v38, %v3934_v22  ;;  %v3774_v11 = vld [vmem:[#allocation11 + $0x6b8] sm:$0xff] }
 0x491   :  { %v3898_v15 = vld [vmem:[#allocation11 + $0xa98] sm:$0xff] }
 0x492   :  { %7239 = vmatpush1.bf16.msra.mxu1 %v8705_v36  ;;  %v3926_v36 = vld [vmem:[#allocation11 + $0xb78] sm:$0xff] }
 0x493   :  { %7282 = vmatpush1.bf16.msra.mxu0 %v8833_v55  ;;  %7240 = vmatprep.subr.bf16.mxu1 %v8698_v58  ;;  %v8785_v55 = vcombine.low %v3802_v32, %v3806_v34  ;;  %v10047_v58 = vpop.f32.mrf.mxu0  ;;  %v8906_v47 = vcombine.high %v3922_v51, %v3926_v36  ;;  %v8905_v62 = vcombine.low %v3922_v51, %v3926_v36  ;;  %v3902_v18 = vld [vmem:[#allocation11 + $0xab8] sm:$0xff] }
 0x494   :  { %7283 = vmatprep.subr.bf16.mxu0 %v8826_v59  ;;  %v8913_v59 = vcombine.low %v3930_v38, %v3934_v22  ;;  %v8882_v32 = vcombine.high %v3898_v15, %v3902_v18  ;;  %v3762_v34 = vld [vmem:[#allocation11 + $0x658] sm:$0xff]  ;;  %v10055_v22 = vld [vmem:[#allocation12] sm:$0xff]  ;;  %v8881_v51 = vcombine.low %v3898_v15, %v3902_v18 }
 0x495   :  { %v6713_v61 = vpop.f32.mrf.mxu0  ;;  %v3766_v38 = vld [vmem:[#allocation11 + $0x678] sm:$0xff] }
 0x496   :  { %7241 = vmatpush1.bf16.msra.mxu1 %v8697_v16  ;;  %v10049_v16 = vpop.f32.mrf.mxu1  ;;  %v8746_v36 = vcombine.high %v3762_v34, %v3766_v38  ;;  %v3882_v9 = vld [vmem:[#allocation11 + $0xa18] sm:$0xff] }
 0x497   :  { %7284 = vmatpush1.bf16.msra.mxu0 %v8825_v19  ;;  %7242 = vmatprep.subr.bf16.mxu1 %v8690_v21  ;;  %v3914_v19 = vld [vmem:[#allocation11 + $0xb18] sm:$0xff] }
 0x498   :  { %7285 = vmatprep.subr.bf16.mxu0 %v8818_v60  ;;  %v3918_v21 = vld [vmem:[#allocation11 + $0xb38] sm:$0xff]  ;;  %v8777_v60 = vcombine.low %v3794_v33, %v3798_v46 }
 0x499   :  { %v8898_v25 = vcombine.high %v3914_v19, %v3918_v21  ;;  %v3998_v15 = vld [vmem:[#allocation11 + $0xdb8] sm:$0xff] }
 0x49a   :  { %7243 = vmatpush1.bf16.msra.mxu1 %v8689_v1  ;;  %v3778_v1 = vld [vmem:[#allocation11 + $0x6d8] sm:$0xff] }
 0x49b   :  { %7286 = vmatpush1.bf16.msra.mxu0 %v8817_v3  ;;  %7244 = vmatprep.subr.bf16.mxu1 %v8682_v4  ;;  %v3782_v3 = vld [vmem:[#allocation11 + $0x6f8] sm:$0xff]  ;;  %v6756_v4 = vpop.f32.mrf.mxu1 }
 0x49c   :  { %7287 = vmatprep.subr.bf16.mxu0 %v8810_v10  ;;  %v10051_v10 = vpop.f32.mrf.mxu0 }
 0x49d   :  { %v10053_v7 = vpop.f32.mrf.mxu1 }
 0x49e   :  { %7245 = vmatpush1.bf16.msra.mxu1 %v8681_v54  ;;  %v8897_v54 = vcombine.low %v3914_v19, %v3918_v21  ;;  %v6795_v14 = vpop.f32.mrf.mxu0  ;;  %v3886_v19 = vld [vmem:[#allocation11 + $0xa38] sm:$0xff] }
 0x49f   :  { %7288 = vmatpush1.bf16.msra.mxu0 %v8809_v39  ;;  %7246 = vmatprep.subr.bf16.mxu1 %v8674_v41  ;;  %v8762_v39 = vcombine.high %v3778_v1, %v3782_v3  ;;  %v8890_v41 = vcombine.high %v3906_v5, %v3910_v6 }
 0x4a0   :  { %7289 = vmatprep.subr.bf16.mxu0 %v8802_v8  ;;  %v3770_v8 = vld [vmem:[#allocation11 + $0x698] sm:$0xff] }
 0x4a1   :  { %v8753_v33 = vcombine.low %v3770_v8, %v3774_v11 }
 0x4a2   :  { %7247 = vmatpush1.bf16.msra.mxu1 %v8673_v20  ;;  %v8761_v20 = vcombine.low %v3778_v1, %v3782_v3  ;;  %v8866_v3 = vcombine.high %v3882_v9, %v3886_v19 }
 0x4a3   :  { %7290 = vmatpush1.bf16.msra.mxu0 %v8801_v27  ;;  %7248 = vmatprep.subr.bf16.mxu1 %v8794_v28  ;;  %v6838_v27 = vpop.f32.mrf.mxu1  ;;  %v8889_v28 = vcombine.low %v3906_v5, %v3910_v6  ;;  %v4002_v5 = vld [vmem:[#allocation11 + $0xdd8] sm:$0xff] }
 0x4a4   :  { %7291 = vmatprep.subr.bf16.mxu0 %v8922_v23  ;;  %v8754_v23 = vcombine.high %v3770_v8, %v3774_v11  ;;  %v4006_v6 = vld [vmem:[#allocation11 + $0xdf8] sm:$0xff]  ;;  %v9511_v8 = vld [vmem:[#allocation14 + $0x78] sm:$0xff]  }
 0x4a5   :  { %v10062_v46 = vpop.f32.mrf.mxu1  ;;  %v3994_v11 = vld [vmem:[#allocation11 + $0xd98] sm:$0xff] }
 0x4a6   :  { %7249 = vmatpush2.bf16.msra.mxu1 %v8793_v44  ;;  %v10057_v44 = vpop.f32.mrf.mxu0 }
 0x4a7   :  { %7292 = vmatpush2.bf16.msra.mxu0 %v8921_v17  ;;  %7250 = vmatprep.subr.bf16.mxu1 %v8786_v31  ;;  %v3890_v17 = vld [vmem:[#allocation11 + $0xa58] sm:$0xff] }
 0x4a8   :  { %7293 = vmatprep.subr.bf16.mxu0 %v8914_v45  ;;  %v3894_v31 = vld [vmem:[#allocation11 + $0xa78] sm:$0xff]  ;;  %v4080_v45 = vrot.slane %v10055_v22, %v1877_v13  ;;  %v6799_v52 = vpop.f32.mrf.mxu0  ;;  %v8745_v13 = vcombine.low %v3762_v34, %v3766_v38 }
 0x4a9   :  { %v9513_v34 = vld [vmem:[#allocation14 + $0x70] sm:$0xff]  }
 0x4aa   :  { %7251 = vmatpush2.bf16.msra.mxu1 %v8785_v55  ;;  %v6714_v55 = vadd.f32 %v6713_v61, %v4080_v45  ;;  %v6710_v21 = vadd.f32 %v10043_v56, %v4080_v45  ;;  %v8865_v56 = vcombine.low %v3882_v9, %v3886_v19  ;;  %v9515_v45 = vld [vmem:[#allocation14 + $0x68] sm:$0xff]   ;;  %v9519_v9 = vld [vmem:[#allocation14 + $0x58] sm:$0xff]   ;;  %v3962_v19 = vld [vmem:[#allocation11 + $0xc98] sm:$0xff] }
 0x4ab   :  { %7294 = vmatpush2.bf16.msra.mxu0 %v8913_v59  ;;  %7252 = vmatprep.subr.bf16.mxu1 %v8778_v57  ;;  %v8874_v59 = vcombine.high %v3890_v17, %v3894_v31  ;;  %v3754_v57 = vld [vmem:[#allocation11 + $0x618] sm:$0xff] }
 0x4ac   :  { %7295 = vmatprep.subr.bf16.mxu0 %v8906_v47  ;;  %v3758_v47 = vld [vmem:[#allocation11 + $0x638] sm:$0xff]  ;;  %v6753_v1 = vadd.f32 %v10045_v49, %v6710_v21  ;;  %v8985_v49 = vcombine.low %v4002_v5, %v4006_v6 }
 0x4ad   :  { %v3966_v21 = vld [vmem:[#allocation11 + $0xcb8] sm:$0xff] }
 0x4ae   :  { %7253 = vmatpush2.bf16.msra.mxu1 %v8777_v60  ;;  %v6757_v60 = vadd.f32 %v6756_v4, %v6714_v55  ;;  %v8986_v4 = vcombine.high %v4002_v5, %v4006_v6  ;;  %v8945_v5 = vcombine.low %v3962_v19, %v3966_v21  ;;  %v9522_v6 = vld [vmem:[#allocation14 + $0x10] sm:$0xff]  }
 0x4af   :  { %7296 = vmatpush2.bf16.msra.mxu0 %v8905_v62  ;;  %7254 = vmatprep.subr.bf16.mxu1 %v8770_v63  ;;  %v6842_v62 = vpop.f32.mrf.mxu1  ;;  %v8873_v63 = vcombine.low %v3890_v17, %v3894_v31  ;;  %v9514_v17 = vld [vmem:[#allocation14 + $0x30] sm:$0xff]  }
 0x4b0   :  { %7297 = vmatprep.subr.bf16.mxu0 %v8898_v25  ;;  %v8738_v25 = vcombine.high %v3754_v57, %v3758_v47  ;;  %v6800_v61 = vadd.f32 %v6799_v52, %v6757_v60 }
 0x4b2   :  { %7255 = vmatpush2.bf16.msra.mxu1 %v8769_v43  ;;  %v6796_v43 = vadd.f32 %v6795_v14, %v6753_v1  ;;  %v8978_v14 = vcombine.high %v3994_v11, %v3998_v15  ;;  %v3954_v1 = vld [vmem:[#allocation11 + $0xc58] sm:$0xff] }
 0x4b3   :  { %7298 = vmatpush2.bf16.msra.mxu0 %v8897_v54  ;;  %7256 = vmatprep.subr.bf16.mxu1 %v8762_v39  ;;  %v6843_v54 = vadd.f32 %v6842_v62, %v6800_v61  ;;  %v8737_v39 = vcombine.low %v3754_v57, %v3758_v47  ;;  %v3974_v57 = vld [vmem:[#allocation11 + $0xcf8] sm:$0xff]  ;;  %v9518_v47 = vld [vmem:[#allocation14 + $0x20] sm:$0xff]   ;;  %v8946_v62 = vcombine.high %v3962_v19, %v3966_v21  ;;  %v9547_v19 = vld [vmem:[#allocation14 + $0x168] sm:$0xff]  }
 0x4b4   :  { %7299 = vmatprep.subr.bf16.mxu0 %v8890_v41  ;;  %v6839_v41 = vadd.f32 %v6838_v27, %v6796_v43  ;;  %v8977_v27 = vcombine.low %v3994_v11, %v3998_v15  ;;  %v3958_v61 = vld [vmem:[#allocation11 + $0xc78] sm:$0xff]  ;;  %v9524_v11 = vld [vmem:[#allocation14 + $0x8] sm:$0xff]  }
 0x4b5   :  { %v7370_v18 = vmax.f32 %v6843_v54, 0.0  ;;  %v8938_v43 = vcombine.high %v3954_v1, %v3958_v61 }
 0x4b6   :  { %7257 = vmatpush2.bf16.msra.mxu1 %v8761_v20  ;;  %v9512_v20 = vld [vmem:[#allocation14 + $0x38] sm:$0xff]  }
 0x4b7   :  { %7300 = vmatpush2.bf16.msra.mxu0 %v8889_v28  ;;  %7258 = vmatprep.subr.bf16.mxu1 %v8754_v23  ;;  %v7362_v28 = vmax.f32 %v6839_v41, 0.0  ;;  %v3986_v23 = vld [vmem:[#allocation11 + $0xd58] sm:$0xff] }
 0x4b8   :  { %7301 = vmatprep.subr.bf16.mxu0 %v8882_v32  ;;  %v3990_v32 = vld [vmem:[#allocation11 + $0xd78] sm:$0xff] }
 0x4b9   :  { %v7378_v38 = vpack.c.bf16 %v7370_v18, %v7362_v28  ;;  %v8970_v31 = vcombine.high %v3986_v23, %v3990_v32 }
 0x4ba   :  { %7259 = vmatpush2.bf16.msra.mxu1 %v8753_v33  ;;  %v3978_v33 = vld [vmem:[#allocation11 + $0xd18] sm:$0xff] }
 0x4bb   :  { %7302 = vmatpush2.bf16.msra.mxu0 %v8881_v51  ;;  %7260 = vmatprep.subr.bf16.mxu1 %v8746_v36  ;;  %v3982_v51 = vld [vmem:[#allocation11 + $0xd38] sm:$0xff]  ;;  %v8969_v36 = vcombine.low %v3986_v23, %v3990_v32  ;;  %v9526_v23 = vld [vmem:[#allocation14] sm:$0xff]  }
 0x4bc   :  { %7303 = vmatprep.subr.bf16.mxu0 %v8874_v59  ;;  %v8962_v55 = vcombine.high %v3978_v33, %v3982_v51  ;;  %v3970_v59 = vld [vmem:[#allocation11 + $0xcd8] sm:$0xff] }
 0x4bd   :  { %v8954_v52 = vcombine.high %v3970_v59, %v3974_v57  ;;  %v8953_v60 = vcombine.low %v3970_v59, %v3974_v57 }
 0x4be   :  { %7261 = vmatpush2.bf16.msra.mxu1 %v8745_v13  ;;  %v9520_v13 = vld [vmem:[#allocation14 + $0x18] sm:$0xff]  }
 0x4bf   :  { %7304 = vmatpush2.bf16.msra.mxu0 %v8873_v63  ;;  %7262 = vmatprep.subr.bf16.mxu1 %v8738_v25  ;;  %v4076_v63 = vrot.slane %v10055_v22, %v1873_v42  ;;  %v9521_v25 = vld [vmem:[#allocation14 + $0x50] sm:$0xff]  }
 0x4c0   :  { %7305 = vmatprep.subr.bf16.mxu0 %v8866_v3  ;;  %v3950_v42 = vld [vmem:[#allocation11 + $0xc38] sm:$0xff] }
 0x4c1   :  { %v6712_v3 = vadd.f32 %v10047_v58, %v4076_v63  ;;  %v6708_v54 = vadd.f32 %v10039_v26, %v4076_v63  ;;  %v8937_v58 = vcombine.low %v3954_v1, %v3958_v61  ;;  %v9548_v63 = vld [vmem:[#allocation14 + $0x128] sm:$0xff]   ;;  %v4038_v1 = vld [vmem:[#allocation11 + $0xef8] sm:$0xff]  ;;  %v9549_v61 = vld [vmem:[#allocation14 + $0x160] sm:$0xff]  }
 0x4c2   :  { %7263 = vmatpush2.bf16.msra.mxu1 %v8737_v39 }
 0x4c3   :  { %7306 = vmatpush2.bf16.msra.mxu0 %v8865_v56  ;;  %7318 = vmatprep.subr.bf16.mxu1 %v8986_v4  ;;  %v6755_v39 = vadd.f32 %v10049_v16, %v6712_v3  ;;  %v9523_v56 = vld [vmem:[#allocation14 + $0x48] sm:$0xff]   ;;  %v3946_v4 = vld [vmem:[#allocation11 + $0xc18] sm:$0xff]  ;;  %v6751_v41 = vadd.f32 %v10041_v12, %v6708_v54  ;;  %v9525_v16 = vld [vmem:[#allocation14 + $0x40] sm:$0xff]  }
 0x4c4   :  { %9116 = vmatprep.subr.bf16.mxu0 %v9511_v8  ;;  %v8930_v15 = vcombine.high %v3946_v4, %v3950_v42  ;;  %v8929_v12 = vcombine.low %v3946_v4, %v3950_v42  ;;  %v9550_v54 = vld [vmem:[#allocation14 + $0x120] sm:$0xff]   ;;  %v9551_v4 = vld [vmem:[#allocation14 + $0x158] sm:$0xff]  }
 0x4c5   :  { %7265 = vmatmul.mubr.bf16.vlgmr.msra.gmra.mxu1 %v9977_v48  ;;  %v9516_v48 = vld [vmem:[#allocation14 + $0x28] sm:$0xff]   ;;  %v6798_v8 = vadd.f32 %v10057_v44, %v6755_v39  ;;  %v6794_v18 = vadd.f32 %v10051_v10, %v6751_v41  ;;  %v10082_v44 = vpop.f32.mrf.mxu1  ;;  %v4058_v10 = vld [vmem:[#allocation11 + $0xf98] sm:$0xff] }
 0x4c6   :  { %7308 = vmatmul.mubr.bf16.vlgmr.msra.gmra.mxu0 %v9995_v37  ;;  %7319 = vmatpush1.bf16.msra.mxu1 %v8985_v49  ;;  %v9517_v37 = vld [vmem:[#allocation14 + $0x60] sm:$0xff]   ;;  %v4066_v49 = vld [vmem:[#allocation11 + $0xfd8] sm:$0xff] }
 0x4c7   :  { %7350 = vmatprep.mubr.bf16.mxu1 %v10011_v29  ;;  %9117 = vmatpush3.bf16.msra.mxu0 %v9512_v20  ;;  %v8961_v29 = vcombine.low %v3978_v33, %v3982_v51  ;;  %v6841_v26 = vadd.f32 %v10062_v46, %v6798_v8  ;;  %v4070_v20 = vld [vmem:[#allocation11 + $0xff8] sm:$0xff]  ;;  %v6837_v28 = vadd.f32 %v10053_v7, %v6794_v18  ;;  %v10086_v7 = vpop.f32.mrf.mxu1  ;;  %v9544_v33 = vld [vmem:[#allocation14 + $0x138] sm:$0xff]  }
 0x4c8   :  { %7936 = vmatprep.mubr.bf16.mxu0 %v7378_v38  ;;  %7320 = vmatprep.subr.bf16.mxu1 %v8978_v14  ;;  %v10080_v14 = vpop.f32.mrf.mxu0  ;;  %v9050_v32 = vcombine.high %v4066_v49, %v4070_v20  ;;  %v4062_v46 = vld [vmem:[#allocation11 + $0xfb8] sm:$0xff]  ;;  %v9543_v38 = vld [vmem:[#allocation14 + $0x178] sm:$0xff]   ;;  %v4088_v8 = vrot.slane %v10055_v22, %v1885_v0 }
 0x4c9   :  { %9118 = vmatprep.subr.bf16.mxu0 %v9513_v34  ;;  %v7369_v34 = vmax.f32 %v6841_v26, 0.0  ;;  %v10090_v57 = vpop.f32.mrf.mxu1  ;;  %v4026_v39 = vld [vmem:[#allocation11 + $0xe98] sm:$0xff] }
 0x4ca   :  { %7321 = vmatpush1.bf16.msra.mxu1 %v8977_v27  ;;  %v7361_v27 = vmax.f32 %v6837_v28, 0.0  ;;  %v4018_v26 = vld [vmem:[#allocation11 + $0xe58] sm:$0xff] }
 0x4cb   :  { %9119 = vmatpush3.bf16.msra.mxu0 %v9514_v17  ;;  %7322 = vmatprep.subr.bf16.mxu1 %v8970_v31  ;;  %v9049_v17 = vcombine.low %v4066_v49, %v4070_v20  ;;  %v10084_v31 = vpop.f32.mrf.mxu0  ;;  %v9553_v49 = vld [vmem:[#allocation14 + $0x150] sm:$0xff]  }
 0x4cc   :  { %9120 = vmatprep.subr.bf16.mxu0 %v9515_v45  ;;  %v9042_v45 = vcombine.high %v4058_v10, %v4062_v46  ;;  %v7377_v51 = vpack.c.bf16 %v7369_v34, %v7361_v27  ;;  %v9554_v34 = vld [vmem:[#allocation14 + $0x110] sm:$0xff]   ;;  %v9555_v27 = vld [vmem:[#allocation14 + $0x148] sm:$0xff]  }
 0x4cd   :  { %v10088_v59 = vpop.f32.mrf.mxu0 }
 0x4ce   :  { %7323 = vmatpush1.bf16.msra.mxu1 %v8969_v36  ;;  %v4050_v36 = vld [vmem:[#allocation11 + $0xf58] sm:$0xff] }
 0x4cf   :  { %9121 = vmatpush3.bf16.msra.mxu0 %v9516_v48  ;;  %7324 = vmatprep.subr.bf16.mxu1 %v8962_v55  ;;  %v4054_v48 = vld [vmem:[#allocation11 + $0xf78] sm:$0xff] }
 0x4d0   :  { %9122 = vmatprep.subr.bf16.mxu0 %v9517_v37  ;;  %v9545_v55 = vld [vmem:[#allocation14 + $0x170] sm:$0xff]   ;;  %v9041_v37 = vcombine.low %v4058_v10, %v4062_v46  ;;  %v9033_v21 = vcombine.low %v4050_v36, %v4054_v48 }
 0x4d1   :  { %v4010_v46 = vld [vmem:[#allocation11 + $0xe18] sm:$0xff] }
 0x4d2   :  { %7325 = vmatpush1.bf16.msra.mxu1 %v8961_v29  ;;  %v9034_v29 = vcombine.high %v4050_v36, %v4054_v48  ;;  %v9556_v36 = vld [vmem:[#allocation14 + $0x108] sm:$0xff]  }
 0x4d3   :  { %9123 = vmatpush3.bf16.msra.mxu0 %v9518_v47  ;;  %7326 = vmatprep.subr.bf16.mxu1 %v8954_v52  ;;  %v9546_v47 = vld [vmem:[#allocation14 + $0x130] sm:$0xff]  }
 0x4d4   :  { %9124 = vmatprep.subr.bf16.mxu0 %v9519_v9  ;;  %v4042_v52 = vld [vmem:[#allocation11 + $0xf18] sm:$0xff] }
 0x4d5   :  { %v4046_v9 = vld [vmem:[#allocation11 + $0xf38] sm:$0xff] }
 0x4d6   :  { %7327 = vmatpush1.bf16.msra.mxu1 %v8953_v60  ;;  %v6885_v60 = vpop.f32.mrf.mxu0 }
 0x4d7   :  { %9125 = vmatpush3.bf16.msra.mxu0 %v9520_v13  ;;  %7328 = vmatprep.subr.bf16.mxu1 %v8946_v62  ;;  %v6928_v13 = vpop.f32.mrf.mxu1  ;;  %v9026_v62 = vcombine.high %v4042_v52, %v4046_v9  ;;  %v6886_v18 = vadd.f32 %v6885_v60, %v4088_v8  ;;  %v9529_v60 = vld [vmem:[#allocation14 + $0xf0] sm:$0xff]  }
 0x4d8   :  { %9126 = vmatprep.subr.bf16.mxu0 %v9521_v25  ;;  %v4034_v25 = vld [vmem:[#allocation11 + $0xed8] sm:$0xff]  ;;  %v10092_v3 = vpop.f32.mrf.mxu0 }
 0x4da   :  { %7329 = vmatpush1.bf16.msra.mxu1 %v8945_v5  ;;  %v10094_v5 = vpop.f32.mrf.mxu1  ;;  %v6967_v42 = vpop.f32.mrf.mxu0 }
 0x4db   :  { %9127 = vmatpush3.bf16.msra.mxu0 %v9522_v6  ;;  %7330 = vmatprep.subr.bf16.mxu1 %v8938_v43  ;;  %v9025_v6 = vcombine.low %v4042_v52, %v4046_v9  ;;  %v9018_v43 = vcombine.high %v4034_v25, %v4038_v1  ;;  %v9558_v52 = vld [vmem:[#allocation14 + $0x100] sm:$0xff]  }
 0x4dc   :  { %9128 = vmatprep.subr.bf16.mxu0 %v9523_v56  ;;  %v4030_v56 = vld [vmem:[#allocation11 + $0xeb8] sm:$0xff]  ;;  %v7010_v41 = vpop.f32.mrf.mxu1  ;;  %v10099_v20 = vpop.f32.mrf.mxu0 }
 0x4dd   :  { %v9009_v0 = vcombine.low %v4026_v39, %v4030_v56 }
 0x4de   :  { %7331 = vmatpush1.bf16.msra.mxu1 %v8937_v58  ;;  %v9017_v58 = vcombine.low %v4034_v25, %v4038_v1  ;;  %v10101_v28 = vpop.f32.mrf.mxu1  ;;  %v9532_v25 = vld [vmem:[#allocation14 + $0xa8] sm:$0xff]   ;;  %v9533_v1 = vld [vmem:[#allocation14 + $0xe0] sm:$0xff]  }
 0x4df   :  { %9129 = vmatpush3.bf16.msra.mxu0 %v9524_v11  ;;  %7332 = vmatprep.subr.bf16.mxu1 %v8930_v15  ;;  %v9010_v11 = vcombine.high %v4026_v39, %v4030_v56  ;;  %v9552_v15 = vld [vmem:[#allocation14 + $0x118] sm:$0xff]   ;;  %v9537_v39 = vld [vmem:[#allocation14 + $0xd0] sm:$0xff]  }
 0x4e0   :  { %9130 = vmatprep.subr.bf16.mxu0 %v9525_v16  ;;  %v4022_v16 = vld [vmem:[#allocation11 + $0xe78] sm:$0xff] }
 0x4e2   :  { %7333 = vmatpush1.bf16.msra.mxu1 %v8929_v12  ;;  %v6882_v12 = vadd.f32 %v10084_v31, %v4088_v8  ;;  %v9539_v8 = vld [vmem:[#allocation14 + $0xc8] sm:$0xff]  }
 0x4e3   :  { %9131 = vmatpush3.bf16.msra.mxu0 %v9526_v23  ;;  %7334 = vmatprep.subr.bf16.mxu1 %v9050_v32  ;;  %v6929_v23 = vadd.f32 %v6928_v13, %v6886_v18  ;;  %v9002_v32 = vcombine.high %v4018_v26, %v4022_v16 }
 0x4e4   :  { %9160 = vmatprep.subr.bf16.mxu0 %v9543_v38  ;;  %v6925_v10 = vadd.f32 %v10086_v7, %v6882_v12  ;;  %v4014_v38 = vld [vmem:[#allocation11 + $0xe38] sm:$0xff] }
 0x4e5   :  { %v8994_v31 = vcombine.high %v4010_v46, %v4014_v38  ;;  %v8993_v7 = vcombine.low %v4010_v46, %v4014_v38  ;;  %v9561_v12 = vld [vmem:[#allocation14 + $0x1f0] sm:$0xff]  }
 0x4e6   :  { %7937 = vmatmul.mubr.bf16.vlgmr.msra.gmra.mxu0 %v7377_v51  ;;  %7335 = vmatpush2.bf16.msra.mxu1 %v9049_v17  ;;  %v6971_v17 = vpop.f32.mrf.mxu0  ;;  %v9001_v51 = vcombine.low %v4018_v26, %v4022_v16  ;;  %v6968_v48 = vadd.f32 %v6967_v42, %v6925_v10  ;;  %v9538_v42 = vld [vmem:[#allocation14 + $0x90] sm:$0xff]   ;;  %v9566_v10 = vld [vmem:[#allocation14 + $0x1a0] sm:$0xff]  }
 0x4e7   :  { %7336 = vmatprep.subr.bf16.mxu1 %v9042_v45  ;;  %9161 = vmatpush3.bf16.msra.mxu0 %v9544_v33  ;;  %v7014_v45 = vpop.f32.mrf.mxu1  ;;  %v6972_v33 = vadd.f32 %v6971_v17, %v6929_v23  ;;  %v9563_v23 = vld [vmem:[#allocation14 + $0x1e8] sm:$0xff]  }
 0x4e8   :  { %9162 = vmatprep.subr.bf16.mxu0 %v9545_v55  ;;  %v7051_v16 = vpop.f32.mrf.mxu0 }
 0x4e9   :  { %v7015_v55 = vadd.f32 %v7014_v45, %v6972_v33  ;;  %v4096_v45 = vrot.slane %v10055_v22, %v1893_v50  ;;  %v9568_v33 = vld [vmem:[#allocation14 + $0x198] sm:$0xff]  }
 0x4ea   :  { %7337 = vmatpush2.bf16.msra.mxu1 %v9041_v37  ;;  %v9557_v37 = vld [vmem:[#allocation14 + $0x140] sm:$0xff]  }
 0x4eb   :  { %7338 = vmatprep.subr.bf16.mxu1 %v9034_v29  ;;  %9163 = vmatpush3.bf16.msra.mxu0 %v9546_v47  ;;  %v7011_v29 = vadd.f32 %v7010_v41, %v6968_v48  ;;  %v9527_v47 = vld [vmem:[#allocation14 + $0xf8] sm:$0xff]   ;;  %v7372_v9 = vmax.f32 %v7015_v55, 0.0 }
 0x4ec   :  { %9164 = vmatprep.subr.bf16.mxu0 %v9547_v19 }
 0x4ed   :  { %v7364_v19 = vmax.f32 %v7011_v29, 0.0 }
 0x4ee   :  { %7339 = vmatpush2.bf16.msra.mxu1 %v9033_v21  ;;  %v9528_v21 = vld [vmem:[#allocation14 + $0xb8] sm:$0xff]  }
 0x4ef   :  { %7340 = vmatprep.subr.bf16.mxu1 %v9026_v62  ;;  %9165 = vmatpush3.bf16.msra.mxu0 %v9548_v63  ;;  %v7380_v13 = vpack.c.bf16 %v7372_v9, %v7364_v19  ;;  %v9530_v62 = vld [vmem:[#allocation14 + $0xb0] sm:$0xff]   ;;  %v9531_v63 = vld [vmem:[#allocation14 + $0xe8] sm:$0xff]  }
 0x4f0   :  { %9166 = vmatprep.subr.bf16.mxu0 %v9549_v61  ;;  %v9534_v61 = vld [vmem:[#allocation14 + $0xa0] sm:$0xff]  }
 0x4f2   :  { %7341 = vmatpush2.bf16.msra.mxu1 %v9025_v6  ;;  %v9535_v6 = vld [vmem:[#allocation14 + $0xd8] sm:$0xff]  }
 0x4f3   :  { %7342 = vmatprep.subr.bf16.mxu1 %v9018_v43  ;;  %9167 = vmatpush3.bf16.msra.mxu0 %v9550_v54  ;;  %v4084_v43 = vrot.slane %v10055_v22, %v1881_v2  ;;  %v9536_v54 = vld [vmem:[#allocation14 + $0x98] sm:$0xff]   ;;  %v9540_v2 = vld [vmem:[#allocation14 + $0x88] sm:$0xff]  }
 0x4f4   :  { %9168 = vmatprep.subr.bf16.mxu0 %v9551_v4 }
 0x4f5   :  { %v6880_v56 = vadd.f32 %v10080_v14, %v4084_v43 }
 0x4f6   :  { %7343 = vmatpush2.bf16.msra.mxu1 %v9017_v58 }
 0x4f7   :  { %7344 = vmatprep.subr.bf16.mxu1 %v9010_v11  ;;  %9169 = vmatpush3.bf16.msra.mxu0 %v9552_v15  ;;  %v6923_v41 = vadd.f32 %v10082_v44, %v6880_v56  ;;  %v9541_v15 = vld [vmem:[#allocation14 + $0xc0] sm:$0xff]   ;;  %v9571_v56 = vld [vmem:[#allocation14 + $0x1c8] sm:$0xff]  }
 0x4f8   :  { %9170 = vmatprep.subr.bf16.mxu0 %v9553_v49  ;;  %v9559_v49 = vld [vmem:[#allocation14 + $0x1f8] sm:$0xff]  }
 0x4f9   :  { %v6966_v11 = vadd.f32 %v10092_v3, %v6923_v41  ;;  %v9562_v3 = vld [vmem:[#allocation14 + $0x1b0] sm:$0xff]  }
 0x4fa   :  { %7345 = vmatpush2.bf16.msra.mxu1 %v9009_v0 }
 0x4fb   :  { %7346 = vmatprep.subr.bf16.mxu1 %v9002_v32  ;;  %9171 = vmatpush3.bf16.msra.mxu0 %v9554_v34  ;;  %v7009_v14 = vadd.f32 %v10094_v5, %v6966_v11  ;;  %v9564_v5 = vld [vmem:[#allocation14 + $0x1a8] sm:$0xff]   ;;  %v9565_v34 = vld [vmem:[#allocation14 + $0x1e0] sm:$0xff]  }
 0x4fc   :  { %9172 = vmatprep.subr.bf16.mxu0 %v9555_v27  ;;  %v9567_v27 = vld [vmem:[#allocation14 + $0x1d8] sm:$0xff]   ;;  %v9573_v11 = vld [vmem:[#allocation14 + $0x1c0] sm:$0xff]  }
 0x4fd   :  { %v7363_v26 = vmax.f32 %v7009_v14, 0.0 }
 0x4fe   :  { %7347 = vmatpush2.bf16.msra.mxu1 %v9001_v51  ;;  %v4092_v51 = vrot.slane %v10055_v22, %v1889_v53  ;;  %v9570_v53 = vld [vmem:[#allocation14 + $0x190] sm:$0xff]  }
 0x4ff   :  { %7348 = vmatprep.subr.bf16.mxu1 %v8994_v31  ;;  %9173 = vmatpush3.bf16.msra.mxu0 %v9556_v36 }
 0x500   :  { %9174 = vmatprep.subr.bf16.mxu0 %v9557_v37  ;;  %v7052_v37 = vadd.f32 %v7051_v16, %v4092_v51 }
 0x502   :  { %7349 = vmatpush2.bf16.msra.mxu1 %v8993_v7 }
 0x503   :  { %9138 = vmatprep.subr.bf16.mxu1 %v9527_v47  ;;  %9175 = vmatpush3.bf16.msra.mxu0 %v9558_v52 }
 0x505   :  { %7351 = vmatmul.mubr.bf16.vlgmr.msra.gmra.mxu1 %v10013_v24  ;;  %v6884_v24 = vadd.f32 %v10088_v59, %v4084_v43  ;;  %v7094_v32 = vpop.f32.mrf.mxu1 }
 0x506   :  { %9139 = vmatpush3.bf16.msra.mxu1 %v9528_v21  ;;  %7977 = vmatprep.mubr.bf16.mxu1 %v7380_v13  ;;  %v7095_v9 = vadd.f32 %v7094_v32, %v7052_v37  ;;  %v9569_v13 = vld [vmem:[#allocation14 + $0x1d0] sm:$0xff]  }
 0x507   :  { %9140 = vmatprep.subr.bf16.mxu1 %v9529_v60  ;;  %v6927_v4 = vadd.f32 %v10090_v57, %v6884_v24  ;;  %v9542_v57 = vld [vmem:[#allocation14 + $0x80] sm:$0xff]   ;;  %v7096_v38 = vpop.f32.mrf.mxu1 }
 0x509   :  { %v6970_v58 = vadd.f32 %v10099_v20, %v6927_v4  ;;  %v9560_v20 = vld [vmem:[#allocation14 + $0x1b8] sm:$0xff]   ;;  %v7098_v31 = vpop.f32.mrf.mxu1 }
 0x50a   :  { %9141 = vmatpush3.bf16.msra.mxu1 %v9530_v62 }
 0x50b   :  { %9142 = vmatprep.subr.bf16.mxu1 %v9531_v63  ;;  %v7013_v59 = vadd.f32 %v10101_v28, %v6970_v58  ;;  %v7053_v28 = vpop.f32.mrf.mxu0  ;;  %v7100_v29 = vpop.f32.mrf.mxu1 }
 0x50c   :  { %v7054_v48 = vadd.f32 %v7053_v28, %v4096_v45 }
 0x50d   :  { %v7371_v18 = vmax.f32 %v7013_v59, 0.0  ;;  %v7055_v0 = vpop.f32.mrf.mxu0 }
 0x50e   :  { %9143 = vmatpush3.bf16.msra.mxu1 %v9532_v25  ;;  %v7056_v55 = vadd.f32 %v7055_v0, %v4092_v51  ;;  %v7097_v47 = vadd.f32 %v7096_v38, %v7054_v48 }
 0x50f   :  { %9144 = vmatprep.subr.bf16.mxu1 %v9533_v1  ;;  %v7379_v44 = vpack.c.bf16 %v7371_v18, %v7363_v26  ;;  %v7057_v46 = vpop.f32.mrf.mxu0 }
 0x510   :  { %v7058_v7 = vadd.f32 %v7057_v46, %v4096_v45  ;;  %v7099_v52 = vadd.f32 %v7098_v31, %v7056_v55 }
 0x511   :  { %v7137_v17 = vpop.f32.mrf.mxu0 }
 0x512   :  { %9145 = vmatpush3.bf16.msra.mxu1 %v9534_v61  ;;  %v7101_v21 = vadd.f32 %v7100_v29, %v7058_v7  ;;  %v7138_v25 = vadd.f32 %v7137_v17, %v7095_v9 }
 0x513   :  { %9146 = vmatprep.subr.bf16.mxu1 %v9535_v6  ;;  %v7139_v36 = vpop.f32.mrf.mxu0 }
 0x514   :  { %v7140_v62 = vadd.f32 %v7139_v36, %v7097_v47 }
 0x515   :  { %v7141_v19 = vpop.f32.mrf.mxu0 }
 0x516   :  { %9147 = vmatpush3.bf16.msra.mxu1 %v9536_v54  ;;  %v7142_v63 = vadd.f32 %v7141_v19, %v7099_v52 }
 0x517   :  { %9148 = vmatprep.subr.bf16.mxu1 %v9537_v39  ;;  %v7143_v1 = vpop.f32.mrf.mxu0 }
 0x518   :  { %v7144_v6 = vadd.f32 %v7143_v1, %v7101_v21 }
 0x51a   :  { %9149 = vmatpush3.bf16.msra.mxu1 %v9538_v42  ;;  %v9572_v42 = vld [vmem:[#allocation14 + $0x188] sm:$0xff]  }
 0x51b   :  { %9150 = vmatprep.subr.bf16.mxu1 %v9539_v8 }
 0x51e   :  { %9151 = vmatpush3.bf16.msra.mxu1 %v9540_v2 }
 0x51f   :  { %9152 = vmatprep.subr.bf16.mxu1 %v9541_v15  ;;  %v9574_v15 = vld [vmem:[#allocation14 + $0x180] sm:$0xff]  }
 0x522   :  { %9153 = vmatpush3.bf16.msra.mxu1 %v9542_v57 }
 0x523   :  { %9182 = vmatprep.subr.bf16.mxu1 %v9559_v49 }
 0x525   :  { %7978 = vmatmul.mubr.bf16.vlgmr.msra.gmra.mxu1 %v7379_v44 }
 0x526   :  { %9183 = vmatpush3.bf16.msra.mxu1 %v9560_v20 }
 0x527   :  { %9184 = vmatprep.subr.bf16.mxu1 %v9561_v12  ;;  %v4104_v12 = vrot.slane %v10055_v22, %v1901_v40 }
 0x52a   :  { %9185 = vmatpush3.bf16.msra.mxu1 %v9562_v3  ;;  %v4100_v3 = vrot.slane %v10055_v22, %v1897_v30 }
 0x52b   :  { %9186 = vmatprep.subr.bf16.mxu1 %v9563_v23 }
 0x52e   :  { %9187 = vmatpush3.bf16.msra.mxu1 %v9564_v5 }
 0x52f   :  { %9188 = vmatprep.subr.bf16.mxu1 %v9565_v34 }
 0x532   :  { %9189 = vmatpush3.bf16.msra.mxu1 %v9566_v10 }
 0x533   :  { %9190 = vmatprep.subr.bf16.mxu1 %v9567_v27 }
 0x536   :  { %9191 = vmatpush3.bf16.msra.mxu1 %v9568_v33 }
 0x537   :  { %9192 = vmatprep.subr.bf16.mxu1 %v9569_v13 }
 0x53a   :  { %9193 = vmatpush3.bf16.msra.mxu1 %v9570_v53 }
 0x53b   :  { %9194 = vmatprep.subr.bf16.mxu1 %v9571_v56 }
 0x53e   :  { %9195 = vmatpush3.bf16.msra.mxu1 %v9572_v42 }
 0x53f   :  { %9196 = vmatprep.subr.bf16.mxu1 %v9573_v11 }
 0x542   :  { %9197 = vmatpush3.bf16.msra.mxu1 %v9574_v15 }
 0x545   :  { %v7180_v50 = vpop.f32.mrf.mxu1 }
 0x546   :  { %v7181_v24 = vadd.f32 %v7180_v50, %v7138_v25  ;;  %v7223_v57 = vpop.f32.mrf.mxu0 }
 0x547   :  { %v7182_v60 = vpop.f32.mrf.mxu1  ;;  %v7224_v32 = vadd.f32 %v7223_v57, %v4100_v3 }
 0x548   :  { %v7183_v43 = vadd.f32 %v7182_v60, %v7140_v62  ;;  %v7365_v2 = vmax.f32 %v7181_v24, 0.0  ;;  %v7225_v18 = vpop.f32.mrf.mxu0 }
 0x549   :  { %v7184_v61 = vpop.f32.mrf.mxu1  ;;  %v7226_v5 = vadd.f32 %v7225_v18, %v4104_v12 }
 0x54a   :  { %v7185_v54 = vadd.f32 %v7184_v61, %v7142_v63  ;;  %v7366_v8 = vmax.f32 %v7183_v43, 0.0  ;;  %v7227_v26 = vpop.f32.mrf.mxu0 }
 0x54b   :  { %v7186_v39 = vpop.f32.mrf.mxu1  ;;  %v7228_v0 = vadd.f32 %v7227_v26, %v4100_v3 }
 0x54c   :  { %v7187_v4 = vadd.f32 %v7186_v39, %v7144_v6  ;;  %v7373_v41 = vmax.f32 %v7185_v54, 0.0  ;;  %v7229_v16 = vpop.f32.mrf.mxu0  ;;  %v9051_v54 = vld [vmem:[#allocation15] ss:$0 sm:$0xff] }
 0x54d   :  { %v7230_v10 = vadd.f32 %v7229_v16, %v4104_v12 }
 0x54e   :  { %v7374_v58 = vmax.f32 %v7187_v4, 0.0  ;;  %v7381_v14 = vpack.c.bf16 %v7373_v41, %v7365_v2 }
 0x550   :  { %v7382_v59 = vpack.c.bf16 %v7374_v58, %v7366_v8 }
 0x552   :  { %8018 = vmatprep.mubr.bf16.mxu0 %v7382_v59 }
 0x553   :  { %8019 = vmatmul.mubr.bf16.vlgmr.msra.gmra.mxu0 %v7381_v14 }
 0x585   :  { %v7266_v44 = vpop.f32.mrf.mxu1 }
 0x586   :  { %v7309_v20 = vpop.f32.mrf.mxu0  ;;  %v7267_v27 = vadd.f32 %v7266_v44, %v7224_v32 }
 0x587   :  { %v7268_v49 = vpop.f32.mrf.mxu1 }
 0x588   :  { %v7311_v23 = vpop.f32.mrf.mxu0  ;;  %v7269_v46 = vadd.f32 %v7268_v49, %v7226_v5  ;;  %v7310_v36 = vadd.f32 %v7309_v20, %v7267_v27 }
 0x589   :  { %v7270_v28 = vpop.f32.mrf.mxu1 }
 0x58a   :  { %v7271_v38 = vadd.f32 %v7270_v28, %v7228_v0  ;;  %v7313_v17 = vpop.f32.mrf.mxu0  ;;  %v7312_v31 = vadd.f32 %v7311_v23, %v7269_v46 }
 0x58b   :  { %v7272_v34 = vpop.f32.mrf.mxu1 }
 0x58c   :  { %v7273_v33 = vadd.f32 %v7272_v34, %v7230_v10  ;;  %v7314_v40 = vadd.f32 %v7313_v17, %v7271_v38  ;;  %v7315_v35 = vpop.f32.mrf.mxu0 }
 0x58e   :  { %v7316_v30 = vadd.f32 %v7315_v35, %v7273_v33 }
 0x5a6   :  { %v9132_v60 = vpop.f32.mrf.mxu0 }
 0x5a8   :  { %v9133_v13 = vpop.f32.mrf.mxu0 }
 0x5a9   :  { %v9134_v43 = vadd.f32 %v9133_v13, %v9132_v60 }
 0x5aa   :  { %v9135_v62 = vpop.f32.mrf.mxu0 }
 0x5ab   :  { %v7939_v4 = vadd.f32 %v9134_v43, %v9051_v54 }
 0x5ac   :  { %v9136_v63 = vpop.f32.mrf.mxu0 }
 0x5ad   :  { %v9137_v42 = vadd.f32 %v9136_v63, %v9135_v62 }
 0x5af   :  { %v7942_v15 = vadd.f32 %v9137_v42, %v9051_v54 }
 0x5c5   :  { %v7352_v45 = vpop.f32.mrf.mxu1 }
 0x5c6   :  { %v7353_v37 = vadd.f32 %v7352_v45, %v7310_v36 }
 0x5c7   :  { %v7354_v51 = vpop.f32.mrf.mxu1 }
 0x5c8   :  { %v7355_v22 = vadd.f32 %v7354_v51, %v7312_v31  ;;  %v7367_v19 = vmax.f32 %v7353_v37, 0.0 }
 0x5c9   :  { %v7356_v48 = vpop.f32.mrf.mxu1 }
 0x5ca   :  { %v7357_v55 = vadd.f32 %v7356_v48, %v7314_v40  ;;  %v7368_v52 = vmax.f32 %v7355_v22, 0.0 }
 0x5cb   :  { %v7358_v29 = vpop.f32.mrf.mxu1 }
 0x5cc   :  { %v7359_v7 = vadd.f32 %v7358_v29, %v7316_v30  ;;  %v7375_v47 = vmax.f32 %v7357_v55, 0.0 }
 0x5ce   :  { %v7376_v9 = vmax.f32 %v7359_v7, 0.0  ;;  %v7383_v21 = vpack.c.bf16 %v7375_v47, %v7367_v19 }
 0x5d0   :  { %v7384_v50 = vpack.c.bf16 %v7376_v9, %v7368_v52 }
 0x5d2   :  { %8059 = vmatprep.mubr.bf16.mxu1 %v7384_v50 }
 0x5d3   :  { %8060 = vmatmul.mubr.bf16.vlgmr.msra.gmra.mxu1 %v7383_v21 }
 0x5e5   :  { %v9154_v53 = vpop.f32.mrf.mxu1 }
 0x5e7   :  { %v9155_v1 = vpop.f32.mrf.mxu1 }
 0x5e8   :  { %v9156_v39 = vadd.f32 %v9155_v1, %v9154_v53 }
 0x5e9   :  { %v9157_v6 = vpop.f32.mrf.mxu1 }
 0x5ea   :  { %v7980_v2 = vadd.f32 %v9156_v39, %v7939_v4 }
 0x5eb   :  { %v9158_v56 = vpop.f32.mrf.mxu1 }
 0x5ec   :  { %v9159_v11 = vadd.f32 %v9158_v56, %v9157_v6 }
 0x5ee   :  { %v7983_v44 = vadd.f32 %v9159_v11, %v7942_v15 }
 0x613   :  { %v9176_v25 = vpop.f32.mrf.mxu0 }
 0x615   :  { %v9177_v61 = vpop.f32.mrf.mxu0 }
 0x616   :  { %v9178_v41 = vadd.f32 %v9177_v61, %v9176_v25 }
 0x617   :  { %v9179_v24 = vpop.f32.mrf.mxu0 }
 0x618   :  { %v8021_v14 = vadd.f32 %v9178_v41, %v7980_v2 }
 0x619   :  { %v9180_v8 = vpop.f32.mrf.mxu0 }
 0x61a   :  { %v9181_v57 = vadd.f32 %v9180_v8, %v9179_v24 }
 0x61c   :  { %v8024_v20 = vadd.f32 %v9181_v57, %v7983_v44 }
 0x693   :  { %v9198_v58 = vpop.f32.mrf.mxu1 }
 0x695   :  { %v9199_v59 = vpop.f32.mrf.mxu1 }
 0x696   :  { %v9200_v18 = vadd.f32 %v9199_v59, %v9198_v58 }
 0x697   :  { %v9201_v26 = vpop.f32.mrf.mxu1 }
 0x698   :  { %v8062_v16 = vadd.f32 %v9200_v18, %v8021_v14 }
 0x699   :  { %v9202_v49 = vpop.f32.mrf.mxu1 }
 0x69a   :  { %8068 = vst [vmem:[#allocation17] sm:$0xff] %v8062_v16  ;;  %v9203_v12 = vadd.f32 %v9202_v49, %v9201_v26 }
 0x69c   :  { %v8065_v3 = vadd.f32 %v9203_v12, %v8024_v20 }
 0x69e   :  { %8069 = vst [vmem:[#allocation17 + $0x8] sm:$0xff] %v8065_v3 }
 0x69f   :  { %9746 = shalt.err (!%p9743_p2)
}
 0x6a0   :  { %s9784_s25 = smov 128   ;;  %s9785_s26 = smov 8  }
 0x6a1   :  { %8081 = dma.vmem_to_hbm [thread:$0]  %s8076_s7, 256, %s10140_s8, [#allocation5], %s9784_s25, %s9784_s25, %s9785_s26  }
 0x6a2   :  { %9765 = dma.done.wait [#allocation5], 256  }
 0x6a3   :  { %9766 = vsyncadd [#allocation5], 4294967040 }
 0x6a4   :  { %8085 = vsyncpa [#allocation4], 1 }
 0x6a5   :  { %8086 = vsyncpa [#allocation7], 1 }
 0x6a6   :  { %8087 = vsyncpa [#allocation10], 1 }
 0x6a7   :  { %8088 = vsyncpa [#allocation13], 1 }
 0x6a8   :  { %8089 = vsyncpa [#allocation16], 1 }
 0x6a9   :  { %8090 = vsyncpa [#allocation5], 1 }

</bundles_post_ra>
